<compile_context>
chip_gen: v7x
topology: tpu7x:2x2x1
jax: 0.10.0
libtpu: 0.0.40
codegen_flags: <defaults>
</compile_context>

<pallas_src>
import functools

import jax
import jax.numpy as jnp
import numpy as np
from jax.experimental import pallas as pl
from jax.experimental.pallas import tpu as pltpu

EPS = 1e-5        # nn.BatchNorm2d default eps
PAD_OFF = 8       # sublane-aligned offset of the data inside padded scratch
C1 = 32           # conv1 output channels


def _round_up(a, b):
    return (a + b - 1) // b * b


# ---------------------------------------------------------------------------
# In-kernel helpers (traced inline; every shape is Python-static)
# ---------------------------------------------------------------------------
def _batchnorm(yf, gamma, beta):
    """Train-mode BatchNorm over a (rows, C) slab, two-pass variance."""
    cnt = yf.shape[0]
    mean = jnp.sum(yf, axis=0, keepdims=True) * (1.0 / cnt)
    d = yf - mean
    var = jnp.sum(d * d, axis=0, keepdims=True) * (1.0 / cnt)
    scale = gamma * jax.lax.rsqrt(var + EPS)
    return d * scale + beta


def _pool_bn(y_flat, gamma, beta, *, N, H, W, C):
    """ReLU'd conv output (N*H*W, C) -> 2x2 maxpool -> BatchNorm -> (N,H/2,W/2,C)."""
    Hh, Wh = H // 2, W // 2
    y = y_flat.reshape(N, Hh, 2, W, C)                 # leading split: free
    y = jnp.maximum(y[:, :, 0], y[:, :, 1])            # H-halving: leading select
    y = y.reshape(N, Hh, Wh, 2, C)
    y = jnp.maximum(y[:, :, :, 0], y[:, :, :, 1])      # W-halving
    yn = _batchnorm(y.reshape(N * Hh * Wh, C), gamma, beta)
    return yn.reshape(N, Hh, Wh, C)


def _fill_padded(pad_ref, x4d, *, H, W):
    """Write x4d (N,H,W,C) into pad_ref (N,H+2,Wp,C) at rows 1..H, cols 8..8+W-1.

    Only the halo that the conv taps read is zeroed (left/right strips + the
    top/bottom rows); the data region is written exactly once.
    """
    N, _, Wp, C = pad_ref.shape
    dt = pad_ref.dtype
    pad_ref[:, :, 0:PAD_OFF, :] = jnp.zeros((N, H + 2, PAD_OFF, C), dt)
    pad_ref[:, :, PAD_OFF + W:, :] = jnp.zeros((N, H + 2, Wp - PAD_OFF - W, C), dt)
    pad_ref[:, 0:1, PAD_OFF:PAD_OFF + W, :] = jnp.zeros((N, 1, W, C), dt)
    pad_ref[:, H + 1:H + 2, PAD_OFF:PAD_OFF + W, :] = jnp.zeros((N, 1, W, C), dt)
    pad_ref[:, 1:H + 1, PAD_OFF:PAD_OFF + W, :] = x4d


def _conv3x3(pad_ref, x4d, w_ref, b, *, N, H, W, Cin, Cout):
    """3x3 'same' conv + bias + ReLU, channel-last, as ONE batched MXU op.

    The 9 shifted views are stacked along a new leading (tap) axis (leading-dim
    concat only, no lane relayout), a single batched einsum contracts Cin for
    all taps, and the 9 partials are combined with a balanced add tree (no
    serialized dot->add chain).  Returns (N*H*W, Cout) in (n, h, w) row order.
    """
    _fill_padded(pad_ref, x4d, H=H, W=W)
    xp = pad_ref[...]
    M = N * H * W
    taps = [xp[:, dy:dy + H, PAD_OFF - 1 + dx:PAD_OFF - 1 + dx + W, :].reshape(1, M, Cin)
            for dy in range(3) for dx in range(3)]
    slab = jnp.concatenate(taps, axis=0)                         # (9, M, Cin)
    parts = jnp.einsum("kmi,kio->kmo", slab, w_ref[...],
                       preferred_element_type=jnp.float32)       # (9, M, Cout)
    p = [parts[k] for k in range(9)]
    acc = (((p[0] + p[1]) + (p[2] + p[3]))
           + ((p[4] + p[5]) + (p[6] + p[7]))) + p[8]
    return jnp.maximum(acc + b, 0.0)


# ---------------------------------------------------------------------------
# The single fused kernel
# ---------------------------------------------------------------------------
def discriminator_kernel(x_ref, B1_ref, b1f_ref, g1_ref, be1_ref,
                         w2_ref, b2_ref, g2_ref, be2_ref,
                         w3_ref, b3_ref, g3_ref, be3_ref,
                         wo_ref, bo_ref,
                         o_ref,
                         padH_ref, x1r_ref, pad2_ref, pad3_ref, *, N, H, W):
    H2, W2 = H // 2, W // 2
    H3, W3 = H2 // 2, W2 // 2
    H4, W4 = H3 // 2, W3 // 2
    HP1 = padH_ref.shape[1]

    # ---- block 1: conv(1->32) via 3 banded matmuls over the W axis ----
    # B1[dy] already encodes the dx taps and W-direction zero padding, so only
    # the H halo needs explicit zeros (aligned 8-row strips).
    x = x_ref[...].reshape(N, H, W)
    padH_ref[:, 0:PAD_OFF, :] = jnp.zeros((N, PAD_OFF, W), jnp.float32)
    padH_ref[:, PAD_OFF + H:, :] = jnp.zeros((N, HP1 - PAD_OFF - H, W), jnp.float32)
    padH_ref[:, PAD_OFF:PAD_OFF + H, :] = x
    xp1 = padH_ref[...]
    NH = N * H
    d0 = jnp.dot(xp1[:, PAD_OFF - 1:PAD_OFF - 1 + H, :].reshape(NH, W), B1_ref[0],
                 preferred_element_type=jnp.float32)
    d1 = jnp.dot(xp1[:, PAD_OFF:PAD_OFF + H, :].reshape(NH, W), B1_ref[1],
                 preferred_element_type=jnp.float32)
    d2 = jnp.dot(xp1[:, PAD_OFF + 1:PAD_OFF + 1 + H, :].reshape(NH, W), B1_ref[2],
                 preferred_element_type=jnp.float32)
    y1 = jnp.maximum((d0 + d1) + d2 + b1f_ref[...], 0.0)        # (N*H, W*32) lane-flat

    # W-halving maxpool per 32-lane channel chunk, relaid out channel-minor.
    for wh in range(W2):
        a = y1[:, (2 * wh) * C1:(2 * wh + 1) * C1]
        bb = y1[:, (2 * wh + 1) * C1:(2 * wh + 2) * C1]
        x1r_ref[:, :, wh, :] = jnp.maximum(a, bb).reshape(N, H, C1)
    x1v = x1r_ref[...].reshape(N, H2, 2, W2, C1)
    x1v = jnp.maximum(x1v[:, :, 0], x1v[:, :, 1])                # H-halving
    x1 = _batchnorm(x1v.reshape(N * H2 * W2, C1),
                    g1_ref[...], be1_ref[...]).reshape(N, H2, W2, C1)

    # ---- block 2: conv(32->64) ----
    y2 = _conv3x3(pad2_ref, x1, w2_ref, b2_ref[...],
                  N=N, H=H2, W=W2, Cin=32, Cout=64)
    x2 = _pool_bn(y2, g2_ref[...], be2_ref[...], N=N, H=H2, W=W2, C=64)

    # ---- block 3: conv(64->128) ----
    y3 = _conv3x3(pad3_ref, x2, w3_ref, b3_ref[...],
                  N=N, H=H3, W=W3, Cin=64, Cout=128)
    x3 = _pool_bn(y3, g3_ref[...], be3_ref[...], N=N, H=H3, W=W3, C=128)

    # ---- head: global average pool + Linear(128 -> 10) ----
    pooled = jnp.mean(x3.reshape(N, H4 * W4, 128), axis=1)
    o_ref[...] = (jnp.dot(pooled, wo_ref[...], preferred_element_type=jnp.float32)
                  + bo_ref[...])


# ---------------------------------------------------------------------------
# One-time parameter preparation (cached alongside the params; NOT per call)
# ---------------------------------------------------------------------------
def prepare_params(params, *, W):
    """Re-layout PyTorch-layout params into kernel form, once per (params, W)."""
    # Layer-1 banded matrices: B1[dy][w_in, w_out*32 + c] = K1[c,0,dy, w_in-w_out+1]
    # inside the 3-tap band, 0 outside -> folds dx taps + W zero padding into
    # the matmul RHS so the kernel consumes the raw NCHW input directly.
    taps1 = jnp.transpose(params["w1"][:, 0], (1, 2, 0))          # (dy, dx, c)
    win = np.arange(W)[:, None]
    wout = np.arange(W)[None, :]
    dxi = win - wout + 1
    mask = jnp.asarray(((dxi >= 0) & (dxi < 3)).astype(np.float32))
    B1 = taps1[:, np.clip(dxi, 0, 2), :] * mask[None, :, :, None]  # (3, W, W, 32)
    B1 = B1.reshape(3, W, W * C1)

    def conv_w(w):        # (Cout, Cin, 3, 3) -> (9, Cin, Cout), tap-major (dy, dx)
        cout, cin = w.shape[0], w.shape[1]
        return jnp.transpose(w, (2, 3, 1, 0)).reshape(9, cin, cout)

    row = lambda v: v.reshape(1, -1)
    return {
        "B1": B1,
        "b1f": row(jnp.tile(params["b1"], W)),        # conv1 bias tiled to lane-flat layout
        "g1": row(params["g1"]), "be1": row(params["be1"]),
        "w2": conv_w(params["w2"]), "b2": row(params["b2"]),
        "g2": row(params["g2"]), "be2": row(params["be2"]),
        "w3": conv_w(params["w3"]), "b3": row(params["b3"]),
        "g3": row(params["g3"]), "be3": row(params["be3"]),
        "wo": params["wo"].T, "bo": row(params["bo"]),
    }


_VMEM = pl.BlockSpec(memory_space=pltpu.MemorySpace.VMEM)


@jax.jit
def discriminator_forward(x_nchw, prep):
    """Fused forward pass; the jitted graph is exactly one pallas_call."""
    N, _, H, W = x_nchw.shape
    H2, W2, H3, W3 = H // 2, W // 2, H // 4, W // 4
    HP1 = PAD_OFF + _round_up(H + 1, 8)
    WP2 = PAD_OFF + _round_up(W2 + 1, 8)
    WP3 = PAD_OFF + _round_up(W3 + 1, 8)
    kernel = functools.partial(discriminator_kernel, N=N, H=H, W=W)
    return pl.pallas_call(
        kernel,
        out_shape=jax.ShapeDtypeStruct((N, 10), jnp.float32),
        in_specs=[_VMEM] * 15,
        out_specs=_VMEM,
        scratch_shapes=[
            pltpu.VMEM((N, HP1, W), jnp.float32),             # conv1 H-padded input
            pltpu.VMEM((N, H, W2, C1), jnp.float32),          # conv1 W-pooled, channel-minor
            pltpu.VMEM((N, H2 + 2, WP2, 32), jnp.float32),    # conv2 padded input
            pltpu.VMEM((N, H3 + 2, WP3, 64), jnp.float32),    # conv3 padded input
        ],
    )(x_nchw, prep["B1"], prep["b1f"], prep["g1"], prep["be1"],
      prep["w2"], prep["b2"], prep["g2"], prep["be2"],
      prep["w3"], prep["b3"], prep["g3"], prep["be3"],
      prep["wo"], prep["bo"])


# ---------------------------------------------------------------------------
# Pure-JAX reference (same math, XLA ops) for a sanity check
# ---------------------------------------------------------------------------
def ref_forward(x_nchw, params):
    x = jnp.transpose(x_nchw, (0, 2, 3, 1))
    hp = jax.lax.Precision.HIGHEST

    def block(x, w_oihw, b, g, be):
        w = jnp.transpose(w_oihw, (2, 3, 1, 0))  # HWIO
        y = jax.lax.conv_general_dilated(
            x, w, window_strides=(1, 1), padding="SAME",
            dimension_numbers=("NHWC", "HWIO", "NHWC"), precision=hp)
        y = jax.nn.relu(y + b)
        y = jax.lax.reduce_window(y, -jnp.inf, jax.lax.max,
                                  (1, 2, 2, 1), (1, 2, 2, 1), "VALID")
        mean = jnp.mean(y, axis=(0, 1, 2))
        var = jnp.mean((y - mean) ** 2, axis=(0, 1, 2))
        return (y - mean) * jax.lax.rsqrt(var + EPS) * g + be

    x = block(x, params["w1"], params["b1"], params["g1"], params["be1"])
    x = block(x, params["w2"], params["b2"], params["g2"], params["be2"])
    x = block(x, params["w3"], params["b3"], params["g3"], params["be3"])
    pooled = jnp.mean(x, axis=(1, 2))
    return jnp.dot(pooled, params["wo"].T, precision=hp) + params["bo"]


# ---------------------------------------------------------------------------
def init_params(key):
    ks = jax.random.split(key, 12)
    n = jax.random.normal
    return {
        # Conv2d weights in PyTorch layout (Cout, Cin, 3, 3)
        "w1": 0.1 * n(ks[0], (32, 1, 3, 3), jnp.float32),
        "b1": 0.1 * n(ks[1], (32,), jnp.float32),
        "w2": 0.1 * n(ks[2], (64, 32, 3, 3), jnp.float32),
        "b2": 0.1 * n(ks[3], (64,), jnp.float32),
        "w3": 0.1 * n(ks[4], (128, 64, 3, 3), jnp.float32),
        "b3": 0.1 * n(ks[5], (128,), jnp.float32),
        # BatchNorm affine params (gamma, beta)
        "g1": 1.0 + 0.1 * n(ks[6], (32,), jnp.float32),
        "be1": 0.1 * n(ks[7], (32,), jnp.float32),
        "g2": 1.0 + 0.1 * n(ks[8], (64,), jnp.float32),
        "be2": 0.1 * n(ks[9], (64,), jnp.float32),
        "g3": 1.0 + 0.1 * n(ks[10], (128,), jnp.float32),
        "be3": 0.1 * n(ks[11], (128,), jnp.float32),
        # Linear(128 -> 10), PyTorch layout (out, in)
        "wo": 0.1 * n(jax.random.fold_in(key, 100), (10, 128), jnp.float32),
        "bo": 0.1 * n(jax.random.fold_in(key, 101), (10,), jnp.float32),
    }


if __name__ == "__main__":
    key = jax.random.PRNGKey(0)
    params = init_params(key)
    # Small input consistent with the module: batch=2, channels=1, 16x16.
    x = jax.random.normal(jax.random.fold_in(key, 999), (2, 1, 16, 16), jnp.float32)

    prep = prepare_params(params, W=16)      # one-time re-layout, cached with params
    out = jax.block_until_ready(discriminator_forward(x, prep))
    assert out.shape == (2, 10), out.shape

    ref = jax.block_until_ready(ref_forward(x, params))
    # 5e-3 covers possible MXU multi-pass rounding differences vs the XLA ref.
    assert jnp.allclose(out, ref, atol=5e-3, rtol=5e-3), (out, ref)

    print("KERNEL_OK")
</pallas_src>

<mosaic_0001>
module attributes {stable_mosaic.version = 11 : i64} {
  func.func @discriminator_kernel(%arg0: memref<2x1x16x16xf32, #tpu.memory_space<vmem>>, %arg1: memref<3x16x512xf32, #tpu.memory_space<vmem>>, %arg2: memref<1x512xf32, #tpu.memory_space<vmem>>, %arg3: memref<1x32xf32, #tpu.memory_space<vmem>>, %arg4: memref<1x32xf32, #tpu.memory_space<vmem>>, %arg5: memref<9x32x64xf32, #tpu.memory_space<vmem>>, %arg6: memref<1x64xf32, #tpu.memory_space<vmem>>, %arg7: memref<1x64xf32, #tpu.memory_space<vmem>>, %arg8: memref<1x64xf32, #tpu.memory_space<vmem>>, %arg9: memref<9x64x128xf32, #tpu.memory_space<vmem>>, %arg10: memref<1x128xf32, #tpu.memory_space<vmem>>, %arg11: memref<1x128xf32, #tpu.memory_space<vmem>>, %arg12: memref<1x128xf32, #tpu.memory_space<vmem>>, %arg13: memref<128x10xf32, #tpu.memory_space<vmem>>, %arg14: memref<1x10xf32, #tpu.memory_space<vmem>>, %arg15: memref<2x10xf32, #tpu.memory_space<vmem>>, %arg16: memref<2x32x16xf32, #tpu.memory_space<vmem>>, %arg17: memref<2x16x8x32xf32, #tpu.memory_space<vmem>>, %arg18: memref<2x10x24x32xf32, #tpu.memory_space<vmem>>, %arg19: memref<2x6x16x64xf32, #tpu.memory_space<vmem>>) attributes {dimension_semantics = [], scalar_prefetch = 0 : i64, scratch_operands = 4 : i64, tpu.core_type = #tpu.core_type<tc>} {
    %c0 = arith.constant 0 : index
    %c0_0 = arith.constant 0 : index
    %c0_1 = arith.constant 0 : index
    %c0_2 = arith.constant 0 : index
    %0 = vector.load %arg0[%c0, %c0_0, %c0_1, %c0_2] : memref<2x1x16x16xf32, #tpu.memory_space<vmem>>, vector<2x1x16x16xf32>
    %1 = vector.shape_cast %0 : vector<2x1x16x16xf32> to vector<2x16x16xf32>
    %cst = arith.constant 0.000000e+00 : f32
    %2 = vector.broadcast %cst : f32 to vector<2x8x16xf32>
    %c0_3 = arith.constant 0 : index
    %c0_4 = arith.constant 0 : index
    %c0_5 = arith.constant 0 : index
    %3 = vector.load %arg16[%c0_3, %c0_4, %c0_5] : memref<2x32x16xf32, #tpu.memory_space<vmem>>, vector<2x8x16xf32>
    tpu.vector_store %arg16[%c0_3, %c0_4, %c0_5], %2 {strides = array<i32>} : memref<2x32x16xf32, #tpu.memory_space<vmem>>, vector<2x8x16xf32>,
    %cst_6 = arith.constant 0.000000e+00 : f32
    %4 = vector.broadcast %cst_6 : f32 to vector<2x8x16xf32>
    %c0_7 = arith.constant 0 : index
    %c24 = arith.constant 24 : index
    %c0_8 = arith.constant 0 : index
    %5 = vector.load %arg16[%c0_7, %c24, %c0_8] : memref<2x32x16xf32, #tpu.memory_space<vmem>>, vector<2x8x16xf32>
    tpu.vector_store %arg16[%c0_7, %c24, %c0_8], %4 {strides = array<i32>} : memref<2x32x16xf32, #tpu.memory_space<vmem>>, vector<2x8x16xf32>,
    %c0_9 = arith.constant 0 : index
    %c8 = arith.constant 8 : index
    %c0_10 = arith.constant 0 : index
    %6 = vector.load %arg16[%c0_9, %c8, %c0_10] : memref<2x32x16xf32, #tpu.memory_space<vmem>>, vector<2x16x16xf32>
    tpu.vector_store %arg16[%c0_9, %c8, %c0_10], %1 {strides = array<i32>} : memref<2x32x16xf32, #tpu.memory_space<vmem>>, vector<2x16x16xf32>,
    %c0_11 = arith.constant 0 : index
    %c0_12 = arith.constant 0 : index
    %c0_13 = arith.constant 0 : index
    %7 = vector.load %arg16[%c0_11, %c0_12, %c0_13] : memref<2x32x16xf32, #tpu.memory_space<vmem>>, vector<2x32x16xf32>
    %8 = vector.extract_strided_slice %7 {offsets = [0, 7, 0], sizes = [2, 16, 16], strides = [1, 1, 1]} : vector<2x32x16xf32> to vector<2x16x16xf32>
    %9 = vector.shape_cast %8 : vector<2x16x16xf32> to vector<32x16xf32>
    %c0_14 = arith.constant 0 : index
    %c0_15 = arith.constant 0 : index
    %c0_16 = arith.constant 0 : index
    %10 = vector.load %arg1[%c0_14, %c0_15, %c0_16] : memref<3x16x512xf32, #tpu.memory_space<vmem>>, vector<1x16x512xf32>
    %11 = vector.shape_cast %10 : vector<1x16x512xf32> to vector<16x512xf32>
    %cst_17 = arith.constant dense<0.000000e+00> : vector<32x512xf32>
    %12 = tpu.matmul %9, %11, %cst_17 {dimension_numbers = #tpu.dot_dimension_numbers<[1], [0], [0], [1], [0, 0, 1, 1], [], []>} : vector<32x16xf32>, vector<16x512xf32>, vector<32x512xf32> -> vector<32x512xf32>
    %13 = vector.extract_strided_slice %7 {offsets = [0, 8, 0], sizes = [2, 16, 16], strides = [1, 1, 1]} : vector<2x32x16xf32> to vector<2x16x16xf32>
    %14 = vector.shape_cast %13 : vector<2x16x16xf32> to vector<32x16xf32>
    %c1 = arith.constant 1 : index
    %c0_18 = arith.constant 0 : index
    %c0_19 = arith.constant 0 : index
    %15 = vector.load %arg1[%c1, %c0_18, %c0_19] : memref<3x16x512xf32, #tpu.memory_space<vmem>>, vector<1x16x512xf32>
    %16 = vector.shape_cast %15 : vector<1x16x512xf32> to vector<16x512xf32>
    %cst_20 = arith.constant dense<0.000000e+00> : vector<32x512xf32>
    %17 = tpu.matmul %14, %16, %cst_20 {dimension_numbers = #tpu.dot_dimension_numbers<[1], [0], [0], [1], [0, 0, 1, 1], [], []>} : vector<32x16xf32>, vector<16x512xf32>, vector<32x512xf32> -> vector<32x512xf32>
    %18 = vector.extract_strided_slice %7 {offsets = [0, 9, 0], sizes = [2, 16, 16], strides = [1, 1, 1]} : vector<2x32x16xf32> to vector<2x16x16xf32>
    %19 = vector.shape_cast %18 : vector<2x16x16xf32> to vector<32x16xf32>
    %c2 = arith.constant 2 : index
    %c0_21 = arith.constant 0 : index
    %c0_22 = arith.constant 0 : index
    %20 = vector.load %arg1[%c2, %c0_21, %c0_22] : memref<3x16x512xf32, #tpu.memory_space<vmem>>, vector<1x16x512xf32>
    %21 = vector.shape_cast %20 : vector<1x16x512xf32> to vector<16x512xf32>
    %cst_23 = arith.constant dense<0.000000e+00> : vector<32x512xf32>
    %22 = tpu.matmul %19, %21, %cst_23 {dimension_numbers = #tpu.dot_dimension_numbers<[1], [0], [0], [1], [0, 0, 1, 1], [], []>} : vector<32x16xf32>, vector<16x512xf32>, vector<32x512xf32> -> vector<32x512xf32>
    %23 = arith.addf %12, %17 : vector<32x512xf32>
    %24 = arith.addf %23, %22 : vector<32x512xf32>
    %c0_24 = arith.constant 0 : index
    %c0_25 = arith.constant 0 : index
    %25 = vector.load %arg2[%c0_24, %c0_25] : memref<1x512xf32, #tpu.memory_space<vmem>>, vector<1x512xf32>
    %26 = vector.broadcast %25 : vector<1x512xf32> to vector<32x512xf32>
    %27 = arith.addf %24, %26 : vector<32x512xf32>
    %cst_26 = arith.constant 0.000000e+00 : f32
    %28 = vector.broadcast %cst_26 : f32 to vector<32x512xf32>
    %29 = arith.maximumf %27, %28 : vector<32x512xf32>
    %30 = vector.extract_strided_slice %29 {offsets = [0, 0], sizes = [32, 32], strides = [1, 1]} : vector<32x512xf32> to vector<32x32xf32>
    %31 = vector.extract_strided_slice %29 {offsets = [0, 32], sizes = [32, 32], strides = [1, 1]} : vector<32x512xf32> to vector<32x32xf32>
    %32 = arith.maximumf %30, %31 : vector<32x32xf32>
    %33 = vector.shape_cast %32 : vector<32x32xf32> to vector<2x16x32xf32>
    %c0_27 = arith.constant 0 : index
    %c0_28 = arith.constant 0 : index
    %c0_29 = arith.constant 0 : index
    %c0_30 = arith.constant 0 : index
    %34 = vector.load %arg17[%c0_27, %c0_28, %c0_29, %c0_30] : memref<2x16x8x32xf32, #tpu.memory_space<vmem>>, vector<2x16x1x32xf32>
    %35 = vector.shape_cast %34 : vector<2x16x1x32xf32> to vector<2x16x32xf32>
    %36 = vector.shape_cast %33 : vector<2x16x32xf32> to vector<2x16x1x32xf32>
    tpu.vector_store %arg17[%c0_27, %c0_28, %c0_29, %c0_30], %36 {strides = array<i32>} : memref<2x16x8x32xf32, #tpu.memory_space<vmem>>, vector<2x16x1x32xf32>,
    %37 = vector.extract_strided_slice %29 {offsets = [0, 64], sizes = [32, 32], strides = [1, 1]} : vector<32x512xf32> to vector<32x32xf32>
    %38 = vector.extract_strided_slice %29 {offsets = [0, 96], sizes = [32, 32], strides = [1, 1]} : vector<32x512xf32> to vector<32x32xf32>
    %39 = arith.maximumf %37, %38 : vector<32x32xf32>
    %40 = vector.shape_cast %39 : vector<32x32xf32> to vector<2x16x32xf32>
    %c0_31 = arith.constant 0 : index
    %c0_32 = arith.constant 0 : index
    %c1_33 = arith.constant 1 : index
    %c0_34 = arith.constant 0 : index
    %41 = vector.load %arg17[%c0_31, %c0_32, %c1_33, %c0_34] : memref<2x16x8x32xf32, #tpu.memory_space<vmem>>, vector<2x16x1x32xf32>
    %42 = vector.shape_cast %41 : vector<2x16x1x32xf32> to vector<2x16x32xf32>
    %43 = vector.shape_cast %40 : vector<2x16x32xf32> to vector<2x16x1x32xf32>
    tpu.vector_store %arg17[%c0_31, %c0_32, %c1_33, %c0_34], %43 {strides = array<i32>} : memref<2x16x8x32xf32, #tpu.memory_space<vmem>>, vector<2x16x1x32xf32>,
    %44 = vector.extract_strided_slice %29 {offsets = [0, 128], sizes = [32, 32], strides = [1, 1]} : vector<32x512xf32> to vector<32x32xf32>
    %45 = vector.extract_strided_slice %29 {offsets = [0, 160], sizes = [32, 32], strides = [1, 1]} : vector<32x512xf32> to vector<32x32xf32>
    %46 = arith.maximumf %44, %45 : vector<32x32xf32>
    %47 = vector.shape_cast %46 : vector<32x32xf32> to vector<2x16x32xf32>
    %c0_35 = arith.constant 0 : index
    %c0_36 = arith.constant 0 : index
    %c2_37 = arith.constant 2 : index
    %c0_38 = arith.constant 0 : index
    %48 = vector.load %arg17[%c0_35, %c0_36, %c2_37, %c0_38] : memref<2x16x8x32xf32, #tpu.memory_space<vmem>>, vector<2x16x1x32xf32>
    %49 = vector.shape_cast %48 : vector<2x16x1x32xf32> to vector<2x16x32xf32>
    %50 = vector.shape_cast %47 : vector<2x16x32xf32> to vector<2x16x1x32xf32>
    tpu.vector_store %arg17[%c0_35, %c0_36, %c2_37, %c0_38], %50 {strides = array<i32>} : memref<2x16x8x32xf32, #tpu.memory_space<vmem>>, vector<2x16x1x32xf32>,
    %51 = vector.extract_strided_slice %29 {offsets = [0, 192], sizes = [32, 32], strides = [1, 1]} : vector<32x512xf32> to vector<32x32xf32>
    %52 = vector.extract_strided_slice %29 {offsets = [0, 224], sizes = [32, 32], strides = [1, 1]} : vector<32x512xf32> to vector<32x32xf32>
    %53 = arith.maximumf %51, %52 : vector<32x32xf32>
    %54 = vector.shape_cast %53 : vector<32x32xf32> to vector<2x16x32xf32>
    %c0_39 = arith.constant 0 : index
    %c0_40 = arith.constant 0 : index
    %c3 = arith.constant 3 : index
    %c0_41 = arith.constant 0 : index
    %55 = vector.load %arg17[%c0_39, %c0_40, %c3, %c0_41] : memref<2x16x8x32xf32, #tpu.memory_space<vmem>>, vector<2x16x1x32xf32>
    %56 = vector.shape_cast %55 : vector<2x16x1x32xf32> to vector<2x16x32xf32>
    %57 = vector.shape_cast %54 : vector<2x16x32xf32> to vector<2x16x1x32xf32>
    tpu.vector_store %arg17[%c0_39, %c0_40, %c3, %c0_41], %57 {strides = array<i32>} : memref<2x16x8x32xf32, #tpu.memory_space<vmem>>, vector<2x16x1x32xf32>,
    %58 = vector.extract_strided_slice %29 {offsets = [0, 256], sizes = [32, 32], strides = [1, 1]} : vector<32x512xf32> to vector<32x32xf32>
    %59 = vector.extract_strided_slice %29 {offsets = [0, 288], sizes = [32, 32], strides = [1, 1]} : vector<32x512xf32> to vector<32x32xf32>
    %60 = arith.maximumf %58, %59 : vector<32x32xf32>
    %61 = vector.shape_cast %60 : vector<32x32xf32> to vector<2x16x32xf32>
    %c0_42 = arith.constant 0 : index
    %c0_43 = arith.constant 0 : index
    %c4 = arith.constant 4 : index
    %c0_44 = arith.constant 0 : index
    %62 = vector.load %arg17[%c0_42, %c0_43, %c4, %c0_44] : memref<2x16x8x32xf32, #tpu.memory_space<vmem>>, vector<2x16x1x32xf32>
    %63 = vector.shape_cast %62 : vector<2x16x1x32xf32> to vector<2x16x32xf32>
    %64 = vector.shape_cast %61 : vector<2x16x32xf32> to vector<2x16x1x32xf32>
    tpu.vector_store %arg17[%c0_42, %c0_43, %c4, %c0_44], %64 {strides = array<i32>} : memref<2x16x8x32xf32, #tpu.memory_space<vmem>>, vector<2x16x1x32xf32>,
    %65 = vector.extract_strided_slice %29 {offsets = [0, 320], sizes = [32, 32], strides = [1, 1]} : vector<32x512xf32> to vector<32x32xf32>
    %66 = vector.extract_strided_slice %29 {offsets = [0, 352], sizes = [32, 32], strides = [1, 1]} : vector<32x512xf32> to vector<32x32xf32>
    %67 = arith.maximumf %65, %66 : vector<32x32xf32>
    %68 = vector.shape_cast %67 : vector<32x32xf32> to vector<2x16x32xf32>
    %c0_45 = arith.constant 0 : index
    %c0_46 = arith.constant 0 : index
    %c5 = arith.constant 5 : index
    %c0_47 = arith.constant 0 : index
    %69 = vector.load %arg17[%c0_45, %c0_46, %c5, %c0_47] : memref<2x16x8x32xf32, #tpu.memory_space<vmem>>, vector<2x16x1x32xf32>
    %70 = vector.shape_cast %69 : vector<2x16x1x32xf32> to vector<2x16x32xf32>
    %71 = vector.shape_cast %68 : vector<2x16x32xf32> to vector<2x16x1x32xf32>
    tpu.vector_store %arg17[%c0_45, %c0_46, %c5, %c0_47], %71 {strides = array<i32>} : memref<2x16x8x32xf32, #tpu.memory_space<vmem>>, vector<2x16x1x32xf32>,
    %72 = vector.extract_strided_slice %29 {offsets = [0, 384], sizes = [32, 32], strides = [1, 1]} : vector<32x512xf32> to vector<32x32xf32>
    %73 = vector.extract_strided_slice %29 {offsets = [0, 416], sizes = [32, 32], strides = [1, 1]} : vector<32x512xf32> to vector<32x32xf32>
    %74 = arith.maximumf %72, %73 : vector<32x32xf32>
    %75 = vector.shape_cast %74 : vector<32x32xf32> to vector<2x16x32xf32>
    %c0_48 = arith.constant 0 : index
    %c0_49 = arith.constant 0 : index
    %c6 = arith.constant 6 : index
    %c0_50 = arith.constant 0 : index
    %76 = vector.load %arg17[%c0_48, %c0_49, %c6, %c0_50] : memref<2x16x8x32xf32, #tpu.memory_space<vmem>>, vector<2x16x1x32xf32>
    %77 = vector.shape_cast %76 : vector<2x16x1x32xf32> to vector<2x16x32xf32>
    %78 = vector.shape_cast %75 : vector<2x16x32xf32> to vector<2x16x1x32xf32>
    tpu.vector_store %arg17[%c0_48, %c0_49, %c6, %c0_50], %78 {strides = array<i32>} : memref<2x16x8x32xf32, #tpu.memory_space<vmem>>, vector<2x16x1x32xf32>,
    %79 = vector.extract_strided_slice %29 {offsets = [0, 448], sizes = [32, 32], strides = [1, 1]} : vector<32x512xf32> to vector<32x32xf32>
    %80 = vector.extract_strided_slice %29 {offsets = [0, 480], sizes = [32, 32], strides = [1, 1]} : vector<32x512xf32> to vector<32x32xf32>
    %81 = arith.maximumf %79, %80 : vector<32x32xf32>
    %82 = vector.shape_cast %81 : vector<32x32xf32> to vector<2x16x32xf32>
    %c0_51 = arith.constant 0 : index
    %c0_52 = arith.constant 0 : index
    %c7 = arith.constant 7 : index
    %c0_53 = arith.constant 0 : index
    %83 = vector.load %arg17[%c0_51, %c0_52, %c7, %c0_53] : memref<2x16x8x32xf32, #tpu.memory_space<vmem>>, vector<2x16x1x32xf32>
    %84 = vector.shape_cast %83 : vector<2x16x1x32xf32> to vector<2x16x32xf32>
    %85 = vector.shape_cast %82 : vector<2x16x32xf32> to vector<2x16x1x32xf32>
    tpu.vector_store %arg17[%c0_51, %c0_52, %c7, %c0_53], %85 {strides = array<i32>} : memref<2x16x8x32xf32, #tpu.memory_space<vmem>>, vector<2x16x1x32xf32>,
    %c0_54 = arith.constant 0 : index
    %c0_55 = arith.constant 0 : index
    %c0_56 = arith.constant 0 : index
    %c0_57 = arith.constant 0 : index
    %86 = vector.load %arg17[%c0_54, %c0_55, %c0_56, %c0_57] : memref<2x16x8x32xf32, #tpu.memory_space<vmem>>, vector<2x16x8x32xf32>
    %87 = vector.shape_cast %86 : vector<2x16x8x32xf32> to vector<2x8x2x8x32xf32>
    %88 = vector.extract_strided_slice %87 {offsets = [0, 0, 0, 0, 0], sizes = [2, 8, 1, 8, 32], strides = [1, 1, 1, 1, 1]} : vector<2x8x2x8x32xf32> to vector<2x8x1x8x32xf32>
    %89 = vector.shape_cast %88 : vector<2x8x1x8x32xf32> to vector<2x8x8x32xf32>
    %90 = vector.extract_strided_slice %87 {offsets = [0, 0, 1, 0, 0], sizes = [2, 8, 1, 8, 32], strides = [1, 1, 1, 1, 1]} : vector<2x8x2x8x32xf32> to vector<2x8x1x8x32xf32>
    %91 = vector.shape_cast %90 : vector<2x8x1x8x32xf32> to vector<2x8x8x32xf32>
    %92 = arith.maximumf %89, %91 : vector<2x8x8x32xf32>
    %93 = vector.shape_cast %92 : vector<2x8x8x32xf32> to vector<128x32xf32>
    %c0_58 = arith.constant 0 : index
    %c0_59 = arith.constant 0 : index
    %94 = vector.load %arg3[%c0_58, %c0_59] : memref<1x32xf32, #tpu.memory_space<vmem>>, vector<1x32xf32>
    %c0_60 = arith.constant 0 : index
    %c0_61 = arith.constant 0 : index
    %95 = vector.load %arg4[%c0_60, %c0_61] : memref<1x32xf32, #tpu.memory_space<vmem>>, vector<1x32xf32>
    %cst_62 = arith.constant dense<0.000000e+00> : vector<32xf32>
    %96 = vector.multi_reduction <add>, %93, %cst_62 [0] : vector<128x32xf32> to vector<32xf32>
    %97 = vector.shape_cast %96 : vector<32xf32> to vector<1x32xf32>
    %cst_63 = arith.constant 7.812500e-03 : f32
    %98 = vector.broadcast %cst_63 : f32 to vector<1x32xf32>
    %99 = arith.mulf %97, %98 : vector<1x32xf32>
    %100 = vector.broadcast %99 : vector<1x32xf32> to vector<128x32xf32>
    %101 = arith.subf %93, %100 : vector<128x32xf32>
    %102 = arith.mulf %101, %101 : vector<128x32xf32>
    %cst_64 = arith.constant dense<0.000000e+00> : vector<32xf32>
    %103 = vector.multi_reduction <add>, %102, %cst_64 [0] : vector<128x32xf32> to vector<32xf32>
    %104 = vector.shape_cast %103 : vector<32xf32> to vector<1x32xf32>
    %cst_65 = arith.constant 7.812500e-03 : f32
    %105 = vector.broadcast %cst_65 : f32 to vector<1x32xf32>
    %106 = arith.mulf %104, %105 : vector<1x32xf32>
    %cst_66 = arith.constant 9.99999974E-6 : f32
    %107 = vector.broadcast %cst_66 : f32 to vector<1x32xf32>
    %108 = arith.addf %106, %107 : vector<1x32xf32>
    %109 = math.rsqrt %108 : vector<1x32xf32>
    %110 = arith.mulf %94, %109 : vector<1x32xf32>
    %111 = vector.broadcast %110 : vector<1x32xf32> to vector<128x32xf32>
    %112 = arith.mulf %101, %111 : vector<128x32xf32>
    %113 = vector.broadcast %95 : vector<1x32xf32> to vector<128x32xf32>
    %114 = arith.addf %112, %113 : vector<128x32xf32>
    %115 = vector.shape_cast %114 : vector<128x32xf32> to vector<2x8x8x32xf32>
    %c0_67 = arith.constant 0 : index
    %c0_68 = arith.constant 0 : index
    %116 = vector.load %arg6[%c0_67, %c0_68] : memref<1x64xf32, #tpu.memory_space<vmem>>, vector<1x64xf32>
    %cst_69 = arith.constant 0.000000e+00 : f32
    %117 = vector.broadcast %cst_69 : f32 to vector<2x10x8x32xf32>
    %c0_70 = arith.constant 0 : index
    %c0_71 = arith.constant 0 : index
    %c0_72 = arith.constant 0 : index
    %c0_73 = arith.constant 0 : index
    %118 = vector.load %arg18[%c0_70, %c0_71, %c0_72, %c0_73] : memref<2x10x24x32xf32, #tpu.memory_space<vmem>>, vector<2x10x8x32xf32>
    tpu.vector_store %arg18[%c0_70, %c0_71, %c0_72, %c0_73], %117 {strides = array<i32>} : memref<2x10x24x32xf32, #tpu.memory_space<vmem>>, vector<2x10x8x32xf32>,
    %cst_74 = arith.constant 0.000000e+00 : f32
    %119 = vector.broadcast %cst_74 : f32 to vector<2x10x8x32xf32>
    %c0_75 = arith.constant 0 : index
    %c0_76 = arith.constant 0 : index
    %c16 = arith.constant 16 : index
    %c0_77 = arith.constant 0 : index
    %120 = vector.load %arg18[%c0_75, %c0_76, %c16, %c0_77] : memref<2x10x24x32xf32, #tpu.memory_space<vmem>>, vector<2x10x8x32xf32>
    tpu.vector_store %arg18[%c0_75, %c0_76, %c16, %c0_77], %119 {strides = array<i32>} : memref<2x10x24x32xf32, #tpu.memory_space<vmem>>, vector<2x10x8x32xf32>,
    %cst_78 = arith.constant 0.000000e+00 : f32
    %121 = vector.broadcast %cst_78 : f32 to vector<2x1x8x32xf32>
    %c0_79 = arith.constant 0 : index
    %c0_80 = arith.constant 0 : index
    %c8_81 = arith.constant 8 : index
    %c0_82 = arith.constant 0 : index
    %122 = vector.load %arg18[%c0_79, %c0_80, %c8_81, %c0_82] : memref<2x10x24x32xf32, #tpu.memory_space<vmem>>, vector<2x1x8x32xf32>
    tpu.vector_store %arg18[%c0_79, %c0_80, %c8_81, %c0_82], %121 {strides = array<i32>} : memref<2x10x24x32xf32, #tpu.memory_space<vmem>>, vector<2x1x8x32xf32>,
    %cst_83 = arith.constant 0.000000e+00 : f32
    %123 = vector.broadcast %cst_83 : f32 to vector<2x1x8x32xf32>
    %c0_84 = arith.constant 0 : index
    %c9 = arith.constant 9 : index
    %c8_85 = arith.constant 8 : index
    %c0_86 = arith.constant 0 : index
    %124 = vector.load %arg18[%c0_84, %c9, %c8_85, %c0_86] : memref<2x10x24x32xf32, #tpu.memory_space<vmem>>, vector<2x1x8x32xf32>
    tpu.vector_store %arg18[%c0_84, %c9, %c8_85, %c0_86], %123 {strides = array<i32>} : memref<2x10x24x32xf32, #tpu.memory_space<vmem>>, vector<2x1x8x32xf32>,
    %c0_87 = arith.constant 0 : index
    %c1_88 = arith.constant 1 : index
    %c8_89 = arith.constant 8 : index
    %c0_90 = arith.constant 0 : index
    %125 = vector.load %arg18[%c0_87, %c1_88, %c8_89, %c0_90] : memref<2x10x24x32xf32, #tpu.memory_space<vmem>>, vector<2x8x8x32xf32>
    tpu.vector_store %arg18[%c0_87, %c1_88, %c8_89, %c0_90], %115 {strides = array<i32>} : memref<2x10x24x32xf32, #tpu.memory_space<vmem>>, vector<2x8x8x32xf32>,
    %c0_91 = arith.constant 0 : index
    %c0_92 = arith.constant 0 : index
    %c0_93 = arith.constant 0 : index
    %c0_94 = arith.constant 0 : index
    %126 = vector.load %arg18[%c0_91, %c0_92, %c0_93, %c0_94] : memref<2x10x24x32xf32, #tpu.memory_space<vmem>>, vector<2x10x24x32xf32>
    %127 = vector.extract_strided_slice %126 {offsets = [0, 0, 7, 0], sizes = [2, 8, 8, 32], strides = [1, 1, 1, 1]} : vector<2x10x24x32xf32> to vector<2x8x8x32xf32>
    %128 = vector.shape_cast %127 : vector<2x8x8x32xf32> to vector<1x128x32xf32>
    %129 = vector.extract_strided_slice %126 {offsets = [0, 0, 8, 0], sizes = [2, 8, 8, 32], strides = [1, 1, 1, 1]} : vector<2x10x24x32xf32> to vector<2x8x8x32xf32>
    %130 = vector.shape_cast %129 : vector<2x8x8x32xf32> to vector<1x128x32xf32>
    %131 = vector.extract_strided_slice %126 {offsets = [0, 0, 9, 0], sizes = [2, 8, 8, 32], strides = [1, 1, 1, 1]} : vector<2x10x24x32xf32> to vector<2x8x8x32xf32>
    %132 = vector.shape_cast %131 : vector<2x8x8x32xf32> to vector<1x128x32xf32>
    %133 = vector.extract_strided_slice %126 {offsets = [0, 1, 7, 0], sizes = [2, 8, 8, 32], strides = [1, 1, 1, 1]} : vector<2x10x24x32xf32> to vector<2x8x8x32xf32>
    %134 = vector.shape_cast %133 : vector<2x8x8x32xf32> to vector<1x128x32xf32>
    %135 = vector.extract_strided_slice %126 {offsets = [0, 1, 8, 0], sizes = [2, 8, 8, 32], strides = [1, 1, 1, 1]} : vector<2x10x24x32xf32> to vector<2x8x8x32xf32>
    %136 = vector.shape_cast %135 : vector<2x8x8x32xf32> to vector<1x128x32xf32>
    %137 = vector.extract_strided_slice %126 {offsets = [0, 1, 9, 0], sizes = [2, 8, 8, 32], strides = [1, 1, 1, 1]} : vector<2x10x24x32xf32> to vector<2x8x8x32xf32>
    %138 = vector.shape_cast %137 : vector<2x8x8x32xf32> to vector<1x128x32xf32>
    %139 = vector.extract_strided_slice %126 {offsets = [0, 2, 7, 0], sizes = [2, 8, 8, 32], strides = [1, 1, 1, 1]} : vector<2x10x24x32xf32> to vector<2x8x8x32xf32>
    %140 = vector.shape_cast %139 : vector<2x8x8x32xf32> to vector<1x128x32xf32>
    %141 = vector.extract_strided_slice %126 {offsets = [0, 2, 8, 0], sizes = [2, 8, 8, 32], strides = [1, 1, 1, 1]} : vector<2x10x24x32xf32> to vector<2x8x8x32xf32>
    %142 = vector.shape_cast %141 : vector<2x8x8x32xf32> to vector<1x128x32xf32>
    %143 = vector.extract_strided_slice %126 {offsets = [0, 2, 9, 0], sizes = [2, 8, 8, 32], strides = [1, 1, 1, 1]} : vector<2x10x24x32xf32> to vector<2x8x8x32xf32>
    %144 = vector.shape_cast %143 : vector<2x8x8x32xf32> to vector<1x128x32xf32>
    %145 = tpu.concatenate %128, %130, %132, %134, %136, %138, %140, %142, %144 in 0 : vector<1x128x32xf32>, vector<1x128x32xf32>, vector<1x128x32xf32>, vector<1x128x32xf32>, vector<1x128x32xf32>, vector<1x128x32xf32>, vector<1x128x32xf32>, vector<1x128x32xf32>, vector<1x128x32xf32> -> vector<9x128x32xf32>
    %c0_95 = arith.constant 0 : index
    %c0_96 = arith.constant 0 : index
    %c0_97 = arith.constant 0 : index
    %146 = vector.load %arg5[%c0_95, %c0_96, %c0_97] : memref<9x32x64xf32, #tpu.memory_space<vmem>>, vector<9x32x64xf32>
    "tpu.trace_start"() <{level = 10 : i32, message = "kmi,kio->kmo"}> : () -> ()
    %cst_98 = arith.constant dense<0.000000e+00> : vector<9x128x64xf32>
    %147 = tpu.matmul %145, %146, %cst_98 {dimension_numbers = #tpu.dot_dimension_numbers<[2], [1], [1], [2], [0, 0, 0, 1, 1, 2], [0], [0]>} : vector<9x128x32xf32>, vector<9x32x64xf32>, vector<9x128x64xf32> -> vector<9x128x64xf32>
    "tpu.trace_stop"() : () -> ()
    %148 = vector.extract_strided_slice %147 {offsets = [0, 0, 0], sizes = [1, 128, 64], strides = [1, 1, 1]} : vector<9x128x64xf32> to vector<1x128x64xf32>
    %149 = vector.shape_cast %148 : vector<1x128x64xf32> to vector<128x64xf32>
    %150 = vector.extract_strided_slice %147 {offsets = [1, 0, 0], sizes = [1, 128, 64], strides = [1, 1, 1]} : vector<9x128x64xf32> to vector<1x128x64xf32>
    %151 = vector.shape_cast %150 : vector<1x128x64xf32> to vector<128x64xf32>
    %152 = vector.extract_strided_slice %147 {offsets = [2, 0, 0], sizes = [1, 128, 64], strides = [1, 1, 1]} : vector<9x128x64xf32> to vector<1x128x64xf32>
    %153 = vector.shape_cast %152 : vector<1x128x64xf32> to vector<128x64xf32>
    %154 = vector.extract_strided_slice %147 {offsets = [3, 0, 0], sizes = [1, 128, 64], strides = [1, 1, 1]} : vector<9x128x64xf32> to vector<1x128x64xf32>
    %155 = vector.shape_cast %154 : vector<1x128x64xf32> to vector<128x64xf32>
    %156 = vector.extract_strided_slice %147 {offsets = [4, 0, 0], sizes = [1, 128, 64], strides = [1, 1, 1]} : vector<9x128x64xf32> to vector<1x128x64xf32>
    %157 = vector.shape_cast %156 : vector<1x128x64xf32> to vector<128x64xf32>
    %158 = vector.extract_strided_slice %147 {offsets = [5, 0, 0], sizes = [1, 128, 64], strides = [1, 1, 1]} : vector<9x128x64xf32> to vector<1x128x64xf32>
    %159 = vector.shape_cast %158 : vector<1x128x64xf32> to vector<128x64xf32>
    %160 = vector.extract_strided_slice %147 {offsets = [6, 0, 0], sizes = [1, 128, 64], strides = [1, 1, 1]} : vector<9x128x64xf32> to vector<1x128x64xf32>
    %161 = vector.shape_cast %160 : vector<1x128x64xf32> to vector<128x64xf32>
    %162 = vector.extract_strided_slice %147 {offsets = [7, 0, 0], sizes = [1, 128, 64], strides = [1, 1, 1]} : vector<9x128x64xf32> to vector<1x128x64xf32>
    %163 = vector.shape_cast %162 : vector<1x128x64xf32> to vector<128x64xf32>
    %164 = vector.extract_strided_slice %147 {offsets = [8, 0, 0], sizes = [1, 128, 64], strides = [1, 1, 1]} : vector<9x128x64xf32> to vector<1x128x64xf32>
    %165 = vector.shape_cast %164 : vector<1x128x64xf32> to vector<128x64xf32>
    %166 = arith.addf %149, %151 : vector<128x64xf32>
    %167 = arith.addf %153, %155 : vector<128x64xf32>
    %168 = arith.addf %166, %167 : vector<128x64xf32>
    %169 = arith.addf %157, %159 : vector<128x64xf32>
    %170 = arith.addf %161, %163 : vector<128x64xf32>
    %171 = arith.addf %169, %170 : vector<128x64xf32>
    %172 = arith.addf %168, %171 : vector<128x64xf32>
    %173 = arith.addf %172, %165 : vector<128x64xf32>
    %174 = vector.broadcast %116 : vector<1x64xf32> to vector<128x64xf32>
    %175 = arith.addf %173, %174 : vector<128x64xf32>
    %cst_99 = arith.constant 0.000000e+00 : f32
    %176 = vector.broadcast %cst_99 : f32 to vector<128x64xf32>
    %177 = arith.maximumf %175, %176 : vector<128x64xf32>
    %c0_100 = arith.constant 0 : index
    %c0_101 = arith.constant 0 : index
    %178 = vector.load %arg7[%c0_100, %c0_101] : memref<1x64xf32, #tpu.memory_space<vmem>>, vector<1x64xf32>
    %c0_102 = arith.constant 0 : index
    %c0_103 = arith.constant 0 : index
    %179 = vector.load %arg8[%c0_102, %c0_103] : memref<1x64xf32, #tpu.memory_space<vmem>>, vector<1x64xf32>
    %180 = vector.shape_cast %177 : vector<128x64xf32> to vector<2x4x2x8x64xf32>
    %181 = vector.extract_strided_slice %180 {offsets = [0, 0, 0, 0, 0], sizes = [2, 4, 1, 8, 64], strides = [1, 1, 1, 1, 1]} : vector<2x4x2x8x64xf32> to vector<2x4x1x8x64xf32>
    %182 = vector.shape_cast %181 : vector<2x4x1x8x64xf32> to vector<2x4x8x64xf32>
    %183 = vector.extract_strided_slice %180 {offsets = [0, 0, 1, 0, 0], sizes = [2, 4, 1, 8, 64], strides = [1, 1, 1, 1, 1]} : vector<2x4x2x8x64xf32> to vector<2x4x1x8x64xf32>
    %184 = vector.shape_cast %183 : vector<2x4x1x8x64xf32> to vector<2x4x8x64xf32>
    %185 = arith.maximumf %182, %184 : vector<2x4x8x64xf32>
    %186 = vector.shape_cast %185 : vector<2x4x8x64xf32> to vector<2x4x4x2x64xf32>
    %187 = vector.extract_strided_slice %186 {offsets = [0, 0, 0, 0, 0], sizes = [2, 4, 4, 1, 64], strides = [1, 1, 1, 1, 1]} : vector<2x4x4x2x64xf32> to vector<2x4x4x1x64xf32>
    %188 = vector.shape_cast %187 : vector<2x4x4x1x64xf32> to vector<2x4x4x64xf32>
    %189 = vector.extract_strided_slice %186 {offsets = [0, 0, 0, 1, 0], sizes = [2, 4, 4, 1, 64], strides = [1, 1, 1, 1, 1]} : vector<2x4x4x2x64xf32> to vector<2x4x4x1x64xf32>
    %190 = vector.shape_cast %189 : vector<2x4x4x1x64xf32> to vector<2x4x4x64xf32>
    %191 = arith.maximumf %188, %190 : vector<2x4x4x64xf32>
    %192 = vector.shape_cast %191 : vector<2x4x4x64xf32> to vector<32x64xf32>
    %cst_104 = arith.constant dense<0.000000e+00> : vector<64xf32>
    %193 = vector.multi_reduction <add>, %192, %cst_104 [0] : vector<32x64xf32> to vector<64xf32>
    %194 = vector.shape_cast %193 : vector<64xf32> to vector<1x64xf32>
    %cst_105 = arith.constant 3.125000e-02 : f32
    %195 = vector.broadcast %cst_105 : f32 to vector<1x64xf32>
    %196 = arith.mulf %194, %195 : vector<1x64xf32>
    %197 = vector.broadcast %196 : vector<1x64xf32> to vector<32x64xf32>
    %198 = arith.subf %192, %197 : vector<32x64xf32>
    %199 = arith.mulf %198, %198 : vector<32x64xf32>
    %cst_106 = arith.constant dense<0.000000e+00> : vector<64xf32>
    %200 = vector.multi_reduction <add>, %199, %cst_106 [0] : vector<32x64xf32> to vector<64xf32>
    %201 = vector.shape_cast %200 : vector<64xf32> to vector<1x64xf32>
    %cst_107 = arith.constant 3.125000e-02 : f32
    %202 = vector.broadcast %cst_107 : f32 to vector<1x64xf32>
    %203 = arith.mulf %201, %202 : vector<1x64xf32>
    %cst_108 = arith.constant 9.99999974E-6 : f32
    %204 = vector.broadcast %cst_108 : f32 to vector<1x64xf32>
    %205 = arith.addf %203, %204 : vector<1x64xf32>
    %206 = math.rsqrt %205 : vector<1x64xf32>
    %207 = arith.mulf %178, %206 : vector<1x64xf32>
    %208 = vector.broadcast %207 : vector<1x64xf32> to vector<32x64xf32>
    %209 = arith.mulf %198, %208 : vector<32x64xf32>
    %210 = vector.broadcast %179 : vector<1x64xf32> to vector<32x64xf32>
    %211 = arith.addf %209, %210 : vector<32x64xf32>
    %212 = vector.shape_cast %211 : vector<32x64xf32> to vector<2x4x4x64xf32>
    %c0_109 = arith.constant 0 : index
    %c0_110 = arith.constant 0 : index
    %213 = vector.load %arg10[%c0_109, %c0_110] : memref<1x128xf32, #tpu.memory_space<vmem>>, vector<1x128xf32>
    %cst_111 = arith.constant 0.000000e+00 : f32
    %214 = vector.broadcast %cst_111 : f32 to vector<2x6x8x64xf32>
    %c0_112 = arith.constant 0 : index
    %c0_113 = arith.constant 0 : index
    %c0_114 = arith.constant 0 : index
    %c0_115 = arith.constant 0 : index
    %215 = vector.load %arg19[%c0_112, %c0_113, %c0_114, %c0_115] : memref<2x6x16x64xf32, #tpu.memory_space<vmem>>, vector<2x6x8x64xf32>
    tpu.vector_store %arg19[%c0_112, %c0_113, %c0_114, %c0_115], %214 {strides = array<i32>} : memref<2x6x16x64xf32, #tpu.memory_space<vmem>>, vector<2x6x8x64xf32>,
    %cst_116 = arith.constant 0.000000e+00 : f32
    %216 = vector.broadcast %cst_116 : f32 to vector<2x6x4x64xf32>
    %c0_117 = arith.constant 0 : index
    %c0_118 = arith.constant 0 : index
    %c12 = arith.constant 12 : index
    %c0_119 = arith.constant 0 : index
    %217 = vector.load %arg19[%c0_117, %c0_118, %c12, %c0_119] : memref<2x6x16x64xf32, #tpu.memory_space<vmem>>, vector<2x6x4x64xf32>
    tpu.vector_store %arg19[%c0_117, %c0_118, %c12, %c0_119], %216 {strides = array<i32>} : memref<2x6x16x64xf32, #tpu.memory_space<vmem>>, vector<2x6x4x64xf32>,
    %cst_120 = arith.constant 0.000000e+00 : f32
    %218 = vector.broadcast %cst_120 : f32 to vector<2x1x4x64xf32>
    %c0_121 = arith.constant 0 : index
    %c0_122 = arith.constant 0 : index
    %c8_123 = arith.constant 8 : index
    %c0_124 = arith.constant 0 : index
    %219 = vector.load %arg19[%c0_121, %c0_122, %c8_123, %c0_124] : memref<2x6x16x64xf32, #tpu.memory_space<vmem>>, vector<2x1x4x64xf32>
    tpu.vector_store %arg19[%c0_121, %c0_122, %c8_123, %c0_124], %218 {strides = array<i32>} : memref<2x6x16x64xf32, #tpu.memory_space<vmem>>, vector<2x1x4x64xf32>,
    %cst_125 = arith.constant 0.000000e+00 : f32
    %220 = vector.broadcast %cst_125 : f32 to vector<2x1x4x64xf32>
    %c0_126 = arith.constant 0 : index
    %c5_127 = arith.constant 5 : index
    %c8_128 = arith.constant 8 : index
    %c0_129 = arith.constant 0 : index
    %221 = vector.load %arg19[%c0_126, %c5_127, %c8_128, %c0_129] : memref<2x6x16x64xf32, #tpu.memory_space<vmem>>, vector<2x1x4x64xf32>
    tpu.vector_store %arg19[%c0_126, %c5_127, %c8_128, %c0_129], %220 {strides = array<i32>} : memref<2x6x16x64xf32, #tpu.memory_space<vmem>>, vector<2x1x4x64xf32>,
    %c0_130 = arith.constant 0 : index
    %c1_131 = arith.constant 1 : index
    %c8_132 = arith.constant 8 : index
    %c0_133 = arith.constant 0 : index
    %222 = vector.load %arg19[%c0_130, %c1_131, %c8_132, %c0_133] : memref<2x6x16x64xf32, #tpu.memory_space<vmem>>, vector<2x4x4x64xf32>
    tpu.vector_store %arg19[%c0_130, %c1_131, %c8_132, %c0_133], %212 {strides = array<i32>} : memref<2x6x16x64xf32, #tpu.memory_space<vmem>>, vector<2x4x4x64xf32>,
    %c0_134 = arith.constant 0 : index
    %c0_135 = arith.constant 0 : index
    %c0_136 = arith.constant 0 : index
    %c0_137 = arith.constant 0 : index
    %223 = vector.load %arg19[%c0_134, %c0_135, %c0_136, %c0_137] : memref<2x6x16x64xf32, #tpu.memory_space<vmem>>, vector<2x6x16x64xf32>
    %224 = vector.extract_strided_slice %223 {offsets = [0, 0, 7, 0], sizes = [2, 4, 4, 64], strides = [1, 1, 1, 1]} : vector<2x6x16x64xf32> to vector<2x4x4x64xf32>
    %225 = vector.shape_cast %224 : vector<2x4x4x64xf32> to vector<1x32x64xf32>
    %226 = vector.extract_strided_slice %223 {offsets = [0, 0, 8, 0], sizes = [2, 4, 4, 64], strides = [1, 1, 1, 1]} : vector<2x6x16x64xf32> to vector<2x4x4x64xf32>
    %227 = vector.shape_cast %226 : vector<2x4x4x64xf32> to vector<1x32x64xf32>
    %228 = vector.extract_strided_slice %223 {offsets = [0, 0, 9, 0], sizes = [2, 4, 4, 64], strides = [1, 1, 1, 1]} : vector<2x6x16x64xf32> to vector<2x4x4x64xf32>
    %229 = vector.shape_cast %228 : vector<2x4x4x64xf32> to vector<1x32x64xf32>
    %230 = vector.extract_strided_slice %223 {offsets = [0, 1, 7, 0], sizes = [2, 4, 4, 64], strides = [1, 1, 1, 1]} : vector<2x6x16x64xf32> to vector<2x4x4x64xf32>
    %231 = vector.shape_cast %230 : vector<2x4x4x64xf32> to vector<1x32x64xf32>
    %232 = vector.extract_strided_slice %223 {offsets = [0, 1, 8, 0], sizes = [2, 4, 4, 64], strides = [1, 1, 1, 1]} : vector<2x6x16x64xf32> to vector<2x4x4x64xf32>
    %233 = vector.shape_cast %232 : vector<2x4x4x64xf32> to vector<1x32x64xf32>
    %234 = vector.extract_strided_slice %223 {offsets = [0, 1, 9, 0], sizes = [2, 4, 4, 64], strides = [1, 1, 1, 1]} : vector<2x6x16x64xf32> to vector<2x4x4x64xf32>
    %235 = vector.shape_cast %234 : vector<2x4x4x64xf32> to vector<1x32x64xf32>
    %236 = vector.extract_strided_slice %223 {offsets = [0, 2, 7, 0], sizes = [2, 4, 4, 64], strides = [1, 1, 1, 1]} : vector<2x6x16x64xf32> to vector<2x4x4x64xf32>
    %237 = vector.shape_cast %236 : vector<2x4x4x64xf32> to vector<1x32x64xf32>
    %238 = vector.extract_strided_slice %223 {offsets = [0, 2, 8, 0], sizes = [2, 4, 4, 64], strides = [1, 1, 1, 1]} : vector<2x6x16x64xf32> to vector<2x4x4x64xf32>
    %239 = vector.shape_cast %238 : vector<2x4x4x64xf32> to vector<1x32x64xf32>
    %240 = vector.extract_strided_slice %223 {offsets = [0, 2, 9, 0], sizes = [2, 4, 4, 64], strides = [1, 1, 1, 1]} : vector<2x6x16x64xf32> to vector<2x4x4x64xf32>
    %241 = vector.shape_cast %240 : vector<2x4x4x64xf32> to vector<1x32x64xf32>
    %242 = tpu.concatenate %225, %227, %229, %231, %233, %235, %237, %239, %241 in 0 : vector<1x32x64xf32>, vector<1x32x64xf32>, vector<1x32x64xf32>, vector<1x32x64xf32>, vector<1x32x64xf32>, vector<1x32x64xf32>, vector<1x32x64xf32>, vector<1x32x64xf32>, vector<1x32x64xf32> -> vector<9x32x64xf32>
    %c0_138 = arith.constant 0 : index
    %c0_139 = arith.constant 0 : index
    %c0_140 = arith.constant 0 : index
    %243 = vector.load %arg9[%c0_138, %c0_139, %c0_140] : memref<9x64x128xf32, #tpu.memory_space<vmem>>, vector<9x64x128xf32>
    "tpu.trace_start"() <{level = 10 : i32, message = "kmi,kio->kmo"}> : () -> ()
    %cst_141 = arith.constant dense<0.000000e+00> : vector<9x32x128xf32>
    %244 = tpu.matmul %242, %243, %cst_141 {dimension_numbers = #tpu.dot_dimension_numbers<[2], [1], [1], [2], [0, 0, 0, 1, 1, 2], [0], [0]>} : vector<9x32x64xf32>, vector<9x64x128xf32>, vector<9x32x128xf32> -> vector<9x32x128xf32>
    "tpu.trace_stop"() : () -> ()
    %245 = vector.extract_strided_slice %244 {offsets = [0, 0, 0], sizes = [1, 32, 128], strides = [1, 1, 1]} : vector<9x32x128xf32> to vector<1x32x128xf32>
    %246 = vector.shape_cast %245 : vector<1x32x128xf32> to vector<32x128xf32>
    %247 = vector.extract_strided_slice %244 {offsets = [1, 0, 0], sizes = [1, 32, 128], strides = [1, 1, 1]} : vector<9x32x128xf32> to vector<1x32x128xf32>
    %248 = vector.shape_cast %247 : vector<1x32x128xf32> to vector<32x128xf32>
    %249 = vector.extract_strided_slice %244 {offsets = [2, 0, 0], sizes = [1, 32, 128], strides = [1, 1, 1]} : vector<9x32x128xf32> to vector<1x32x128xf32>
    %250 = vector.shape_cast %249 : vector<1x32x128xf32> to vector<32x128xf32>
    %251 = vector.extract_strided_slice %244 {offsets = [3, 0, 0], sizes = [1, 32, 128], strides = [1, 1, 1]} : vector<9x32x128xf32> to vector<1x32x128xf32>
    %252 = vector.shape_cast %251 : vector<1x32x128xf32> to vector<32x128xf32>
    %253 = vector.extract_strided_slice %244 {offsets = [4, 0, 0], sizes = [1, 32, 128], strides = [1, 1, 1]} : vector<9x32x128xf32> to vector<1x32x128xf32>
    %254 = vector.shape_cast %253 : vector<1x32x128xf32> to vector<32x128xf32>
    %255 = vector.extract_strided_slice %244 {offsets = [5, 0, 0], sizes = [1, 32, 128], strides = [1, 1, 1]} : vector<9x32x128xf32> to vector<1x32x128xf32>
    %256 = vector.shape_cast %255 : vector<1x32x128xf32> to vector<32x128xf32>
    %257 = vector.extract_strided_slice %244 {offsets = [6, 0, 0], sizes = [1, 32, 128], strides = [1, 1, 1]} : vector<9x32x128xf32> to vector<1x32x128xf32>
    %258 = vector.shape_cast %257 : vector<1x32x128xf32> to vector<32x128xf32>
    %259 = vector.extract_strided_slice %244 {offsets = [7, 0, 0], sizes = [1, 32, 128], strides = [1, 1, 1]} : vector<9x32x128xf32> to vector<1x32x128xf32>
    %260 = vector.shape_cast %259 : vector<1x32x128xf32> to vector<32x128xf32>
    %261 = vector.extract_strided_slice %244 {offsets = [8, 0, 0], sizes = [1, 32, 128], strides = [1, 1, 1]} : vector<9x32x128xf32> to vector<1x32x128xf32>
    %262 = vector.shape_cast %261 : vector<1x32x128xf32> to vector<32x128xf32>
    %263 = arith.addf %246, %248 : vector<32x128xf32>
    %264 = arith.addf %250, %252 : vector<32x128xf32>
    %265 = arith.addf %263, %264 : vector<32x128xf32>
    %266 = arith.addf %254, %256 : vector<32x128xf32>
    %267 = arith.addf %258, %260 : vector<32x128xf32>
    %268 = arith.addf %266, %267 : vector<32x128xf32>
    %269 = arith.addf %265, %268 : vector<32x128xf32>
    %270 = arith.addf %269, %262 : vector<32x128xf32>
    %271 = vector.broadcast %213 : vector<1x128xf32> to vector<32x128xf32>
    %272 = arith.addf %270, %271 : vector<32x128xf32>
    %cst_142 = arith.constant 0.000000e+00 : f32
    %273 = vector.broadcast %cst_142 : f32 to vector<32x128xf32>
    %274 = arith.maximumf %272, %273 : vector<32x128xf32>
    %c0_143 = arith.constant 0 : index
    %c0_144 = arith.constant 0 : index
    %275 = vector.load %arg11[%c0_143, %c0_144] : memref<1x128xf32, #tpu.memory_space<vmem>>, vector<1x128xf32>
    %c0_145 = arith.constant 0 : index
    %c0_146 = arith.constant 0 : index
    %276 = vector.load %arg12[%c0_145, %c0_146] : memref<1x128xf32, #tpu.memory_space<vmem>>, vector<1x128xf32>
    %277 = vector.shape_cast %274 : vector<32x128xf32> to vector<2x2x2x4x128xf32>
    %278 = vector.extract_strided_slice %277 {offsets = [0, 0, 0, 0, 0], sizes = [2, 2, 1, 4, 128], strides = [1, 1, 1, 1, 1]} : vector<2x2x2x4x128xf32> to vector<2x2x1x4x128xf32>
    %279 = vector.shape_cast %278 : vector<2x2x1x4x128xf32> to vector<2x2x4x128xf32>
    %280 = vector.extract_strided_slice %277 {offsets = [0, 0, 1, 0, 0], sizes = [2, 2, 1, 4, 128], strides = [1, 1, 1, 1, 1]} : vector<2x2x2x4x128xf32> to vector<2x2x1x4x128xf32>
    %281 = vector.shape_cast %280 : vector<2x2x1x4x128xf32> to vector<2x2x4x128xf32>
    %282 = arith.maximumf %279, %281 : vector<2x2x4x128xf32>
    %283 = vector.shape_cast %282 : vector<2x2x4x128xf32> to vector<2x2x2x2x128xf32>
    %284 = vector.extract_strided_slice %283 {offsets = [0, 0, 0, 0, 0], sizes = [2, 2, 2, 1, 128], strides = [1, 1, 1, 1, 1]} : vector<2x2x2x2x128xf32> to vector<2x2x2x1x128xf32>
    %285 = vector.shape_cast %284 : vector<2x2x2x1x128xf32> to vector<2x2x2x128xf32>
    %286 = vector.extract_strided_slice %283 {offsets = [0, 0, 0, 1, 0], sizes = [2, 2, 2, 1, 128], strides = [1, 1, 1, 1, 1]} : vector<2x2x2x2x128xf32> to vector<2x2x2x1x128xf32>
    %287 = vector.shape_cast %286 : vector<2x2x2x1x128xf32> to vector<2x2x2x128xf32>
    %288 = arith.maximumf %285, %287 : vector<2x2x2x128xf32>
    %289 = vector.shape_cast %288 : vector<2x2x2x128xf32> to vector<8x128xf32>
    %cst_147 = arith.constant dense<0.000000e+00> : vector<128xf32>
    %290 = vector.multi_reduction <add>, %289, %cst_147 [0] : vector<8x128xf32> to vector<128xf32>
    %291 = vector.shape_cast %290 : vector<128xf32> to vector<1x128xf32>
    %cst_148 = arith.constant 1.250000e-01 : f32
    %292 = vector.broadcast %cst_148 : f32 to vector<1x128xf32>
    %293 = arith.mulf %291, %292 : vector<1x128xf32>
    %294 = vector.broadcast %293 : vector<1x128xf32> to vector<8x128xf32>
    %295 = arith.subf %289, %294 : vector<8x128xf32>
    %296 = arith.mulf %295, %295 : vector<8x128xf32>
    %cst_149 = arith.constant dense<0.000000e+00> : vector<128xf32>
    %297 = vector.multi_reduction <add>, %296, %cst_149 [0] : vector<8x128xf32> to vector<128xf32>
    %298 = vector.shape_cast %297 : vector<128xf32> to vector<1x128xf32>
    %cst_150 = arith.constant 1.250000e-01 : f32
    %299 = vector.broadcast %cst_150 : f32 to vector<1x128xf32>
    %300 = arith.mulf %298, %299 : vector<1x128xf32>
    %cst_151 = arith.constant 9.99999974E-6 : f32
    %301 = vector.broadcast %cst_151 : f32 to vector<1x128xf32>
    %302 = arith.addf %300, %301 : vector<1x128xf32>
    %303 = math.rsqrt %302 : vector<1x128xf32>
    %304 = arith.mulf %275, %303 : vector<1x128xf32>
    %305 = vector.broadcast %304 : vector<1x128xf32> to vector<8x128xf32>
    %306 = arith.mulf %295, %305 : vector<8x128xf32>
    %307 = vector.broadcast %276 : vector<1x128xf32> to vector<8x128xf32>
    %308 = arith.addf %306, %307 : vector<8x128xf32>
    %309 = vector.shape_cast %308 : vector<8x128xf32> to vector<2x2x2x128xf32>
    %310 = vector.shape_cast %309 : vector<2x2x2x128xf32> to vector<2x4x128xf32>
    %cst_152 = arith.constant dense<0.000000e+00> : vector<2x128xf32>
    %311 = vector.multi_reduction <add>, %310, %cst_152 [1] : vector<2x4x128xf32> to vector<2x128xf32>
    %cst_153 = arith.constant 4.000000e+00 : f32
    %312 = vector.broadcast %cst_153 : f32 to vector<2x128xf32>
    %313 = arith.divf %311, %312 : vector<2x128xf32>
    %c0_154 = arith.constant 0 : index
    %c0_155 = arith.constant 0 : index
    %314 = vector.load %arg13[%c0_154, %c0_155] : memref<128x10xf32, #tpu.memory_space<vmem>>, vector<128x10xf32>
    %cst_156 = arith.constant dense<0.000000e+00> : vector<2x10xf32>
    %315 = tpu.matmul %313, %314, %cst_156 {dimension_numbers = #tpu.dot_dimension_numbers<[1], [0], [0], [1], [0, 0, 1, 1], [], []>} : vector<2x128xf32>, vector<128x10xf32>, vector<2x10xf32> -> vector<2x10xf32>
    %c0_157 = arith.constant 0 : index
    %c0_158 = arith.constant 0 : index
    %316 = vector.load %arg14[%c0_157, %c0_158] : memref<1x10xf32, #tpu.memory_space<vmem>>, vector<1x10xf32>
    %317 = vector.broadcast %316 : vector<1x10xf32> to vector<2x10xf32>
    %318 = arith.addf %315, %317 : vector<2x10xf32>
    %c0_159 = arith.constant 0 : index
    %c0_160 = arith.constant 0 : index
    %319 = vector.load %arg15[%c0_159, %c0_160] : memref<2x10xf32, #tpu.memory_space<vmem>>, vector<2x10xf32>
    tpu.vector_store %arg15[%c0_159, %c0_160], %318 {strides = array<i32>} : memref<2x10xf32, #tpu.memory_space<vmem>>, vector<2x10xf32>,
    return
  }
}

</mosaic_0001>

<bundles_post_ra>
// kernel: discriminator_forward.1
= control target key start
LH: loop header
LB: loop body
LE: loop exit
PB: predicated region body
PF: predicated region fallthrough
CT: control target
= control target key end

     0   :  { %20 = vsyncpa [#allocation7], 0  ;;  %s13274_s0 = inlined_call_operand.vmem [shape: f32[2,1,16,16], index: 0, kind: input, shape index: {}]   ;;  %s13275_s1 = inlined_call_operand.hbm [shape: f32[3,16,512], index: 1, kind: input, shape index: {}]   ;;  %s13276_s2 = inlined_call_operand.vmem [shape: f32[1,512], index: 2, kind: input, shape index: {}]   ;;  %s13277_s3 = inlined_call_operand.vmem [shape: f32[1,32], index: 3, kind: input, shape index: {}]   ;;  %s13278_s4 = inlined_call_operand.vmem [shape: f32[1,32], index: 4, kind: input, shape index: {}]   ;;  %s13279_s5 = inlined_call_operand.hbm [shape: f32[9,32,64], index: 5, kind: input, shape index: {}]   ;;  %s13280_s6 = inlined_call_operand.vmem [shape: f32[1,64], index: 6, kind: input, shape index: {}]   ;;  %s13281_s7 = inlined_call_operand.vmem [shape: f32[1,64], index: 7, kind: input, shape index: {}]   ;;  %s13282_s8 = inlined_call_operand.vmem [shape: f32[1,64], index: 8, kind: input, shape index: {}]   ;;  %s13283_s9 = inlined_call_operand.hbm [shape: f32[9,64,128], index: 9, kind: input, shape index: {}]   ;;  %s13284_s10 = inlined_call_operand.vmem [shape: f32[1,128], index: 10, kind: input, shape index: {}]   ;;  %s13285_s11 = inlined_call_operand.vmem [shape: f32[1,128], index: 11, kind: input, shape index: {}]   ;;  %s13286_s12 = inlined_call_operand.vmem [shape: f32[1,128], index: 12, kind: input, shape index: {}]   ;;  %s13287_s13 = inlined_call_operand.vmem [shape: f32[128,10], index: 13, kind: input, shape index: {}]   ;;  %s13288_s14 = inlined_call_operand.vmem [shape: f32[1,10], index: 14, kind: input, shape index: {}]   ;;  %s13289_s15 = inlined_call_operand.hbm [shape: f32[2,10], index: 15, kind: output, shape index: {}]  }
   0x1   :  { %21 = vsyncpa [#allocation10], 0 }
   0x2   :  { %22 = vsyncpa [#allocation8], 0  ;;  %s9658_s18 = smov [#allocation9]   ;;  %s9564_s22 = scalar_lea.hbm %s13279_s5, 4608 }
   0x3   :  { %s48_s19 = sshll.u32 %s9658_s18, 4  ;;  %p9565_p0 = scmp.ne.s32.totalorder %s13279_s5, %s9564_s22  ;;  %s49_s19 = int_to_ptr.vmem [resolvable:$true] %s48_s19 }
   0x4   :  { %p9568_p1 = scmp.lt.u32.totalorder %s9564_s22, %s13279_s5 }
   0x6   :  { %p9570_p2 = pnand %p9568_p1, %p9565_p0 }
   0x8   :  { %9573 = shalt.err (!%p9570_p2)
}
   0x9   :  { %s9574_s27 = scalar_lea.vmem %s49_s19, 4608  ;;  %p9579_p4 = scmp.lt.s32.totalorder %s49_s19, %s49_s19 }
   0xa   :  { %p9575_p3 = scmp.ne.s32.totalorder %s49_s19, %s9574_s27  ;;  %p9580_p5 = scmp.lt.s32.totalorder %s9574_s27, %s9574_s27 }
   0xc   :  { %p9581_p6 = por %p9580_p5, %p9579_p4 }
   0xe   :  { %p9582_p7 = pnand %p9581_p6, %p9575_p3 }
  0x10   :  { %9585 = shalt.err (!%p9582_p7)
}
  0x11   :  { %s13290_s28 = smov 128   ;;  %s9660_s29 = smov 8  }
  0x12   :  { %54 = dma.hbm_to_vmem [thread:$0]  %s13279_s5, 4608, %s49_s19, [#allocation10], %s13290_s28, %s13290_s28, %s9660_s29  }
  0x13   :  { %s9661_s17 = smov [#allocation6]   ;;  %s9586_s22 = scalar_lea.hbm %s13275_s1, 3072 }
  0x14   :  { %s30_s18 = sshll.u32 %s9661_s17, 4  ;;  %p9587_p8 = scmp.ne.s32.totalorder %s13275_s1, %s9586_s22  ;;  %s31_s18 = int_to_ptr.vmem [resolvable:$true] %s30_s18 }
  0x15   :  { %p9590_p9 = scmp.lt.u32.totalorder %s9586_s22, %s13275_s1 }
  0x17   :  { %p9592_p10 = pnand %p9590_p9, %p9587_p8 }
  0x19   :  { %9595 = shalt.err (!%p9592_p10)
}
  0x1a   :  { %s9596_s27 = scalar_lea.vmem %s31_s18, 3072  ;;  %p9601_p12 = scmp.lt.s32.totalorder %s31_s18, %s31_s18 }
  0x1b   :  { %p9597_p11 = scmp.ne.s32.totalorder %s31_s18, %s9596_s27  ;;  %p9602_p13 = scmp.lt.s32.totalorder %s9596_s27, %s9596_s27 }
  0x1d   :  { %p9603_p0 = por %p9602_p13, %p9601_p12 }
  0x1f   :  { %p9604_p1 = pnand %p9603_p0, %p9597_p11 }
  0x21   :  { %9607 = shalt.err (!%p9604_p1)
}
  0x22   :  { %s9662_s5 = smov 512   ;;  %s9663_s19 = smov 32  }
  0x23   :  { %36 = dma.hbm_to_vmem [thread:$0]  %s13275_s1, 3072, %s31_s18, [#allocation7], %s9662_s5, %s9662_s5, %s9663_s19  }
  0x24   :  { %s9664_s17 = smov [#allocation11]   ;;  %s9608_s23 = scalar_lea.hbm %s13283_s9, 9216 }
  0x25   :  { %s66_s20 = sshll.u32 %s9664_s17, 4  ;;  %p9609_p2 = scmp.ne.s32.totalorder %s13283_s9, %s9608_s23  ;;  %s67_s20 = int_to_ptr.vmem [resolvable:$true] %s66_s20 }
  0x26   :  { %p9612_p3 = scmp.lt.u32.totalorder %s9608_s23, %s13283_s9 }
  0x28   :  { %p9614_p4 = pnand %p9612_p3, %p9609_p2 }
  0x2a   :  { %9617 = shalt.err (!%p9614_p4)
}
  0x2b   :  { %s9618_s28 = scalar_lea.vmem %s67_s20, 9216  ;;  %p9623_p6 = scmp.lt.s32.totalorder %s67_s20, %s67_s20 }
  0x2c   :  { %p9619_p5 = scmp.ne.s32.totalorder %s67_s20, %s9618_s28  ;;  %p9624_p7 = scmp.lt.s32.totalorder %s9618_s28, %s9618_s28 }
  0x2e   :  { %p9625_p8 = por %p9624_p7, %p9623_p6 }
  0x30   :  { %p9626_p9 = pnand %p9625_p8, %p9619_p5 }
  0x32   :  { %9629 = shalt.err (!%p9626_p9)
}
  0x33   :  { %s13360_s1 = smov 128  }
  0x34   :  { %72 = dma.hbm_to_vmem [thread:$0]  %s13283_s9, 9216, %s67_s20, [#allocation10], %s13360_s1, %s13360_s1, %s9660_s29  }
  0x35   :  { %9652 = dma.done.wait [#allocation7], 3072  }
  0x36   :  { %9653 = vsyncadd [#allocation7], 4294964224 }
  0x37   :  { %9654 = dma.done.wait [#allocation10], 13824  }
  0x38   :  { %9655 = vsyncadd [#allocation10], 4294953472  ;;  %vm96_vm0 = vcmask 130048   ;;  %v13291_v0 = vmov 0.0   ;;  %v140_v1 = vld [vmem:[#allocation6 + $0x48] sm:$0xff]  ;;  %v139_v3 = vld [vmem:[#allocation6 + $0x40] sm:$0xff] }
  0x39   :  { %219 = vmatprep.mubr.f32.mxu0 %v13291_v0  ;;  %308 = vmatprep.mubr.f32.mxu1 %v13291_v0  ;;  %97 = vst.msk [vmem:[#allocation2] sm:$0xff] %vm96_vm0, %v13291_v0  ;;  %98 = vst.msk [vmem:[#allocation2 + $0x20] sm:$0xff] %vm96_vm0, %v13291_v0  ;;  %v144_v2 = vld [vmem:[#allocation6 + $0x68] sm:$0xff]  ;;  %v143_v5 = vld [vmem:[#allocation6 + $0x60] sm:$0xff]  ;;  %vm335_vm1 = vcmask 1046528   ;;  %vm119_vm2 = vcmask 1040384  }
  0x3a   :  { %99 = vst.msk [vmem:[#allocation2 + $0x18] sm:$0xff] %vm96_vm0, %v13291_v0  ;;  %100 = vst.msk [vmem:[#allocation2 + $0x38] sm:$0xff] %vm96_vm0, %v13291_v0  ;;  %v9061_v4 = vpack.c.bf16 %v144_v2, %v140_v1  ;;  %v142_v6 = vld [vmem:[#allocation6 + $0x58] sm:$0xff]  ;;  %v9063_v8 = vpack.c.bf16 %v143_v5, %v139_v3  ;;  %v141_v10 = vld [vmem:[#allocation6 + $0x50] sm:$0xff]  ;;  %vm1049_vm3 = vcmask 253952   ;;  %s9668_s22 = smov 64  }
  0x3b   :  { %v146_v7 = vld [vmem:[#allocation6 + $0x78] sm:$0xff]  ;;  %v145_v11 = vld [vmem:[#allocation6 + $0x70] sm:$0xff]  ;;  %v348_v12 = vld [vmem:[#allocation6 + $0x88] sm:$0xff]  ;;  %vm3008_vm4 = vcmask 261120   ;;  %vm5607_vm5 = vcmask 523264   ;;  %vm5568_vm6 = vcmask 1041409  }
  0x3c   :  { %v9065_v9 = vpack.c.bf16 %v146_v7, %v142_v6  ;;  %9062 = vmatprep.subr.bf16.mxu0 %v9061_v4  ;;  %v9067_v13 = vpack.c.bf16 %v145_v11, %v141_v10  ;;  %v352_v14 = vld [vmem:[#allocation6 + $0xa8] sm:$0xff]  ;;  %v92_v15 = vld [vmem:[%s13274_s0] sm:$0xff]  ;;  %v350_v17 = vld [vmem:[#allocation6 + $0x98] sm:$0xff]  ;;  %v745_v6 = vlaneseq  ;;  %vm5570_vm7 = vcmask 1042434  }
  0x3d   :  { %9064 = vmatpush1.bf16.msra.mxu0 %v9063_v8  ;;  %v9069_v16 = vpack.c.bf16 %v352_v14, %v348_v12  ;;  %101 = vst.msk [vmem:[#allocation2 + $0x8] sm:$0xff] %vm96_vm0, %v92_v15  ;;  %v354_v18 = vld [vmem:[#allocation6 + $0xb8] sm:$0xff]  ;;  %v347_v19 = vld [vmem:[#allocation6 + $0x80] sm:$0xff]  ;;  %v93_v21 = vld [vmem:[%s13274_s0 + $0x8] sm:$0xff]  ;;  %vm5572_vm8 = vcmask 1043459   ;;  %vm5574_vm9 = vcmask 1044484  }
  0x3e   :  { %9066 = vmatprep.subr.bf16.mxu1 %v9065_v9  ;;  %v9073_v20 = vpack.c.bf16 %v354_v18, %v350_v17  ;;  %v351_v22 = vld [vmem:[#allocation6 + $0xa0] sm:$0xff]  ;;  %102 = vst.msk [vmem:[#allocation2 + $0x10] sm:$0xff] %vm96_vm0, %v93_v21  ;;  %v94_v23 = vld [vmem:[%s13274_s0 + $0x10] sm:$0xff]  ;;  %v95_v24 = vld [vmem:[%s13274_s0 + $0x18] sm:$0xff]  ;;  %v9899_v7 = vshrl.u32 %v745_v6, 7  ;;  %vm5576_vm10 = vcmask 1045509  }
  0x3f   :  { %9068 = vmatpush1.bf16.msra.mxu1 %v9067_v13  ;;  %9070 = vmatprep.subr.bf16.mxu0 %v9069_v16  ;;  %v349_v25 = vld [vmem:[#allocation6 + $0x90] sm:$0xff]  ;;  %103 = vst.msk [vmem:[#allocation2 + $0x28] sm:$0xff] %vm96_vm0, %v94_v23  ;;  %104 = vst.msk [vmem:[#allocation2 + $0x30] sm:$0xff] %vm96_vm0, %v95_v24  ;;  %v131_v27 = vld [vmem:[#allocation6 + $0x8] sm:$0xff]  ;;  %v9071_v31 = vpack.c.bf16 %v351_v22, %v347_v19  ;;  %vm5578_vm11 = vcmask 1046534   ;;  %vm5580_vm12 = vcmask 1047559  }
  0x40   :  { %9074 = vmatprep.subr.bf16.mxu1 %v9073_v20  ;;  %v353_v26 = vld [vmem:[#allocation6 + $0xb0] sm:$0xff]  ;;  %v135_v28 = vld [vmem:[#allocation6 + $0x28] sm:$0xff]  ;;  %v133_v29 = vld [vmem:[#allocation6 + $0x18] sm:$0xff]  ;;  %13361 = vst [vmem:[#allocation16_spill] sm:$0xff] %v9899_v7  ;;  %v9902_v8 = vsub.s32 0, %v9899_v7  ;;  %v755_v9 = vsub.s32 2, %v9899_v7 }
  0x41   :  { %v137_v30 = vld [vmem:[#allocation6 + $0x38] sm:$0xff]  ;;  %v9075_v32 = vpack.c.bf16 %v353_v26, %v349_v25  ;;  %v9077_v34 = vpack.c.bf16 %v135_v28, %v131_v27  ;;  %v130_v41 = vld [vmem:[#allocation6] sm:$0xff]  ;;  %v132_v44 = vld [vmem:[#allocation6 + $0x10] sm:$0xff]  ;;  %v751_v11 = vsub.s32 1, %v9899_v7  ;;  %v759_v12 = vsub.s32 3, %v9899_v7  ;;  %s9672_s0 = smov [#allocation12]  }
  0x42   :  { %v9081_v35 = vpack.c.bf16 %v137_v30, %v133_v29  ;;  %v134_v42 = vld [vmem:[#allocation6 + $0x20] sm:$0xff]  ;;  %v108_v43 = vld [vmem:[#allocation2 + $0x18] sm:$0xff]  ;;  %v136_v45 = vld [vmem:[#allocation6 + $0x30] sm:$0xff]  ;;  %vm6074_vm13 = vcmask 519168   ;;  %vm6382_vm15 = vcmask 1042432   ;;  %s7951_s21 = sshll.u32 %s9672_s0, 4  ;;  %s7952_s21 = int_to_ptr.vmem [resolvable:$true] %s7951_s21 }
  0x43   :  { %v9079_v47 = vpack.c.bf16 %v134_v42, %v130_v41  ;;  %v339_v48 = vrot.slane %v108_v43, 1  ;;  %v9083_v49 = vpack.c.bf16 %v136_v45, %v132_v44  ;;  %v112_v53 = vld [vmem:[#allocation2 + $0x38] sm:$0xff]  ;;  %v105_v56 = vld [vmem:[#allocation2] sm:$0xff]  ;;  %vm12857_vm14 = vmor %vm119_vm2, %vm5574_vm9  ;;  %p9635_p11 = scmp.lt.s32.totalorder %s7952_s21, %s7952_s21 }
  0x44   :  { %v9821_v33 = vld [vmem:[#allocation2 + $0x8] sm:$0xff]  ;;  %v344_v55 = vrot.slane %v112_v53, 1  ;;  %v120_v59 = vrot.slane %v105_v56, 7  ;;  %v109_v62 = vld [vmem:[#allocation2 + $0x20] sm:$0xff] }
  0x45   :  { %7961 = vmatmul.mubr.msk.f32.vlgmr.msra.gmra.mrb[0].mxu0 %vm96_vm0, %v9821_v33  ;;  %7965 = vmatmul.mubr.msk.f32.vlgmr.msra.gmra.mrb[0].mxu1 %vm96_vm0, %v9821_v33  ;;  %v9828_v36 = vld [vmem:[#allocation2 + $0x10] sm:$0xff]  ;;  %v336_v38 = vrot.slane %v9821_v33, 1  ;;  %v121_v57 = vrot.slane %v9821_v33, 7  ;;  %v125_v2 = vrot.slane %v109_v62, 7  ;;  %v743_v10 = vld [vmem:[%s13276_s2] sm:$0xf] }
  0x46   :  { %9072 = vmatpush1.bf16.msra.mxu0 %v9071_v31  ;;  %225 = vmatprep.mubr.f32.mxu0 %v13291_v0  ;;  %v9837_v37 = vld [vmem:[#allocation2 + $0x28] sm:$0xff]  ;;  %v337_v39 = vrot.slane %v9828_v36, 1  ;;  %v9847_v40 = vld [vmem:[#allocation2 + $0x30] sm:$0xff]  ;;  %v123_v60 = vrot.slane %v9828_v36, 7  ;;  %v748_v13 = vrot.slane %v743_v10, %v9902_v8  ;;  %v756_v14 = vrot.slane %v743_v10, %v755_v9  ;;  %s9666_s2 = smov 96  }
  0x47   :  { %314 = vmatprep.mubr.f32.mxu1 %v13291_v0  ;;  %9076 = vmatpush1.bf16.msra.mxu1 %v9075_v32  ;;  %v341_v50 = vrot.slane %v9837_v37, 1  ;;  %v342_v51 = vrot.slane %v9847_v40, 1  ;;  %v122_v61 = vsel %vm119_vm2, %v120_v59, %v121_v57  ;;  %v126_v63 = vrot.slane %v9837_v37, 7 }
  0x48   :  { %9078 = vmatprep.subr.bf16.mxu0 %v9077_v34  ;;  %9082 = vmatprep.subr.bf16.mxu1 %v9081_v35  ;;  %v338_v46 = vsel %vm335_vm1, %v336_v38, %v337_v39  ;;  %v340_v52 = vsel %vm335_vm1, %v337_v39, %v339_v48  ;;  %v124_v1 = vsel %vm119_vm2, %v121_v57, %v123_v60  ;;  %v128_v3 = vrot.slane %v9847_v40, 7 }
  0x49   :  { %7962 = vmatmul.mubr.msk.f32.gmra.mrb[2].mxu0 %vm96_vm0, %v9828_v36  ;;  %7966 = vmatmul.mubr.msk.f32.gmra.mrb[2].mxu1 %vm96_vm0, %v9828_v36  ;;  %v343_v54 = vsel %vm335_vm1, %v341_v50, %v342_v51  ;;  %v345_v58 = vsel %vm335_vm1, %v342_v51, %v344_v55  ;;  %v127_v4 = vsel %vm119_vm2, %v125_v2, %v126_v63  ;;  %v9667_v2 = vmov 1966171168  }
  0x4a   :  { %231 = vmatprep.mubr.f32.mxu0 %v13291_v0  ;;  %320 = vmatprep.mubr.f32.mxu1 %v13291_v0  ;;  %v129_v5 = vsel %vm119_vm2, %v126_v63, %v128_v3  ;;  %v752_v15 = vrot.slane %v743_v10, %v751_v11  ;;  %v760_v16 = vrot.slane %v743_v10, %v759_v12  ;;  %v823_v3 = vunpack.c.l.s4 %v9667_v2 }
  0x4d   :  { %7963 = vmatmul.mubr.msk.f32.gmra.mrb[4].mxu0 %vm96_vm0, %v9837_v37  ;;  %7967 = vmatmul.mubr.msk.f32.gmra.mrb[4].mxu1 %vm96_vm0, %v9837_v37 }
  0x4e   :  { %237 = vmatprep.mubr.f32.mxu0 %v13291_v0  ;;  %326 = vmatprep.mubr.f32.mxu1 %v13291_v0 }
  0x51   :  { %7964 = vmatmul.mubr.msk.f32.gmra.mrb[6].mxu0 %vm96_vm0, %v9847_v40  ;;  %7968 = vmatmul.mubr.msk.f32.gmra.mrb[6].mxu1 %vm96_vm0, %v9847_v40 }
  0x52   :  { %427 = vmatprep.mubr.f32.mxu0 %v13291_v0  ;;  %516 = vmatprep.mubr.f32.mxu1 %v13291_v0 }
  0x55   :  { %7969 = vmatmul.mubr.msk.f32.vlgmr.msra.gmra.mrb[0].mxu0 %vm96_vm0, %v338_v46  ;;  %7973 = vmatmul.mubr.msk.f32.vlgmr.msra.gmra.mrb[0].mxu1 %vm96_vm0, %v338_v46 }
  0x56   :  { %9080 = vmatpush1.bf16.msra.mxu0 %v9079_v47  ;;  %433 = vmatprep.mubr.f32.mxu0 %v13291_v0 }
  0x57   :  { %522 = vmatprep.mubr.f32.mxu1 %v13291_v0  ;;  %9084 = vmatpush1.bf16.msra.mxu1 %v9083_v49 }
  0x59   :  { %7970 = vmatmul.mubr.msk.f32.gmra.mrb[2].mxu0 %vm96_vm0, %v340_v52  ;;  %7974 = vmatmul.mubr.msk.f32.gmra.mrb[2].mxu1 %vm96_vm0, %v340_v52 }
  0x5a   :  { %439 = vmatprep.mubr.f32.mxu0 %v13291_v0  ;;  %528 = vmatprep.mubr.f32.mxu1 %v13291_v0 }
  0x5d   :  { %7971 = vmatmul.mubr.msk.f32.gmra.mrb[4].mxu0 %vm96_vm0, %v343_v54  ;;  %7975 = vmatmul.mubr.msk.f32.gmra.mrb[4].mxu1 %vm96_vm0, %v343_v54 }
  0x5e   :  { %445 = vmatprep.mubr.f32.mxu0 %v13291_v0  ;;  %534 = vmatprep.mubr.f32.mxu1 %v13291_v0 }
  0x61   :  { %7972 = vmatmul.mubr.msk.f32.gmra.mrb[6].mxu0 %vm96_vm0, %v345_v58  ;;  %7976 = vmatmul.mubr.msk.f32.gmra.mrb[6].mxu1 %vm96_vm0, %v345_v58 }
  0x62   :  { %613 = vmatprep.mubr.f32.mxu0 %v13291_v0  ;;  %702 = vmatprep.mubr.f32.mxu1 %v13291_v0 }
  0x65   :  { %7977 = vmatmul.mubr.msk.f32.vlgmr.msra.gmra.mrb[0].mxu0 %vm96_vm0, %v122_v61  ;;  %7981 = vmatmul.mubr.msk.f32.vlgmr.msra.gmra.mrb[0].mxu1 %vm96_vm0, %v122_v61 }
  0x66   :  { %619 = vmatprep.mubr.f32.mxu0 %v13291_v0  ;;  %708 = vmatprep.mubr.f32.mxu1 %v13291_v0 }
  0x69   :  { %7978 = vmatmul.mubr.msk.f32.gmra.mrb[2].mxu0 %vm96_vm0, %v124_v1  ;;  %7982 = vmatmul.mubr.msk.f32.gmra.mrb[2].mxu1 %vm96_vm0, %v124_v1 }
  0x6a   :  { %625 = vmatprep.mubr.f32.mxu0 %v13291_v0  ;;  %714 = vmatprep.mubr.f32.mxu1 %v13291_v0 }
  0x6d   :  { %7979 = vmatmul.mubr.msk.f32.gmra.mrb[4].mxu0 %vm96_vm0, %v127_v4  ;;  %7983 = vmatmul.mubr.msk.f32.gmra.mrb[4].mxu1 %vm96_vm0, %v127_v4  ;;  %v824_v4 = vunpack.c.0.s8 %v823_v3 }
  0x6e   :  { %631 = vmatprep.mubr.f32.mxu0 %v13291_v0  ;;  %720 = vmatprep.mubr.f32.mxu1 %v13291_v0 }
  0x71   :  { %7980 = vmatmul.mubr.msk.f32.gmra.mrb[6].mxu0 %vm96_vm0, %v129_v5  ;;  %7984 = vmatmul.mubr.msk.f32.gmra.mrb[6].mxu1 %vm96_vm0, %v129_v5  ;;  %v10008_v5 = vsub.s32 %v824_v4, %v9899_v7  ;;  %vm6383_vm0 = vcmask 1046532  }
 0x138   :  { %v615_v17 = vpop.f32.mrb[0].mxu0  ;;  %v704_v18 = vpop.f32.mrb[0].mxu1 }
 0x139   :  { %v9911_v19 = vadd.f32 %v748_v13, %v615_v17  ;;  %v9913_v20 = vadd.f32 %v756_v14, %v704_v18  ;;  %v617_v21 = vpop.f32.mrb[1].mxu0  ;;  %v706_v22 = vpop.f32.mrb[1].mxu1 }
 0x13a   :  { %v9917_v25 = vadd.f32 %v752_v15, %v617_v21  ;;  %v9919_v26 = vadd.f32 %v760_v16, %v706_v22 }
 0x13b   :  { %v781_v23 = vmax.f32 %v9911_v19, 0.0  ;;  %v783_v24 = vmax.f32 %v9913_v20, 0.0 }
 0x13c   :  { %v621_v27 = vpop.f32.mrb[2].mxu0  ;;  %v710_v28 = vpop.f32.mrb[2].mxu1  ;;  %v782_v31 = vmax.f32 %v9917_v25, 0.0  ;;  %v784_v32 = vmax.f32 %v9919_v26, 0.0 }
 0x13d   :  { %1882 = vrot.lane.b32.xlu1 %v783_v24, %s9666_s2  ;;  %v712_v29 = vpop.f32.mrb[3].mxu1  ;;  %801 = vrot.lane.b32.xlu0 %v781_v23, %s9666_s2  ;;  %v623_v30 = vpop.f32.mrb[3].mxu0  ;;  %v9929_v33 = vadd.f32 %v748_v13, %v621_v27  ;;  %v9940_v40 = vadd.f32 %v756_v14, %v710_v28 }
 0x13e   :  { %v9931_v34 = vadd.f32 %v752_v15, %v623_v30  ;;  %v9942_v41 = vadd.f32 %v760_v16, %v712_v29 }
 0x13f   :  { %v785_v39 = vmax.f32 %v9929_v33, 0.0  ;;  %v787_v47 = vmax.f32 %v9940_v40, 0.0 }
 0x140   :  { %v627_v35 = vpop.f32.mrb[4].mxu0  ;;  %v716_v36 = vpop.f32.mrb[4].mxu1  ;;  %v786_v42 = vmax.f32 %v9931_v34, 0.0  ;;  %v788_v48 = vmax.f32 %v9942_v41, 0.0 }
 0x141   :  { %2422 = vrot.lane.b32.xlu1 %v784_v32, %s9666_s2  ;;  %v718_v37 = vpop.f32.mrb[5].mxu1  ;;  %1342 = vrot.lane.b32.xlu0 %v782_v31, %s9666_s2  ;;  %v629_v38 = vpop.f32.mrb[5].mxu0  ;;  %v9953_v49 = vadd.f32 %v748_v13, %v627_v35  ;;  %v9964_v52 = vadd.f32 %v756_v14, %v716_v36 }
 0x142   :  { %v9955_v50 = vadd.f32 %v752_v15, %v629_v38  ;;  %v9966_v53 = vadd.f32 %v760_v16, %v718_v37 }
 0x143   :  { %v789_v51 = vmax.f32 %v9953_v49, 0.0  ;;  %v791_v55 = vmax.f32 %v9964_v52, 0.0 }
 0x144   :  { %v633_v43 = vpop.f32.mrb[6].mxu0  ;;  %v722_v44 = vpop.f32.mrb[6].mxu1  ;;  %v790_v54 = vmax.f32 %v9955_v50, 0.0  ;;  %v792_v56 = vmax.f32 %v9966_v53, 0.0 }
 0x145   :  { %v724_v45 = vpop.f32.mrb[7].mxu1  ;;  %803 = vrot.lane.b32.xlu0 %v785_v39, %s9666_s2  ;;  %1344 = vrot.lane.b32.xlu1 %v786_v42, %s9666_s2  ;;  %v635_v46 = vpop.f32.mrb[7].mxu0  ;;  %v9977_v57 = vadd.f32 %v748_v13, %v633_v43  ;;  %v9988_v60 = vadd.f32 %v756_v14, %v722_v44 }
 0x146   :  { %v9979_v58 = vadd.f32 %v752_v15, %v635_v46  ;;  %v9990_v61 = vadd.f32 %v760_v16, %v724_v45 }
 0x147   :  { %v793_v59 = vmax.f32 %v9977_v57, 0.0  ;;  %v13294_v63 = vmax.f32 %v9988_v60, 0.0 }
 0x148   :  { %v794_v62 = vmax.f32 %v9979_v58, 0.0  ;;  %v13293_v1 = vmax.f32 %v9990_v61, 0.0 }
 0x149   :  { %1884 = vrot.lane.b32.xlu0 %v787_v47, %s9666_s2  ;;  %2424 = vrot.lane.b32.xlu1 %v788_v48, %s9666_s2 }
 0x14d   :  { %805 = vrot.lane.b32.xlu0 %v789_v51, %s9666_s2  ;;  %1346 = vrot.lane.b32.xlu1 %v790_v54, %s9666_s2 }
 0x151   :  { %1886 = vrot.lane.b32.xlu0 %v791_v55, %s9666_s2  ;;  %2426 = vrot.lane.b32.xlu1 %v792_v56, %s9666_s2 }
 0x155   :  { %807 = vrot.lane.b32.xlu0 %v793_v59, %s9666_s2  ;;  %1348 = vrot.lane.b32.xlu1 %v794_v62, %s9666_s2 }
 0x159   :  { %1888 = vrot.lane.b32.xlu0 %v13294_v63, %s9666_s2  ;;  %2428 = vrot.lane.b32.xlu1 %v13293_v1, %s9666_s2  ;;  %s9630_s2 = scalar_lea.vmem %s7952_s21, 32 }
 0x15a   :  { %p9631_p10 = scmp.ne.s32.totalorder %s7952_s21, %s9630_s2  ;;  %p9636_p12 = scmp.lt.s32.totalorder %s9630_s2, %s9630_s2 }
 0x15c   :  { %p9637_p13 = por %p9636_p12, %p9635_p11 }
 0x15e   :  { %p9638_p0 = pnand %p9637_p13, %p9631_p10 }
 0x1af   :  { %v1883_v6 = vpop.permute.xlu1 %1882  ;;  %v802_v9 = vpop.permute.xlu0 %801 }
 0x1b0   :  { %v1894_v10 = vmax.f32 %v783_v24, %v1883_v6  ;;  %v813_v11 = vmax.f32 %v781_v23, %v802_v9 }
 0x1b2   :  { %v1902_v12 = vcombine.high %v1894_v10, %v1894_v10  ;;  %v1909_v13 = vrot.slane %v1894_v10, %v10008_v5  ;;  %v821_v14 = vcombine.high %v813_v11, %v813_v11  ;;  %v828_v15 = vrot.slane %v813_v11, %v10008_v5 }
 0x1b3   :  { %v2423_v16 = vpop.permute.xlu1 %2422  ;;  %v1343_v17 = vpop.permute.xlu0 %1342 }
 0x1b4   :  { %v10017_v18 = vrot.slane %v1902_v12, %v10008_v5  ;;  %v1917_v21 = vcombine.high %v1909_v13, %v1909_v13  ;;  %v10020_v22 = vrot.slane %v1909_v13, %v10008_v5  ;;  %v10023_v20 = vrot.slane %v821_v14, %v10008_v5 }
 0x1b5   :  { %v836_v19 = vcombine.high %v828_v15, %v828_v15  ;;  %v10026_v23 = vrot.slane %v828_v15, %v10008_v5  ;;  %v2434_v24 = vmax.f32 %v784_v32, %v2423_v16  ;;  %v1354_v27 = vmax.f32 %v782_v31, %v1343_v17 }
 0x1b6   :  { %v10034_v28 = vrot.slane %v10017_v18, %v10008_v5  ;;  %v10037_v29 = vrot.slane %v1917_v21, %v10008_v5  ;;  %2130 = vst.msk [vmem:[#allocation3 + $0x4] sm:$0x1] %vm1049_vm3, %v10020_v22  ;;  %v10043_v30 = vrot.slane %v10023_v20, %v10008_v5 }
 0x1b7   :  { %v10046_v26 = vrot.slane %v836_v19, %v10008_v5  ;;  %1050 = vst.msk [vmem:[#allocation3] sm:$0x1] %vm1049_vm3, %v10026_v23  ;;  %v2442_v25 = vcombine.high %v2434_v24, %v2434_v24  ;;  %v2449_v31 = vrot.slane %v2434_v24, %v10008_v5  ;;  %v804_v32 = vpop.permute.xlu0 %803  ;;  %v1345_v35 = vpop.permute.xlu1 %1344  ;;  %v1362_v36 = vcombine.high %v1354_v27, %v1354_v27 }
 0x1b8   :  { %2131 = vst.msk [vmem:[#allocation3 + $0xc] sm:$0x1] %vm1049_vm3, %v10037_v29  ;;  %2134 = vst.msk [vmem:[#allocation3 + $0x24] sm:$0x1] %vm1049_vm3, %v10034_v28  ;;  %v1369_v37 = vrot.slane %v1354_v27, %v10008_v5  ;;  %v814_v38 = vmax.f32 %v785_v39, %v804_v32  ;;  %v1355_v43 = vmax.f32 %v786_v42, %v1345_v35 }
 0x1b9   :  { %1051 = vst.msk [vmem:[#allocation3 + $0x8] sm:$0x1] %vm1049_vm3, %v10046_v26  ;;  %1054 = vst.msk [vmem:[#allocation3 + $0x20] sm:$0x1] %vm1049_vm3, %v10043_v30  ;;  %v10065_v44 = vrot.slane %v2442_v25, %v10008_v5  ;;  %v2457_v45 = vcombine.high %v2449_v31, %v2449_v31  ;;  %v10068_v46 = vrot.slane %v2449_v31, %v10008_v5 }
 0x1ba   :  { %v1085_v33 = vrot.slane %v10026_v23, %v9902_v8  ;;  %v10073_v39 = vrot.slane %v1362_v36, %v10008_v5  ;;  %v1377_v34 = vcombine.high %v1369_v37, %v1369_v37  ;;  %v10076_v42 = vrot.slane %v1369_v37, %v10008_v5 }
 0x1bb   :  { %v870_v2 = vcombine.high %v814_v38, %v814_v38  ;;  %v10080_v3 = vrot.slane %v10065_v44, %v10008_v5  ;;  %v10083_v4 = vrot.slane %v2457_v45, %v10008_v5  ;;  %2670 = vst.msk [vmem:[#allocation3 + $0x6] sm:$0x1] %vm1049_vm3, %v10068_v46  ;;  %v877_v6 = vrot.slane %v814_v38, %v10008_v5  ;;  %v1885_v9 = vpop.permute.xlu0 %1884  ;;  %v2425_v10 = vpop.permute.xlu1 %2424 }
 0x1bc   :  { %1210 = vrot.lane.b32.xlu0 %v1085_v33, %s9668_s22  ;;  %v10091_v11 = vrot.slane %v10073_v39, %v10008_v5  ;;  %v10094_v12 = vrot.slane %v1377_v34, %v10008_v5  ;;  %1590 = vst.msk [vmem:[#allocation3 + $0x2] sm:$0x1] %vm1049_vm3, %v10076_v42  ;;  %v1411_v16 = vcombine.high %v1355_v43, %v1355_v43 }
 0x1bd   :  { %v10099_v13 = vrot.slane %v870_v2, %v10008_v5  ;;  %2671 = vst.msk [vmem:[#allocation3 + $0xe] sm:$0x1] %vm1049_vm3, %v10083_v4  ;;  %2674 = vst.msk [vmem:[#allocation3 + $0x26] sm:$0x1] %vm1049_vm3, %v10080_v3  ;;  %v885_v14 = vcombine.high %v877_v6, %v877_v6  ;;  %v10106_v15 = vrot.slane %v877_v6, %v10008_v5 }
 0x1be   :  { %v1418_v17 = vrot.slane %v1355_v43, %v10008_v5  ;;  %1591 = vst.msk [vmem:[#allocation3 + $0xa] sm:$0x1] %vm1049_vm3, %v10094_v12  ;;  %1594 = vst.msk [vmem:[#allocation3 + $0x22] sm:$0x1] %vm1049_vm3, %v10091_v11  ;;  %v1089_v19 = vrot.slane %v10046_v26, %v9902_v8  ;;  %v1895_v24 = vmax.f32 %v787_v47, %v1885_v9 }
 0x1bf   :  { %v10115_v21 = vrot.slane %v10099_v13, %v10008_v5  ;;  %v10122_v27 = vrot.slane %v885_v14, %v10008_v5  ;;  %1058 = vst.msk [vmem:[#allocation3 + $0x40] sm:$0x1] %vm1049_vm3, %v10106_v15  ;;  %v10127_v25 = vrot.slane %v1411_v16, %v10008_v5  ;;  %v806_v35 = vpop.permute.xlu0 %805  ;;  %v1347_v36 = vpop.permute.xlu1 %1346  ;;  %v2435_v37 = vmax.f32 %v788_v48, %v2425_v10 }
 0x1c0   :  { %v1426_v31 = vcombine.high %v1418_v17, %v1418_v17  ;;  %v10130_v32 = vrot.slane %v1418_v17, %v10008_v5  ;;  %1212 = vrot.lane.b32.xlu1 %v1089_v19, %s9668_s22  ;;  %v1951_v40 = vcombine.high %v1895_v24, %v1895_v24  ;;  %v1958_v47 = vrot.slane %v1895_v24, %v10008_v5 }
 0x1c1   :  { %1062 = vst.msk [vmem:[#allocation3 + $0x60] sm:$0x1] %vm1049_vm3, %v10115_v21  ;;  %v2165_v38 = vrot.slane %v10020_v22, %v9902_v8  ;;  %1059 = vst.msk [vmem:[#allocation3 + $0x48] sm:$0x1] %vm1049_vm3, %v10122_v27  ;;  %v10144_v43 = vrot.slane %v10127_v25, %v10008_v5  ;;  %v2169_v41 = vrot.slane %v10037_v29, %v9902_v8 }
 0x1c2   :  { %v10147_v45 = vrot.slane %v1426_v31, %v10008_v5  ;;  %1598 = vst.msk [vmem:[#allocation3 + $0x42] sm:$0x1] %vm1049_vm3, %v10130_v32  ;;  %v10154_v48 = vrot.slane %v1951_v40, %v10008_v5  ;;  %v1966_v33 = vcombine.high %v1958_v47, %v1958_v47  ;;  %v10157_v34 = vrot.slane %v1958_v47, %v10008_v5 }
 0x1c3   :  { %v2491_v2 = vcombine.high %v2435_v37, %v2435_v37  ;;  %2290 = vrot.lane.b32.xlu0 %v2165_v38, %s9668_s22  ;;  %1602 = vst.msk [vmem:[#allocation3 + $0x62] sm:$0x1] %vm1049_vm3, %v10144_v43  ;;  %v2498_v6 = vrot.slane %v2435_v37, %v10008_v5  ;;  %v815_v9 = vmax.f32 %v789_v51, %v806_v35  ;;  %v1887_v14 = vpop.permute.xlu0 %1886  ;;  %v2427_v50 = vpop.permute.xlu1 %2426 }
 0x1c4   :  { %1599 = vst.msk [vmem:[#allocation3 + $0x4a] sm:$0x1] %vm1049_vm3, %v10147_v45  ;;  %v1356_v10 = vmax.f32 %v790_v54, %v1347_v36  ;;  %v10171_v16 = vrot.slane %v10154_v48, %v10008_v5  ;;  %v10174_v17 = vrot.slane %v1966_v33, %v10008_v5  ;;  %2138 = vst.msk [vmem:[#allocation3 + $0x44] sm:$0x1] %vm1049_vm3, %v10157_v34  ;;  %2292 = vrot.lane.b32.xlu1 %v2169_v41, %s9668_s22 }
 0x1c5   :  { %v10179_v19 = vrot.slane %v2491_v2, %v10008_v5  ;;  %v1625_v49 = vrot.slane %v10076_v42, %v9902_v8  ;;  %v2506_v51 = vcombine.high %v2498_v6, %v2498_v6  ;;  %v10185_v54 = vrot.slane %v2498_v6, %v10008_v5 }
 0x1c6   :  { %v919_v24 = vcombine.high %v815_v9, %v815_v9  ;;  %v926_v31 = vrot.slane %v815_v9, %v10008_v5  ;;  %2139 = vst.msk [vmem:[#allocation3 + $0x4c] sm:$0x1] %vm1049_vm3, %v10174_v17  ;;  %2142 = vst.msk [vmem:[#allocation3 + $0x64] sm:$0x1] %vm1049_vm3, %v10171_v16  ;;  %v1460_v40 = vcombine.high %v1356_v10, %v1356_v10 }
 0x1c7   :  { %v10196_v36 = vrot.slane %v10179_v19, %v10008_v5  ;;  %v1467_v47 = vrot.slane %v1356_v10, %v10008_v5  ;;  %1750 = vrot.lane.b32.xlu0 %v1625_v49, %s9668_s22  ;;  %v10201_v37 = vrot.slane %v2506_v51, %v10008_v5  ;;  %2678 = vst.msk [vmem:[#allocation3 + $0x46] sm:$0x1] %vm1049_vm3, %v10185_v54  ;;  %v1349_v49 = vpop.permute.xlu1 %1348 }
 0x1c8   :  { %v10206_v38 = vrot.slane %v919_v24, %v10008_v5  ;;  %v934_v41 = vcombine.high %v926_v31, %v926_v31  ;;  %v10209_v33 = vrot.slane %v926_v31, %v10008_v5  ;;  %v1474_v2 = vrot.slane %v1460_v40, %v10008_v5  ;;  %v808_v40 = vpop.permute.xlu0 %807 }
 0x1c9   :  { %2682 = vst.msk [vmem:[#allocation3 + $0x66] sm:$0x1] %vm1049_vm3, %v10196_v36  ;;  %v1475_v6 = vcombine.high %v1467_v47, %v1467_v47  ;;  %v10215_v9 = vrot.slane %v1467_v47, %v10008_v5  ;;  %v1629_v10 = vrot.slane %v10094_v12, %v9902_v8  ;;  %2679 = vst.msk [vmem:[#allocation3 + $0x4e] sm:$0x1] %vm1049_vm3, %v10201_v37 }
 0x1ca   :  { %v10225_v51 = vrot.slane %v10206_v38, %v10008_v5  ;;  %v10228_v24 = vrot.slane %v934_v41, %v10008_v5  ;;  %1066 = vst.msk [vmem:[#allocation3 + $0x80] sm:$0x1] %vm1049_vm3, %v10209_v33  ;;  %v1896_v31 = vmax.f32 %v791_v55, %v1887_v14  ;;  %v1476_v47 = vcombine.high %v1474_v2, %v1474_v2 }
 0x1cb   :  { %v10235_v0 = vrot.slane %v1474_v2, %v10008_v5  ;;  %v10238_v35 = vrot.slane %v1475_v6, %v10008_v5  ;;  %1606 = vst.msk [vmem:[#allocation3 + $0x82] sm:$0x1] %vm1049_vm3, %v10215_v9  ;;  %1752 = vrot.lane.b32.xlu1 %v1629_v10, %s9668_s22  ;;  %v2436_v41 = vmax.f32 %v792_v56, %v2427_v50  ;;  %v2429_v7 = vpop.permute.xlu1 %2428 }
 0x1cc   :  { %1067 = vst.msk [vmem:[#allocation3 + $0x88] sm:$0x1] %vm1049_vm3, %v10228_v24  ;;  %1070 = vst.msk [vmem:[#allocation3 + $0xa0] sm:$0x1] %vm1049_vm3, %v10225_v51  ;;  %v2000_v52 = vcombine.high %v1896_v31, %v1896_v31  ;;  %v2007_v55 = vrot.slane %v1896_v31, %v10008_v5  ;;  %v2705_v14 = vrot.slane %v10068_v46, %v9902_v8 }
 0x1cd   :  { %13362 = vst [vmem:[#allocation17_spill] sm:$0xff] %v10235_v0  ;;  %v2709_v2 = vrot.slane %v10083_v4, %v9902_v8  ;;  %v10255_v6 = vrot.slane %v1476_v47, %v10008_v5  ;;  %1607 = vst.msk [vmem:[#allocation3 + $0x8a] sm:$0x1] %vm1049_vm3, %v10238_v35  ;;  %v2540_v53 = vcombine.high %v2436_v41, %v2436_v41 }
 0x1ce   :  { %1610 = vst.msk [vmem:[#allocation3 + $0xa2] sm:$0x1] %vm1049_vm3, %v10235_v0  ;;  %v2547_v56 = vrot.slane %v2436_v41, %v10008_v5  ;;  %v816_v50 = vmax.f32 %v793_v59, %v808_v40  ;;  %v10265_v10 = vrot.slane %v2000_v52, %v10008_v5  ;;  %v2015_v31 = vcombine.high %v2007_v55, %v2007_v55 }
 0x1cf   :  { %13363 = vst [vmem:[#allocation18_spill] sm:$0xff] %v10255_v6  ;;  %v10268_v1 = vrot.slane %v2007_v55, %v10008_v5  ;;  %2830 = vrot.lane.b32.xlu0 %v2705_v14, %s9668_s22  ;;  %v1357_v47 = vmax.f32 %v794_v62, %v1349_v49  ;;  %1611 = vst.msk [vmem:[#allocation3 + $0xaa] sm:$0x1] %vm1049_vm3, %v10255_v6  ;;  %v2554_v41 = vrot.slane %v2540_v53, %v10008_v5 }
 0x1d0   :  { %v2555_v63 = vcombine.high %v2547_v56, %v2547_v56  ;;  %v10277_v57 = vrot.slane %v2547_v56, %v10008_v5  ;;  %2832 = vrot.lane.b32.xlu1 %v2709_v2, %s9668_s22  ;;  %v968_v59 = vcombine.high %v816_v50, %v816_v50  ;;  %v10284_v52 = vrot.slane %v10265_v10, %v10008_v5 }
 0x1d1   :  { %v10287_v58 = vrot.slane %v2015_v31, %v10008_v5  ;;  %2146 = vst.msk [vmem:[#allocation3 + $0x84] sm:$0x1] %vm1049_vm3, %v10268_v1  ;;  %v975_v62 = vrot.slane %v816_v50, %v10008_v5  ;;  %v2556_v49 = vcombine.high %v2554_v41, %v2554_v41  ;;  %v10293_v55 = vrot.slane %v2554_v41, %v10008_v5 }
 0x1d2   :  { %v10296_v14 = vrot.slane %v2555_v63, %v10008_v5  ;;  %2686 = vst.msk [vmem:[#allocation3 + $0x86] sm:$0x1] %vm1049_vm3, %v10277_v57  ;;  %v982_v2 = vrot.slane %v968_v59, %v10008_v5  ;;  %2150 = vst.msk [vmem:[#allocation3 + $0xa4] sm:$0x1] %vm1049_vm3, %v10284_v52  ;;  %v1509_v50 = vcombine.high %v1357_v47, %v1357_v47  ;;  %v1889_v63 = vpop.permute.xlu0 %1888 }
 0x1d3   :  { %2147 = vst.msk [vmem:[#allocation3 + $0x8c] sm:$0x1] %vm1049_vm3, %v10287_v58  ;;  %v983_v53 = vcombine.high %v975_v62, %v975_v62  ;;  %v10306_v56 = vrot.slane %v975_v62, %v10008_v5  ;;  %v1516_v31 = vrot.slane %v1357_v47, %v10008_v5  ;;  %v10310_v41 = vrot.slane %v2556_v49, %v10008_v5 }
 0x1d4   :  { %2687 = vst.msk [vmem:[#allocation3 + $0x8e] sm:$0x1] %vm1049_vm3, %v10296_v14  ;;  %2690 = vst.msk [vmem:[#allocation3 + $0xa6] sm:$0x1] %vm1049_vm3, %v10293_v55  ;;  %v984_v59 = vcombine.high %v982_v2, %v982_v2  ;;  %v10317_v40 = vrot.slane %v982_v2, %v10008_v5  ;;  %v866_v62 = vcombine.high %v10026_v23, %v10026_v23 }
 0x1d5   :  { %13364 = vst [vmem:[#allocation19_spill] sm:$0xff] %v10306_v56  ;;  %13365 = vst [vmem:[#allocation20_spill] sm:$0xff] %v10310_v41  ;;  %v10322_v47 = vrot.slane %v983_v53, %v10008_v5  ;;  %v1523_v49 = vrot.slane %v1509_v50, %v10008_v5  ;;  %v1524_v6 = vcombine.high %v1516_v31, %v1516_v31  ;;  %v13368_v50 = vmax.f32 %v9988_v60, 0.0 }
 0x1d6   :  { %13366 = vst [vmem:[#allocation21_spill] sm:$0xff] %v10317_v40  ;;  %1074 = vst.msk [vmem:[#allocation3 + $0xc0] sm:$0x1] %vm1049_vm3, %v10306_v56  ;;  %v10328_v0 = vrot.slane %v1516_v31, %v10008_v5  ;;  %v10333_v2 = vrot.slane %v984_v59, %v10008_v5  ;;  %v1093_v23 = vrot.slane %v866_v62, %v9902_v8 }
 0x1d7   :  { %2691 = vst.msk [vmem:[#allocation3 + $0xae] sm:$0x1] %vm1049_vm3, %v10310_v41  ;;  %1078 = vst.msk [vmem:[#allocation3 + $0xe0] sm:$0x1] %vm1049_vm3, %v10317_v40  ;;  %v868_v53 = vcombine.high %v10046_v26, %v10046_v26  ;;  %v1897_v31 = vmax.f32 %v13368_v50, %v1889_v63  ;;  %v1525_v56 = vcombine.high %v1523_v49, %v1523_v49 }
 0x1d8   :  { %13367 = vst [vmem:[#allocation22_spill] sm:$0xff] %v10333_v2  ;;  %1052 = vst.msk [vmem:[#allocation3 + $0x10] sm:$0x1] %vm1049_vm3, %v866_v62  ;;  %v10346_v59 = vrot.slane %v1523_v49, %v10008_v5  ;;  %v10349_v41 = vrot.slane %v1524_v6, %v10008_v5  ;;  %v13370_v62 = vmax.f32 %v9990_v61, 0.0  ;;  %1214 = vrot.lane.b32.xlu0 %v1093_v23, %s9668_s22 }
 0x1d9   :  { %1075 = vst.msk [vmem:[#allocation3 + $0xc8] sm:$0x1] %vm1049_vm3, %v10322_v47  ;;  %1614 = vst.msk [vmem:[#allocation3 + $0xc2] sm:$0x1] %vm1049_vm3, %v10328_v0  ;;  %v1097_v60 = vrot.slane %v868_v53, %v9902_v8  ;;  %v2049_v26 = vcombine.high %v1897_v31, %v1897_v31  ;;  %v2056_v63 = vrot.slane %v1897_v31, %v10008_v5 }
 0x1da   :  { %13369 = vst [vmem:[#allocation23_spill] sm:$0xff] %v10346_v59  ;;  %v2437_v40 = vmax.f32 %v13370_v62, %v2429_v7  ;;  %1079 = vst.msk [vmem:[#allocation3 + $0xe8] sm:$0x1] %vm1049_vm3, %v10333_v2  ;;  %v1947_v6 = vcombine.high %v10020_v22, %v10020_v22  ;;  %v10364_v49 = vrot.slane %v1525_v56, %v10008_v5 }
 0x1db   :  { %1053 = vst.msk [vmem:[#allocation3 + $0x18] sm:$0x1] %vm1049_vm3, %v868_v53  ;;  %1615 = vst.msk [vmem:[#allocation3 + $0xca] sm:$0x1] %vm1049_vm3, %v10349_v41  ;;  %v1949_v23 = vcombine.high %v10037_v29, %v10037_v29  ;;  %1216 = vrot.lane.b32.xlu1 %v1097_v60, %s9668_s22  ;;  %v2063_v53 = vrot.slane %v2049_v26, %v10008_v5  ;;  %v2064_v22 = vcombine.high %v2056_v63, %v2056_v63 }
 0x1dc   :  { %13371 = vst [vmem:[#allocation24_spill] sm:$0xff] %v10364_v49  ;;  %1618 = vst.msk [vmem:[#allocation3 + $0xe2] sm:$0x1] %vm1049_vm3, %v10346_v59  ;;  %v2589_v7 = vcombine.high %v2437_v40, %v2437_v40  ;;  %v2596_v61 = vrot.slane %v2437_v40, %v10008_v5  ;;  %v10376_v56 = vrot.slane %v2056_v63, %v10008_v5 }
 0x1dd   :  { %2132 = vst.msk [vmem:[#allocation3 + $0x14] sm:$0x1] %vm1049_vm3, %v1947_v6  ;;  %v2173_v50 = vrot.slane %v1947_v6, %v9902_v8  ;;  %v1378_v31 = vcombine.high %v10073_v39, %v10073_v39  ;;  %1619 = vst.msk [vmem:[#allocation3 + $0xea] sm:$0x1] %vm1049_vm3, %v10364_v49  ;;  %v2065_v60 = vcombine.high %v2063_v53, %v2063_v53 }
 0x1de   :  { %v2603_v29 = vrot.slane %v2589_v7, %v10008_v5  ;;  %v2604_v40 = vcombine.high %v2596_v61, %v2596_v61  ;;  %v10386_v62 = vrot.slane %v2596_v61, %v10008_v5  ;;  %2133 = vst.msk [vmem:[#allocation3 + $0x1c] sm:$0x1] %vm1049_vm3, %v1949_v23  ;;  %v10390_v26 = vrot.slane %v2063_v53, %v10008_v5 }
 0x1df   :  { %v10393_v63 = vrot.slane %v2064_v22, %v10008_v5  ;;  %2154 = vst.msk [vmem:[#allocation3 + $0xc4] sm:$0x1] %vm1049_vm3, %v10376_v56  ;;  %2294 = vrot.lane.b32.xlu0 %v2173_v50, %s9668_s22  ;;  %v2177_v39 = vrot.slane %v1949_v23, %v9902_v8  ;;  %v13374_v53 = vcombine.high %v10023_v20, %v10023_v20 }
 0x1e0   :  { %13372 = vst [vmem:[#allocation25_spill] sm:$0xff] %v10390_v26  ;;  %v2605_v6 = vcombine.high %v2603_v29, %v2603_v29  ;;  %v10400_v7 = vrot.slane %v2603_v29, %v10008_v5  ;;  %v10403_v61 = vrot.slane %v2604_v40, %v10008_v5  ;;  %2694 = vst.msk [vmem:[#allocation3 + $0xc6] sm:$0x1] %vm1049_vm3, %v10386_v62 }
 0x1e1   :  { %v865_v22 = vrot.slane %v13374_v53, %v10008_v5  ;;  %v10412_v49 = vrot.slane %v2065_v60, %v10008_v5  ;;  %2155 = vst.msk [vmem:[#allocation3 + $0xcc] sm:$0x1] %vm1049_vm3, %v10393_v63  ;;  %2158 = vst.msk [vmem:[#allocation3 + $0xe4] sm:$0x1] %vm1049_vm3, %v10390_v26  ;;  %2296 = vrot.lane.b32.xlu1 %v2177_v39, %s9668_s22  ;;  %v1101_v23 = vrot.slane %v10043_v30, %v9902_v8 }
 0x1e2   :  { %13373 = vst [vmem:[#allocation26_spill] sm:$0xff] %v10400_v7  ;;  %v13376_v50 = vcombine.high %v10017_v18, %v10017_v18  ;;  %v1407_v29 = vcombine.high %v10076_v42, %v10076_v42  ;;  %v10428_v40 = vrot.slane %v2605_v6, %v10008_v5  ;;  %2695 = vst.msk [vmem:[#allocation3 + $0xce] sm:$0x1] %vm1049_vm3, %v10403_v61 }
 0x1e3   :  { %13375 = vst [vmem:[#allocation27_spill] sm:$0xff] %v10412_v49  ;;  %2698 = vst.msk [vmem:[#allocation3 + $0xe6] sm:$0x1] %vm1049_vm3, %v10400_v7  ;;  %v1409_v60 = vcombine.high %v10094_v12, %v10094_v12  ;;  %v2487_v18 = vcombine.high %v10068_v46, %v10068_v46  ;;  %1218 = vrot.lane.b32.xlu0 %v1101_v23, %s9668_s22  ;;  %v1105_v42 = vrot.slane %v865_v22, %v9902_v8 }
 0x1e4   :  { %v1946_v20 = vrot.slane %v13376_v50, %v10008_v5  ;;  %13377 = vst [vmem:[#allocation28_spill] sm:$0xff] %v10428_v40  ;;  %1055 = vst.msk [vmem:[#allocation3 + $0x28] sm:$0x1] %vm1049_vm3, %v865_v22  ;;  %v2489_v39 = vcombine.high %v10083_v4, %v10083_v4  ;;  %v10452_v46 = vrot.slane %v1378_v31, %v10008_v5 }
 0x1e5   :  { %2159 = vst.msk [vmem:[#allocation3 + $0xec] sm:$0x1] %vm1049_vm3, %v10412_v49  ;;  %1592 = vst.msk [vmem:[#allocation3 + $0x12] sm:$0x1] %vm1049_vm3, %v1407_v29  ;;  %1220 = vrot.lane.b32.xlu1 %v1105_v42, %s9668_s22  ;;  %v2181_v12 = vrot.slane %v10034_v28, %v9902_v8  ;;  %v13378_v4 = vcombine.high %v10065_v44, %v10065_v44  ;;  %v10466_v53 = vcombine.high %v10043_v30, %v10043_v30 }
 0x1e6   :  { %2135 = vst.msk [vmem:[#allocation3 + $0x2c] sm:$0x1] %vm1049_vm3, %v1946_v20  ;;  %2699 = vst.msk [vmem:[#allocation3 + $0xee] sm:$0x1] %vm1049_vm3, %v10428_v40  ;;  %v10468_v23 = vcombine.high %v865_v22, %v865_v22  ;;  %v10474_v31 = vcombine.high %v10034_v28, %v10034_v28  ;;  %v10476_v50 = vcombine.high %v1946_v20, %v1946_v20 }
 0x1e7   :  { %1593 = vst.msk [vmem:[#allocation3 + $0x1a] sm:$0x1] %vm1049_vm3, %v1409_v60  ;;  %2672 = vst.msk [vmem:[#allocation3 + $0x16] sm:$0x1] %vm1049_vm3, %v2487_v18  ;;  %v10462_v6 = vrot.slane %v13378_v4, %v10008_v5  ;;  %2298 = vrot.lane.b32.xlu0 %v2181_v12, %s9668_s22  ;;  %v2185_v44 = vrot.slane %v1946_v20, %v9902_v8  ;;  %v886_v30 = vcombine.high %v10099_v13, %v10099_v13 }
 0x1e8   :  { %2673 = vst.msk [vmem:[#allocation3 + $0x1e] sm:$0x1] %vm1049_vm3, %v2489_v39  ;;  %1595 = vst.msk [vmem:[#allocation3 + $0x2a] sm:$0x1] %vm1049_vm3, %v10452_v46  ;;  %v1967_v28 = vcombine.high %v10154_v48, %v10154_v48  ;;  %v1633_v22 = vrot.slane %v1407_v29, %v9902_v8  ;;  %v10498_v20 = vcombine.high %v10091_v11, %v10091_v11 }
 0x1e9   :  { %2675 = vst.msk [vmem:[#allocation3 + $0x2e] sm:$0x1] %vm1049_vm3, %v10462_v6  ;;  %1056 = vst.msk [vmem:[#allocation3 + $0x30] sm:$0x1] %vm1049_vm3, %v10466_v53  ;;  %2300 = vrot.lane.b32.xlu1 %v2185_v44, %s9668_s22  ;;  %v10502_v13 = vcombine.high %v10452_v46, %v10452_v46  ;;  %v10506_v48 = vcombine.high %v10080_v3, %v10080_v3  ;;  %v10510_v29 = vcombine.high %v10462_v6, %v10462_v6 }
 0x1ea   :  { %1057 = vst.msk [vmem:[#allocation3 + $0x38] sm:$0x1] %vm1049_vm3, %v10468_v23  ;;  %2136 = vst.msk [vmem:[#allocation3 + $0x34] sm:$0x1] %vm1049_vm3, %v10474_v31  ;;  %v1427_v42 = vcombine.high %v10127_v25, %v10127_v25  ;;  %v1637_v12 = vrot.slane %v1409_v60, %v9902_v8  ;;  %v10526_v4 = vcombine.high %v10106_v15, %v10106_v15 }
 0x1eb   :  { %2137 = vst.msk [vmem:[#allocation3 + $0x3c] sm:$0x1] %vm1049_vm3, %v10476_v50  ;;  %13379 = vst [vmem:[#allocation29_spill] sm:$0xff] %v10510_v29  ;;  %1754 = vrot.lane.b32.xlu0 %v1633_v22, %s9668_s22  ;;  %v10530_v25 = vcombine.high %v10122_v27, %v10122_v27  ;;  %v10534_v60 = vcombine.high %v10157_v34, %v10157_v34  ;;  %v10538_v44 = vcombine.high %v10174_v17, %v10174_v17 }
 0x1ec   :  { %1596 = vst.msk [vmem:[#allocation3 + $0x32] sm:$0x1] %vm1049_vm3, %v10498_v20  ;;  %1597 = vst.msk [vmem:[#allocation3 + $0x3a] sm:$0x1] %vm1049_vm3, %v10502_v13  ;;  %v2507_v22 = vcombine.high %v10179_v19, %v10179_v19  ;;  %v10545_v40 = vrot.slane %v886_v30, %v10008_v5  ;;  %v10548_v7 = vrot.slane %v1967_v28, %v10008_v5 }
 0x1ed   :  { %2676 = vst.msk [vmem:[#allocation3 + $0x36] sm:$0x1] %vm1049_vm3, %v10506_v48  ;;  %2677 = vst.msk [vmem:[#allocation3 + $0x3e] sm:$0x1] %vm1049_vm3, %v10510_v29  ;;  %1756 = vrot.lane.b32.xlu1 %v1637_v12, %s9668_s22  ;;  %v2713_v29 = vrot.slane %v2487_v18, %v9902_v8  ;;  %v2717_v19 = vrot.slane %v2489_v39, %v9902_v8  ;;  %v10566_v18 = vcombine.high %v10130_v32, %v10130_v32 }
 0x1ee   :  { %13380 = vst [vmem:[#allocation30_spill] sm:$0xff] %v10538_v44  ;;  %1060 = vst.msk [vmem:[#allocation3 + $0x50] sm:$0x1] %vm1049_vm3, %v10526_v4  ;;  %v10570_v30 = vcombine.high %v10147_v45, %v10147_v45  ;;  %v10574_v28 = vcombine.high %v10185_v54, %v10185_v54  ;;  %v10578_v39 = vcombine.high %v10201_v37, %v10201_v37 }
 0x1ef   :  { %1061 = vst.msk [vmem:[#allocation3 + $0x58] sm:$0x1] %vm1049_vm3, %v10530_v25  ;;  %2140 = vst.msk [vmem:[#allocation3 + $0x54] sm:$0x1] %vm1049_vm3, %v10534_v60  ;;  %2834 = vrot.lane.b32.xlu0 %v2713_v29, %s9668_s22  ;;  %v10581_v29 = vrot.slane %v1427_v42, %v10008_v5  ;;  %v1641_v12 = vrot.slane %v10091_v11, %v9902_v8  ;;  %v10601_v11 = vcombine.high %v10115_v21, %v10115_v21 }
 0x1f0   :  { %2141 = vst.msk [vmem:[#allocation3 + $0x5c] sm:$0x1] %vm1049_vm3, %v10538_v44  ;;  %1063 = vst.msk [vmem:[#allocation3 + $0x68] sm:$0x1] %vm1049_vm3, %v10545_v40  ;;  %v10591_v44 = vrot.slane %v2507_v22, %v10008_v5  ;;  %v1645_v42 = vrot.slane %v10452_v46, %v9902_v8  ;;  %v10610_v22 = vcombine.high %v10545_v40, %v10545_v40 }
 0x1f1   :  { %2143 = vst.msk [vmem:[#allocation3 + $0x6c] sm:$0x1] %vm1049_vm3, %v10548_v7  ;;  %13381 = vst [vmem:[#allocation31_spill] sm:$0xff] %v10578_v39  ;;  %2836 = vrot.lane.b32.xlu1 %v2717_v19, %s9668_s22  ;;  %v10614_v19 = vcombine.high %v10171_v16, %v10171_v16  ;;  %v10755_v46 = vcombine.high %v10209_v33, %v10209_v33 }
 0x1f2   :  { %1600 = vst.msk [vmem:[#allocation3 + $0x52] sm:$0x1] %vm1049_vm3, %v10566_v18  ;;  %1601 = vst.msk [vmem:[#allocation3 + $0x5a] sm:$0x1] %vm1049_vm3, %v10570_v30 }
 0x1f3   :  { %2680 = vst.msk [vmem:[#allocation3 + $0x56] sm:$0x1] %vm1049_vm3, %v10574_v28  ;;  %2681 = vst.msk [vmem:[#allocation3 + $0x5e] sm:$0x1] %vm1049_vm3, %v10578_v39  ;;  %1758 = vrot.lane.b32.xlu0 %v1641_v12, %s9668_s22  ;;  %v10618_v39 = vcombine.high %v10548_v7, %v10548_v7  ;;  %v2721_v12 = vrot.slane %v10080_v3, %v9902_v8  ;;  %v10643_v3 = vcombine.high %v10196_v36, %v10196_v36 }
 0x1f4   :  { %1603 = vst.msk [vmem:[#allocation3 + $0x6a] sm:$0x1] %vm1049_vm3, %v10581_v29  ;;  %13382 = vst [vmem:[#allocation32_spill] sm:$0xff] %v10601_v11 }
 0x1f5   :  { %2683 = vst.msk [vmem:[#allocation3 + $0x6e] sm:$0x1] %vm1049_vm3, %v10591_v44  ;;  %13383 = vst [vmem:[#allocation33_spill] sm:$0xff] %v10614_v19  ;;  %1760 = vrot.lane.b32.xlu1 %v1645_v42, %s9668_s22  ;;  %v10639_v42 = vcombine.high %v10581_v29, %v10581_v29 }
 0x1f6   :  { %13384 = vst [vmem:[#allocation34_spill] sm:$0xff] %v10618_v39  ;;  %1064 = vst.msk [vmem:[#allocation3 + $0x70] sm:$0x1] %vm1049_vm3, %v10601_v11  ;;  %v10635_v11 = vcombine.high %v10144_v43, %v10144_v43 }
 0x1f7   :  { %1065 = vst.msk [vmem:[#allocation3 + $0x78] sm:$0x1] %vm1049_vm3, %v10610_v22  ;;  %2144 = vst.msk [vmem:[#allocation3 + $0x74] sm:$0x1] %vm1049_vm3, %v10614_v19  ;;  %2838 = vrot.lane.b32.xlu0 %v2721_v12, %s9668_s22  ;;  %v13387_v19 = vmov 0.0   ;;  %v1109_v12 = vrot.slane %v10466_v53, %v9902_v8  ;;  %v13389_v53 = vcombine.high %v10206_v38, %v10206_v38  ;;  %v13390_v38 = vcombine.high %v10265_v10, %v10265_v10 }
 0x1f8   :  { %2145 = vst.msk [vmem:[#allocation3 + $0x7c] sm:$0x1] %vm1049_vm3, %v10618_v39  ;;  %13385 = vst [vmem:[#allocation35_spill] sm:$0xff] %v10639_v42  ;;  %v2725_v39 = vrot.slane %v10462_v6, %v9902_v8  ;;  %v10740_v6 = vcombine.high %v10591_v44, %v10591_v44  ;;  %v10809_v10 = vcombine.high %v10277_v57, %v10277_v57 }
 0x1f9   :  { %13386 = vst [vmem:[#allocation36_spill] sm:$0xff] %v10643_v3  ;;  %3165 = vst.msk [vmem:[#allocation4] sm:$0xff] %vm3008_vm4, %v13387_v19 }
 0x1fa   :  { %3166 = vst.msk [vmem:[#allocation4 + $0x18] sm:$0xff] %vm3008_vm4, %v13387_v19  ;;  %3167 = vst.msk [vmem:[#allocation4 + $0x30] sm:$0xff] %vm3008_vm4, %v13387_v19  ;;  %2840 = vrot.lane.b32.xlu1 %v2725_v39, %s9668_s22  ;;  %v10767_v39 = vcombine.high %v10287_v58, %v10287_v58 }
 0x1fb   :  { %3168 = vst.msk [vmem:[#allocation4 + $0x48] sm:$0xff] %vm3008_vm4, %v13387_v19  ;;  %3169 = vst.msk [vmem:[#allocation4 + $0x60] sm:$0xff] %vm3008_vm4, %v13387_v19  ;;  %1222 = vrot.lane.b32.xlu0 %v1109_v12, %s9668_s22  ;;  %v10800_v12 = vcombine.high %v10238_v35, %v10238_v35 }
 0x1fc   :  { %3170 = vst.msk [vmem:[#allocation4 + $0x78] sm:$0xff] %vm3008_vm4, %v13387_v19  ;;  %3171 = vst.msk [vmem:[#allocation4 + $0x90] sm:$0xff] %vm3008_vm4, %v13387_v19 }
 0x1fd   :  { %3172 = vst.msk [vmem:[#allocation4 + $0xa8] sm:$0xff] %vm3008_vm4, %v13387_v19  ;;  %3173 = vst.msk [vmem:[#allocation4 + $0xc0] sm:$0xff] %vm3008_vm4, %v13387_v19 }
 0x1fe   :  { %3174 = vst.msk [vmem:[#allocation4 + $0xd8] sm:$0xff] %vm3008_vm4, %v13387_v19  ;;  %3175 = vst.msk [vmem:[#allocation4 + $0xf0] sm:$0xff] %vm3008_vm4, %v13387_v19 }
 0x1ff   :  { %3176 = vst.msk [vmem:[#allocation4 + $0x108] sm:$0xff] %vm3008_vm4, %v13387_v19  ;;  %3177 = vst.msk [vmem:[#allocation4 + $0x120] sm:$0xff] %vm3008_vm4, %v13387_v19 }
 0x200   :  { %3178 = vst.msk [vmem:[#allocation4 + $0x138] sm:$0xff] %vm3008_vm4, %v13387_v19  ;;  %3179 = vst.msk [vmem:[#allocation4 + $0x150] sm:$0xff] %vm3008_vm4, %v13387_v19 }
 0x201   :  { %3180 = vst.msk [vmem:[#allocation4 + $0x168] sm:$0xff] %vm3008_vm4, %v13387_v19  ;;  %3181 = vst.msk [vmem:[#allocation4 + $0x180] sm:$0xff] %vm3008_vm4, %v13387_v19 }
 0x202   :  { %3182 = vst.msk [vmem:[#allocation4 + $0x198] sm:$0xff] %vm3008_vm4, %v13387_v19  ;;  %3183 = vst.msk [vmem:[#allocation4 + $0x1b0] sm:$0xff] %vm3008_vm4, %v13387_v19 }
 0x203   :  { %3184 = vst.msk [vmem:[#allocation4 + $0x1c8] sm:$0xff] %vm3008_vm4, %v13387_v19  ;;  %3185 = vst.msk [vmem:[#allocation4 + $0x10] sm:$0xff] %vm3008_vm4, %v13387_v19 }
 0x204   :  { %3186 = vst.msk [vmem:[#allocation4 + $0x28] sm:$0xff] %vm3008_vm4, %v13387_v19  ;;  %3187 = vst.msk [vmem:[#allocation4 + $0x40] sm:$0xff] %vm3008_vm4, %v13387_v19 }
 0x205   :  { %3188 = vst.msk [vmem:[#allocation4 + $0x58] sm:$0xff] %vm3008_vm4, %v13387_v19  ;;  %3189 = vst.msk [vmem:[#allocation4 + $0x70] sm:$0xff] %vm3008_vm4, %v13387_v19 }
 0x206   :  { %3190 = vst.msk [vmem:[#allocation4 + $0x88] sm:$0xff] %vm3008_vm4, %v13387_v19  ;;  %3191 = vst.msk [vmem:[#allocation4 + $0xa0] sm:$0xff] %vm3008_vm4, %v13387_v19 }
 0x207   :  { %3192 = vst.msk [vmem:[#allocation4 + $0xb8] sm:$0xff] %vm3008_vm4, %v13387_v19  ;;  %3193 = vst.msk [vmem:[#allocation4 + $0xd0] sm:$0xff] %vm3008_vm4, %v13387_v19 }
 0x208   :  { %3194 = vst.msk [vmem:[#allocation4 + $0xe8] sm:$0xff] %vm3008_vm4, %v13387_v19  ;;  %3195 = vst.msk [vmem:[#allocation4 + $0x100] sm:$0xff] %vm3008_vm4, %v13387_v19 }
 0x209   :  { %3196 = vst.msk [vmem:[#allocation4 + $0x118] sm:$0xff] %vm3008_vm4, %v13387_v19  ;;  %3197 = vst.msk [vmem:[#allocation4 + $0x130] sm:$0xff] %vm3008_vm4, %v13387_v19 }
 0x20a   :  { %3198 = vst.msk [vmem:[#allocation4 + $0x148] sm:$0xff] %vm3008_vm4, %v13387_v19  ;;  %3199 = vst.msk [vmem:[#allocation4 + $0x160] sm:$0xff] %vm3008_vm4, %v13387_v19 }
 0x20b   :  { %3200 = vst.msk [vmem:[#allocation4 + $0x178] sm:$0xff] %vm3008_vm4, %v13387_v19  ;;  %3201 = vst.msk [vmem:[#allocation4 + $0x190] sm:$0xff] %vm3008_vm4, %v13387_v19 }
 0x20c   :  { %3202 = vst.msk [vmem:[#allocation4 + $0x1a8] sm:$0xff] %vm3008_vm4, %v13387_v19  ;;  %3203 = vst.msk [vmem:[#allocation4 + $0x1c0] sm:$0xff] %vm3008_vm4, %v13387_v19 }
 0x20d   :  { %3204 = vst.msk [vmem:[#allocation4 + $0x1d8] sm:$0xff] %vm3008_vm4, %v13387_v19  ;;  %3205 = vst.msk [vmem:[#allocation4 + $0x8] sm:$0xff] %vm3008_vm4, %v13387_v19 }
 0x20e   :  { %3206 = vst.msk [vmem:[#allocation4 + $0xf8] sm:$0xff] %vm3008_vm4, %v13387_v19  ;;  %3208 = vst.msk [vmem:[#allocation4 + $0xe0] sm:$0xff] %vm3008_vm4, %v13387_v19 }
 0x20f   :  { %3209 = vst.msk [vmem:[#allocation4 + $0x1d0] sm:$0xff] %vm3008_vm4, %v13387_v19  ;;  %13388 = vst [vmem:[#allocation37_spill] sm:$0xff] %v10740_v6  ;;  %v10759_v19 = vcombine.high %v10228_v24, %v10228_v24 }
 0x210   :  { %1604 = vst.msk [vmem:[#allocation3 + $0x72] sm:$0x1] %vm1049_vm3, %v10635_v11  ;;  %1605 = vst.msk [vmem:[#allocation3 + $0x7a] sm:$0x1] %vm1049_vm3, %v10639_v42  ;;  %v10763_v42 = vcombine.high %v10268_v1, %v10268_v1 }
 0x211   :  { %2684 = vst.msk [vmem:[#allocation3 + $0x76] sm:$0x1] %vm1049_vm3, %v10643_v3  ;;  %2685 = vst.msk [vmem:[#allocation3 + $0x7e] sm:$0x1] %vm1049_vm3, %v10740_v6  ;;  %v10773_v6 = vrot.slane %v13389_v53, %v10008_v5  ;;  %v1113_v3 = vrot.slane %v10468_v23, %v9902_v8  ;;  %v10788_v53 = vrot.slane %v13390_v38, %v10008_v5 }
 0x212   :  { %1068 = vst.msk [vmem:[#allocation3 + $0x90] sm:$0x1] %vm1049_vm3, %v10755_v46  ;;  %1069 = vst.msk [vmem:[#allocation3 + $0x98] sm:$0x1] %vm1049_vm3, %v10759_v19  ;;  %v10796_v23 = vcombine.high %v10215_v9, %v10215_v9  ;;  %v2189_v5 = vrot.slane %v10474_v31, %v9902_v8  ;;  %v10813_v38 = vcombine.high %v10296_v14, %v10296_v14 }
 0x213   :  { %2148 = vst.msk [vmem:[#allocation3 + $0x94] sm:$0x1] %vm1049_vm3, %v10763_v42  ;;  %2149 = vst.msk [vmem:[#allocation3 + $0x9c] sm:$0x1] %vm1049_vm3, %v10767_v39  ;;  %1224 = vrot.lane.b32.xlu1 %v1113_v3, %s9668_s22  ;;  %v2193_v31 = vrot.slane %v10476_v50, %v9902_v8  ;;  %v10828_v3 = vcombine.high %v10225_v51, %v10225_v51  ;;  %v10840_v50 = vcombine.high %v10788_v53, %v10788_v53 }
 0x214   :  { %1071 = vst.msk [vmem:[#allocation3 + $0xa8] sm:$0x1] %vm1049_vm3, %v10773_v6  ;;  %13391 = vst [vmem:[#allocation38_spill] sm:$0xff] %v10796_v23  ;;  %2302 = vrot.lane.b32.xlu0 %v2189_v5, %s9668_s22  ;;  %v10836_v5 = vcombine.high %v10284_v52, %v10284_v52 }
 0x215   :  { %13392 = vst [vmem:[#allocation39_spill] sm:$0xff] %v10800_v12  ;;  %2151 = vst.msk [vmem:[#allocation3 + $0xac] sm:$0x1] %vm1049_vm3, %v10788_v53 }
 0x216   :  { %13393 = vst [vmem:[#allocation40_spill] sm:$0xff] %v10809_v10  ;;  %13394 = vst [vmem:[#allocation41_spill] sm:$0xff] %v10813_v38 }
 0x217   :  { %1608 = vst.msk [vmem:[#allocation3 + $0x92] sm:$0x1] %vm1049_vm3, %v10796_v23  ;;  %1609 = vst.msk [vmem:[#allocation3 + $0x9a] sm:$0x1] %vm1049_vm3, %v10800_v12  ;;  %v10832_v23 = vcombine.high %v10773_v6, %v10773_v6  ;;  %2304 = vrot.lane.b32.xlu1 %v2193_v31, %s9668_s22  ;;  %v13401_v31 = vld [vmem:[#allocation18_spill] sm:$0xff] }
 0x218   :  { %2688 = vst.msk [vmem:[#allocation3 + $0x96] sm:$0x1] %vm1049_vm3, %v10809_v10  ;;  %2689 = vst.msk [vmem:[#allocation3 + $0x9e] sm:$0x1] %vm1049_vm3, %v10813_v38  ;;  %v1117_v38 = vrot.slane %v10106_v15, %v9902_v8  ;;  %v13399_v10 = vld [vmem:[#allocation17_spill] sm:$0xff]  ;;  %v1121_v15 = vrot.slane %v10122_v27, %v9902_v8  ;;  %v2197_v27 = vrot.slane %v10157_v34, %v9902_v8 }
 0x219   :  { %13395 = vst [vmem:[#allocation42_spill] sm:$0xff] %v10828_v3  ;;  %13396 = vst [vmem:[#allocation43_spill] sm:$0xff] %v10832_v23  ;;  %v10855_v12 = vcombine.high %v13399_v10, %v13399_v10  ;;  %v10893_v34 = vcombine.high %v10376_v56, %v10376_v56 }
 0x21a   :  { %13397 = vst [vmem:[#allocation44_spill] sm:$0xff] %v10836_v5  ;;  %13398 = vst [vmem:[#allocation45_spill] sm:$0xff] %v10840_v50  ;;  %1226 = vrot.lane.b32.xlu0 %v1117_v38, %s9668_s22  ;;  %v13405_v38 = vld [vmem:[#allocation19_spill] sm:$0xff] }
 0x21b   :  { %1072 = vst.msk [vmem:[#allocation3 + $0xb0] sm:$0x1] %vm1049_vm3, %v10828_v3  ;;  %1073 = vst.msk [vmem:[#allocation3 + $0xb8] sm:$0x1] %vm1049_vm3, %v10832_v23  ;;  %v10862_v3 = vcombine.high %v13401_v31, %v13401_v31  ;;  %v10866_v23 = vcombine.high %v10293_v55, %v10293_v55  ;;  %1228 = vrot.lane.b32.xlu1 %v1121_v15, %s9668_s22  ;;  %v10897_v15 = vcombine.high %v10393_v63, %v10393_v63 }
 0x21c   :  { %2152 = vst.msk [vmem:[#allocation3 + $0xb4] sm:$0x1] %vm1049_vm3, %v10836_v5  ;;  %2153 = vst.msk [vmem:[#allocation3 + $0xbc] sm:$0x1] %vm1049_vm3, %v10840_v50  ;;  %v13403_v5 = vld [vmem:[#allocation20_spill] sm:$0xff] }
 0x21d   :  { %13400 = vst [vmem:[#allocation17_spill] sm:$0xff] %v10855_v12  ;;  %13402 = vst [vmem:[#allocation18_spill] sm:$0xff] %v10866_v23  ;;  %v10870_v50 = vcombine.high %v13403_v5, %v13403_v5  ;;  %v10885_v5 = vcombine.high %v13405_v38, %v13405_v38 }
 0x21e   :  { %1612 = vst.msk [vmem:[#allocation3 + $0xb2] sm:$0x1] %vm1049_vm3, %v10855_v12  ;;  %1613 = vst.msk [vmem:[#allocation3 + $0xba] sm:$0x1] %vm1049_vm3, %v10862_v3  ;;  %v10889_v12 = vcombine.high %v10322_v47, %v10322_v47  ;;  %2306 = vrot.lane.b32.xlu0 %v2197_v27, %s9668_s22  ;;  %v10919_v27 = vcombine.high %v10349_v41, %v10349_v41 }
 0x21f   :  { %13404 = vst [vmem:[#allocation46_spill] sm:$0xff] %v10870_v50  ;;  %2692 = vst.msk [vmem:[#allocation3 + $0xb6] sm:$0x1] %vm1049_vm3, %v10866_v23  ;;  %v10912_v23 = vcombine.high %v10328_v0, %v10328_v0 }
 0x220   :  { %2693 = vst.msk [vmem:[#allocation3 + $0xbe] sm:$0x1] %vm1049_vm3, %v10870_v50  ;;  %13406 = vst [vmem:[#allocation19_spill] sm:$0xff] %v10889_v12  ;;  %v2201_v50 = vrot.slane %v10174_v17, %v9902_v8  ;;  %v1649_v17 = vrot.slane %v10498_v20, %v9902_v8  ;;  %v1653_v20 = vrot.slane %v10502_v13, %v9902_v8 }
 0x221   :  { %13407 = vst [vmem:[#allocation47_spill] sm:$0xff] %v10893_v34  ;;  %13408 = vst [vmem:[#allocation48_spill] sm:$0xff] %v10897_v15  ;;  %v10950_v13 = vcombine.high %v10390_v26, %v10390_v26 }
 0x222   :  { %1076 = vst.msk [vmem:[#allocation3 + $0xd0] sm:$0x1] %vm1049_vm3, %v10885_v5  ;;  %1077 = vst.msk [vmem:[#allocation3 + $0xd8] sm:$0x1] %vm1049_vm3, %v10889_v12  ;;  %2308 = vrot.lane.b32.xlu1 %v2201_v50, %s9668_s22  ;;  %v10923_v12 = vcombine.high %v10386_v62, %v10386_v62  ;;  %1762 = vrot.lane.b32.xlu0 %v1649_v17, %s9668_s22  ;;  %v13413_v50 = vld [vmem:[#allocation21_spill] sm:$0xff]  ;;  %v10954_v17 = vcombine.high %v10412_v49, %v10412_v49 }
 0x223   :  { %2156 = vst.msk [vmem:[#allocation3 + $0xd4] sm:$0x1] %vm1049_vm3, %v10893_v34  ;;  %2157 = vst.msk [vmem:[#allocation3 + $0xdc] sm:$0x1] %vm1049_vm3, %v10897_v15  ;;  %v10927_v15 = vcombine.high %v10403_v61, %v10403_v61  ;;  %v10942_v34 = vcombine.high %v13413_v50, %v13413_v50  ;;  %v13417_v50 = vld [vmem:[#allocation28_spill] sm:$0xff] }
 0x224   :  { %13409 = vst [vmem:[#allocation49_spill] sm:$0xff] %v10912_v23  ;;  %13410 = vst [vmem:[#allocation50_spill] sm:$0xff] %v10919_v27 }
 0x225   :  { %13411 = vst [vmem:[#allocation51_spill] sm:$0xff] %v10923_v12  ;;  %13412 = vst [vmem:[#allocation52_spill] sm:$0xff] %v10927_v15 }
 0x226   :  { %1616 = vst.msk [vmem:[#allocation3 + $0xd2] sm:$0x1] %vm1049_vm3, %v10912_v23  ;;  %1617 = vst.msk [vmem:[#allocation3 + $0xda] sm:$0x1] %vm1049_vm3, %v10919_v27  ;;  %v10946_v23 = vcombine.high %v10333_v2, %v10333_v2  ;;  %1764 = vrot.lane.b32.xlu1 %v1653_v20, %s9668_s22  ;;  %v13415_v27 = vld [vmem:[#allocation24_spill] sm:$0xff]  ;;  %v13416_v2 = vld [vmem:[#allocation26_spill] sm:$0xff] }
 0x227   :  { %2696 = vst.msk [vmem:[#allocation3 + $0xd6] sm:$0x1] %vm1049_vm3, %v10923_v12  ;;  %2697 = vst.msk [vmem:[#allocation3 + $0xde] sm:$0x1] %vm1049_vm3, %v10927_v15  ;;  %v10958_v12 = vcombine.high %v10346_v59, %v10346_v59  ;;  %v2729_v15 = vrot.slane %v10506_v48, %v9902_v8  ;;  %v10967_v26 = vcombine.high %v13415_v27, %v13415_v27  ;;  %v13419_v48 = vld [vmem:[#allocation29_spill] sm:$0xff] }
 0x228   :  { %13414 = vst [vmem:[#allocation53_spill] sm:$0xff] %v10954_v17  ;;  %1080 = vst.msk [vmem:[#allocation3 + $0xf0] sm:$0x1] %vm1049_vm3, %v10942_v34  ;;  %v10971_v49 = vcombine.high %v13416_v2, %v13416_v2  ;;  %v10975_v59 = vcombine.high %v13417_v50, %v13417_v50  ;;  %v2733_v20 = vrot.slane %v13419_v48, %v9902_v8 }
 0x229   :  { %1081 = vst.msk [vmem:[#allocation3 + $0xf8] sm:$0x1] %vm1049_vm3, %v10946_v23  ;;  %2160 = vst.msk [vmem:[#allocation3 + $0xf4] sm:$0x1] %vm1049_vm3, %v10950_v13  ;;  %2842 = vrot.lane.b32.xlu0 %v2729_v15, %s9668_s22  ;;  %v1661_v15 = vrot.slane %v10147_v45, %v9902_v8  ;;  %v2737_v48 = vrot.slane %v10185_v54, %v9902_v8  ;;  %v1129_v45 = vrot.slane %v10530_v25, %v9902_v8 }
 0x22a   :  { %13418 = vst [vmem:[#allocation24_spill] sm:$0xff] %v10975_v59  ;;  %2161 = vst.msk [vmem:[#allocation3 + $0xfc] sm:$0x1] %vm1049_vm3, %v10954_v17  ;;  %2844 = vrot.lane.b32.xlu1 %v2733_v20, %s9668_s22  ;;  %v1657_v17 = vrot.slane %v10130_v32, %v9902_v8  ;;  %v1125_v32 = vrot.slane %v10526_v4, %v9902_v8  ;;  %v2205_v54 = vrot.slane %v10534_v60, %v9902_v8  ;;  %v13421_v20 = vld [vmem:[#allocation31_spill] sm:$0xff] }
 0x22b   :  { %1620 = vst.msk [vmem:[#allocation3 + $0xf2] sm:$0x1] %vm1049_vm3, %v10958_v12  ;;  %1621 = vst.msk [vmem:[#allocation3 + $0xfa] sm:$0x1] %vm1049_vm3, %v10967_v26  ;;  %v1137_v4 = vrot.slane %v10545_v40, %v9902_v8  ;;  %v2213_v25 = vrot.slane %v10171_v16, %v9902_v8  ;;  %v2217_v60 = vrot.slane %v10548_v7, %v9902_v8 }
 0x22c   :  { %2700 = vst.msk [vmem:[#allocation3 + $0xf6] sm:$0x1] %vm1049_vm3, %v10971_v49  ;;  %2701 = vst.msk [vmem:[#allocation3 + $0xfe] sm:$0x1] %vm1049_vm3, %v10975_v59  ;;  %v2741_v59 = vrot.slane %v10201_v37, %v9902_v8  ;;  %v1669_v40 = vrot.slane %v10570_v30, %v9902_v8  ;;  %v2745_v16 = vrot.slane %v10574_v28, %v9902_v8 }
 0x22d   :  { %1766 = vrot.lane.b32.xlu0 %v1657_v17, %s9668_s22  ;;  %v13420_v17 = vld [vmem:[#allocation30_spill] sm:$0xff]  ;;  %v2749_v7 = vrot.slane %v13421_v20, %v9902_v8  ;;  %v1677_v30 = vrot.slane %v10581_v29, %v9902_v8  ;;  %v2753_v28 = vrot.slane %v10196_v36, %v9902_v8  ;;  %v1145_v36 = vrot.slane %v10610_v22, %v9902_v8  ;;  %v13425_v20 = vld [vmem:[#allocation35_spill] sm:$0xff] }
 0x22e   :  { %1768 = vrot.lane.b32.xlu1 %v1661_v15, %s9668_s22  ;;  %v2209_v37 = vrot.slane %v13420_v17, %v9902_v8  ;;  %v1211_v15 = vpop.permute.xlu0 %1210  ;;  %v1149_v22 = vrot.slane %v10209_v33, %v9902_v8  ;;  %v2233_v33 = vrot.slane %v10287_v58, %v9902_v8 }
 0x22f   :  { %1306 = vst.msk [vmem:[#allocation3 + $0x1] sm:$0x1] %vm1049_vm3, %v1211_v15 }
 0x231   :  { %2846 = vrot.lane.b32.xlu0 %v2737_v48, %s9668_s22  ;;  %v2757_v48 = vrot.slane %v10591_v44, %v9902_v8  ;;  %v13423_v44 = vld [vmem:[#allocation33_spill] sm:$0xff] }
 0x232   :  { %2848 = vrot.lane.b32.xlu1 %v2741_v59, %s9668_s22  ;;  %v1133_v59 = vrot.slane %v10115_v21, %v9902_v8  ;;  %v1665_v21 = vrot.slane %v10566_v18, %v9902_v8  ;;  %v1673_v18 = vrot.slane %v10144_v43, %v9902_v8  ;;  %v13422_v43 = vld [vmem:[#allocation32_spill] sm:$0xff]  ;;  %v2221_v17 = vrot.slane %v13423_v44, %v9902_v8 }
 0x233   :  { %v1141_v29 = vrot.slane %v13422_v43, %v9902_v8  ;;  %v1693_v43 = vrot.slane %v10238_v35, %v9902_v8  ;;  %v1157_v35 = vrot.slane %v10755_v46, %v9902_v8  ;;  %v1161_v44 = vrot.slane %v10759_v19, %v9902_v8 }
 0x234   :  { %v1165_v19 = vrot.slane %v10225_v51, %v9902_v8 }
 0x235   :  { %1230 = vrot.lane.b32.xlu0 %v1125_v32, %s9668_s22  ;;  %v1213_v32 = vpop.permute.xlu1 %1212 }
 0x236   :  { %1232 = vrot.lane.b32.xlu1 %v1129_v45, %s9668_s22  ;;  %1307 = vst.msk [vmem:[#allocation3 + $0x9] sm:$0x1] %vm1049_vm3, %v1213_v32  ;;  %v2291_v45 = vpop.permute.xlu0 %2290 }
 0x237   :  { %2386 = vst.msk [vmem:[#allocation3 + $0x5] sm:$0x1] %vm1049_vm3, %v2291_v45  ;;  %v2769_v45 = vrot.slane %v10277_v57, %v9902_v8 }
 0x239   :  { %2310 = vrot.lane.b32.xlu0 %v2205_v54, %s9668_s22  ;;  %v2293_v54 = vpop.permute.xlu1 %2292 }
 0x23a   :  { %2312 = vrot.lane.b32.xlu1 %v2209_v37, %s9668_s22  ;;  %2387 = vst.msk [vmem:[#allocation3 + $0xd] sm:$0x1] %vm1049_vm3, %v2293_v54  ;;  %v1751_v37 = vpop.permute.xlu0 %1750 }
 0x23b   :  { %1846 = vst.msk [vmem:[#allocation3 + $0x3] sm:$0x1] %vm1049_vm3, %v1751_v37  ;;  %v2241_v37 = vrot.slane %v10767_v39, %v9902_v8  ;;  %v2245_v39 = vrot.slane %v10284_v52, %v9902_v8 }
 0x23d   :  { %1234 = vrot.lane.b32.xlu0 %v1133_v59, %s9668_s22  ;;  %v13424_v59 = vld [vmem:[#allocation34_spill] sm:$0xff] }
 0x23e   :  { %1236 = vrot.lane.b32.xlu1 %v1137_v4, %s9668_s22  ;;  %v2225_v4 = vrot.slane %v13424_v59, %v9902_v8 }
 0x241   :  { %2314 = vrot.lane.b32.xlu0 %v2213_v25, %s9668_s22  ;;  %v1753_v25 = vpop.permute.xlu1 %1752 }
 0x242   :  { %2316 = vrot.lane.b32.xlu1 %v2217_v60, %s9668_s22  ;;  %1847 = vst.msk [vmem:[#allocation3 + $0xb] sm:$0x1] %vm1049_vm3, %v1753_v25  ;;  %v1153_v60 = vrot.slane %v10228_v24, %v9902_v8  ;;  %v1681_v24 = vrot.slane %v10635_v11, %v9902_v8  ;;  %v2249_v25 = vrot.slane %v10788_v53, %v9902_v8  ;;  %v13430_v53 = vld [vmem:[#allocation40_spill] sm:$0xff] }
 0x245   :  { %1770 = vrot.lane.b32.xlu0 %v1665_v21, %s9668_s22  ;;  %v2831_v21 = vpop.permute.xlu0 %2830 }
 0x246   :  { %1772 = vrot.lane.b32.xlu1 %v1669_v40, %s9668_s22  ;;  %v2229_v40 = vrot.slane %v10268_v1, %v9902_v8  ;;  %2926 = vst.msk [vmem:[#allocation3 + $0x7] sm:$0x1] %vm1049_vm3, %v2831_v21  ;;  %v1685_v1 = vrot.slane %v13425_v20, %v9902_v8 }
 0x249   :  { %2850 = vrot.lane.b32.xlu0 %v2745_v16, %s9668_s22  ;;  %v2833_v16 = vpop.permute.xlu1 %2832 }
 0x24a   :  { %2852 = vrot.lane.b32.xlu1 %v2749_v7, %s9668_s22  ;;  %2927 = vst.msk [vmem:[#allocation3 + $0xf] sm:$0x1] %vm1049_vm3, %v2833_v16  ;;  %v1215_v7 = vpop.permute.xlu0 %1214 }
 0x24b   :  { %1308 = vst.msk [vmem:[#allocation3 + $0x11] sm:$0x1] %vm1049_vm3, %v1215_v7 }
 0x24d   :  { %1774 = vrot.lane.b32.xlu0 %v1673_v18, %s9668_s22  ;;  %v13426_v18 = vld [vmem:[#allocation36_spill] sm:$0xff]  ;;  %v1217_v58 = vpop.permute.xlu1 %1216 }
 0x24e   :  { %1776 = vrot.lane.b32.xlu1 %v1677_v30, %s9668_s22  ;;  %v2761_v15 = vrot.slane %v13426_v18, %v9902_v8  ;;  %v13427_v30 = vld [vmem:[#allocation37_spill] sm:$0xff]  ;;  %1309 = vst.msk [vmem:[#allocation3 + $0x19] sm:$0x1] %vm1049_vm3, %v1217_v58 }
 0x251   :  { %2854 = vrot.lane.b32.xlu0 %v2753_v28, %s9668_s22  ;;  %v2765_v28 = vrot.slane %v13427_v30, %v9902_v8  ;;  %v2295_v11 = vpop.permute.xlu0 %2294  ;;  %v1709_v30 = vrot.slane %v13401_v31, %v9902_v8  ;;  %v13433_v31 = vld [vmem:[#allocation42_spill] sm:$0xff] }
 0x252   :  { %2856 = vrot.lane.b32.xlu1 %v2757_v48, %s9668_s22  ;;  %v1689_v48 = vrot.slane %v10215_v9, %v9902_v8  ;;  %2388 = vst.msk [vmem:[#allocation3 + $0x15] sm:$0x1] %vm1049_vm3, %v2295_v11  ;;  %v2785_v11 = vrot.slane %v10293_v55, %v9902_v8 }
 0x253   :  { %v2297_v32 = vpop.permute.xlu1 %2296 }
 0x254   :  { %2389 = vst.msk [vmem:[#allocation3 + $0x1d] sm:$0x1] %vm1049_vm3, %v2297_v32 }
 0x255   :  { %1238 = vrot.lane.b32.xlu0 %v1141_v29, %s9668_s22  ;;  %v1219_v29 = vpop.permute.xlu0 %1218 }
 0x256   :  { %1240 = vrot.lane.b32.xlu1 %v1145_v36, %s9668_s22  ;;  %1310 = vst.msk [vmem:[#allocation3 + $0x21] sm:$0x1] %vm1049_vm3, %v1219_v29  ;;  %v2773_v36 = vrot.slane %v10296_v14, %v9902_v8  ;;  %v2237_v14 = vrot.slane %v10763_v42, %v9902_v8  ;;  %v1173_v29 = vrot.slane %v13433_v31, %v9902_v8 }
 0x257   :  { %v1221_v9 = vpop.permute.xlu1 %1220 }
 0x258   :  { %1311 = vst.msk [vmem:[#allocation3 + $0x29] sm:$0x1] %vm1049_vm3, %v1221_v9 }
 0x259   :  { %2318 = vrot.lane.b32.xlu0 %v2221_v17, %s9668_s22  ;;  %v2299_v54 = vpop.permute.xlu0 %2298 }
 0x25a   :  { %2320 = vrot.lane.b32.xlu1 %v2225_v4, %s9668_s22  ;;  %2390 = vst.msk [vmem:[#allocation3 + $0x25] sm:$0x1] %vm1049_vm3, %v2299_v54  ;;  %v1169_v4 = vrot.slane %v10773_v6, %v9902_v8  ;;  %v13428_v6 = vld [vmem:[#allocation38_spill] sm:$0xff]  ;;  %v13435_v54 = vld [vmem:[#allocation44_spill] sm:$0xff] }
 0x25b   :  { %v2301_v57 = vpop.permute.xlu1 %2300  ;;  %v1697_v21 = vrot.slane %v13428_v6, %v9902_v8 }
 0x25c   :  { %2391 = vst.msk [vmem:[#allocation3 + $0x2d] sm:$0x1] %vm1049_vm3, %v2301_v57 }
 0x25d   :  { %1242 = vrot.lane.b32.xlu0 %v1149_v22, %s9668_s22  ;;  %v1755_v17 = vpop.permute.xlu0 %1754 }
 0x25e   :  { %1244 = vrot.lane.b32.xlu1 %v1153_v60, %s9668_s22  ;;  %1848 = vst.msk [vmem:[#allocation3 + $0x13] sm:$0x1] %vm1049_vm3, %v1755_v17 }
 0x25f   :  { %v1757_v46 = vpop.permute.xlu1 %1756 }
 0x260   :  { %1849 = vst.msk [vmem:[#allocation3 + $0x1b] sm:$0x1] %vm1049_vm3, %v1757_v46  ;;  %v1181_v46 = vrot.slane %v13405_v38, %v9902_v8 }
 0x261   :  { %2322 = vrot.lane.b32.xlu0 %v2229_v40, %s9668_s22  ;;  %v2835_v59 = vpop.permute.xlu0 %2834  ;;  %v13429_v40 = vld [vmem:[#allocation39_spill] sm:$0xff] }
 0x262   :  { %2324 = vrot.lane.b32.xlu1 %v2233_v33, %s9668_s22  ;;  %2928 = vst.msk [vmem:[#allocation3 + $0x17] sm:$0x1] %vm1049_vm3, %v2835_v59  ;;  %v1701_v16 = vrot.slane %v13429_v40, %v9902_v8  ;;  %v1185_v59 = vrot.slane %v10322_v47, %v9902_v8  ;;  %v13437_v47 = vld [vmem:[#allocation17_spill] sm:$0xff] }
 0x263   :  { %v2837_v42 = vpop.permute.xlu1 %2836 }
 0x264   :  { %2929 = vst.msk [vmem:[#allocation3 + $0x1f] sm:$0x1] %vm1049_vm3, %v2837_v42  ;;  %v2261_v42 = vrot.slane %v10376_v56, %v9902_v8 }
 0x265   :  { %1778 = vrot.lane.b32.xlu0 %v1681_v24, %s9668_s22  ;;  %v1759_v22 = vpop.permute.xlu0 %1758  ;;  %v2777_v24 = vrot.slane %v13430_v53, %v9902_v8 }
 0x266   :  { %1780 = vrot.lane.b32.xlu1 %v1685_v1, %s9668_s22  ;;  %1850 = vst.msk [vmem:[#allocation3 + $0x23] sm:$0x1] %vm1049_vm3, %v1759_v22  ;;  %v13431_v1 = vld [vmem:[#allocation41_spill] sm:$0xff] }
 0x267   :  { %v1761_v51 = vpop.permute.xlu1 %1760  ;;  %v2781_v7 = vrot.slane %v13431_v1, %v9902_v8 }
 0x268   :  { %1851 = vst.msk [vmem:[#allocation3 + $0x2b] sm:$0x1] %vm1049_vm3, %v1761_v51  ;;  %v1717_v51 = vrot.slane %v10862_v3, %v9902_v8  ;;  %v1721_v3 = vrot.slane %v10328_v0, %v9902_v8 }
 0x269   :  { %2858 = vrot.lane.b32.xlu0 %v2761_v15, %s9668_s22  ;;  %v2839_v60 = vpop.permute.xlu0 %2838  ;;  %v1705_v15 = vrot.slane %v13399_v10, %v9902_v8 }
 0x26a   :  { %2860 = vrot.lane.b32.xlu1 %v2765_v28, %s9668_s22  ;;  %2930 = vst.msk [vmem:[#allocation3 + $0x27] sm:$0x1] %vm1049_vm3, %v2839_v60 }
 0x26c   :  { %v2841_v52 = vpop.permute.xlu1 %2840 }
 0x26d   :  { %1782 = vrot.lane.b32.xlu0 %v1689_v48, %s9668_s22  ;;  %2931 = vst.msk [vmem:[#allocation3 + $0x2f] sm:$0x1] %vm1049_vm3, %v2841_v52  ;;  %v1223_v33 = vpop.permute.xlu0 %1222  ;;  %v13432_v48 = vld [vmem:[#allocation20_spill] sm:$0xff] }
 0x26e   :  { %1784 = vrot.lane.b32.xlu1 %v1693_v43, %s9668_s22  ;;  %1312 = vst.msk [vmem:[#allocation3 + $0x31] sm:$0x1] %vm1049_vm3, %v1223_v33  ;;  %v2789_v32 = vrot.slane %v13432_v48, %v9902_v8  ;;  %v1725_v33 = vrot.slane %v10349_v41, %v9902_v8  ;;  %v1189_v41 = vrot.slane %v10885_v5, %v9902_v8 }
 0x271   :  { %2862 = vrot.lane.b32.xlu0 %v2769_v45, %s9668_s22  ;;  %v13434_v45 = vld [vmem:[#allocation43_spill] sm:$0xff] }
 0x272   :  { %2864 = vrot.lane.b32.xlu1 %v2773_v36, %s9668_s22  ;;  %v1177_v9 = vrot.slane %v13434_v45, %v9902_v8 }
 0x275   :  { %1246 = vrot.lane.b32.xlu0 %v1157_v35, %s9668_s22  ;;  %v2253_v35 = vrot.slane %v13435_v54, %v9902_v8 }
 0x276   :  { %1248 = vrot.lane.b32.xlu1 %v1161_v44, %s9668_s22  ;;  %v13436_v44 = vld [vmem:[#allocation45_spill] sm:$0xff] }
 0x277   :  { %v2257_v17 = vrot.slane %v13436_v44, %v9902_v8 }
 0x279   :  { %2326 = vrot.lane.b32.xlu0 %v2237_v14, %s9668_s22 }
 0x27a   :  { %2328 = vrot.lane.b32.xlu1 %v2241_v37, %s9668_s22 }
 0x27d   :  { %1250 = vrot.lane.b32.xlu0 %v1165_v19, %s9668_s22 }
 0x27e   :  { %1252 = vrot.lane.b32.xlu1 %v1169_v4, %s9668_s22  ;;  %v2265_v4 = vrot.slane %v10393_v63, %v9902_v8  ;;  %v13438_v63 = vld [vmem:[#allocation18_spill] sm:$0xff] }
 0x27f   :  { %v2793_v60 = vrot.slane %v13438_v63, %v9902_v8  ;;  %v2817_v63 = vrot.slane %v13416_v2, %v9902_v8 }
 0x281   :  { %2330 = vrot.lane.b32.xlu0 %v2245_v39, %s9668_s22  ;;  %v1713_v39 = vrot.slane %v13437_v47, %v9902_v8  ;;  %v13451_v47 = vld [vmem:[#allocation23_spill] sm:$0xff] }
 0x282   :  { %2332 = vrot.lane.b32.xlu1 %v2249_v25, %s9668_s22 }
 0x285   :  { %1786 = vrot.lane.b32.xlu0 %v1697_v21, %s9668_s22  ;;  %v1225_v20 = vpop.permute.xlu1 %1224  ;;  %v13439_v21 = vld [vmem:[#allocation46_spill] sm:$0xff] }
 0x286   :  { %1788 = vrot.lane.b32.xlu1 %v1701_v16, %s9668_s22  ;;  %1313 = vst.msk [vmem:[#allocation3 + $0x39] sm:$0x1] %vm1049_vm3, %v1225_v20  ;;  %v2303_v18 = vpop.permute.xlu0 %2302  ;;  %v2797_v52 = vrot.slane %v13439_v21, %v9902_v8  ;;  %v2805_v20 = vrot.slane %v10403_v61, %v9902_v8  ;;  %v13441_v61 = vld [vmem:[#allocation47_spill] sm:$0xff] }
 0x287   :  { %2392 = vst.msk [vmem:[#allocation3 + $0x35] sm:$0x1] %vm1049_vm3, %v2303_v18 }
 0x289   :  { %2866 = vrot.lane.b32.xlu0 %v2777_v24, %s9668_s22  ;;  %v2305_v58 = vpop.permute.xlu1 %2304  ;;  %v2801_v24 = vrot.slane %v10386_v62, %v9902_v8 }
 0x28a   :  { %2868 = vrot.lane.b32.xlu1 %v2781_v7, %s9668_s22  ;;  %2393 = vst.msk [vmem:[#allocation3 + $0x3d] sm:$0x1] %vm1049_vm3, %v2305_v58  ;;  %v13440_v7 = vld [vmem:[#allocation19_spill] sm:$0xff]  ;;  %v2269_v58 = vrot.slane %v13441_v61, %v9902_v8 }
 0x28b   :  { %v1193_v18 = vrot.slane %v13440_v7, %v9902_v8 }
 0x28c   :  { %v1227_v28 = vpop.permute.xlu0 %1226 }
 0x28d   :  { %1790 = vrot.lane.b32.xlu0 %v1705_v15, %s9668_s22  ;;  %1314 = vst.msk [vmem:[#allocation3 + $0x41] sm:$0x1] %vm1049_vm3, %v1227_v28  ;;  %v1229_v10 = vpop.permute.xlu1 %1228 }
 0x28e   :  { %1792 = vrot.lane.b32.xlu1 %v1709_v30, %s9668_s22  ;;  %1315 = vst.msk [vmem:[#allocation3 + $0x49] sm:$0x1] %vm1049_vm3, %v1229_v10  ;;  %v13442_v30 = vld [vmem:[#allocation48_spill] sm:$0xff]  ;;  %v13443_v10 = vld [vmem:[#allocation21_spill] sm:$0xff] }
 0x28f   :  { %v2273_v28 = vrot.slane %v13442_v30, %v9902_v8  ;;  %v1197_v48 = vrot.slane %v13443_v10, %v9902_v8 }
 0x290   :  { %v2307_v43 = vpop.permute.xlu0 %2306 }
 0x291   :  { %2870 = vrot.lane.b32.xlu0 %v2785_v11, %s9668_s22  ;;  %2394 = vst.msk [vmem:[#allocation3 + $0x45] sm:$0x1] %vm1049_vm3, %v2307_v43  ;;  %v13444_v43 = vld [vmem:[#allocation22_spill] sm:$0xff] }
 0x292   :  { %2872 = vrot.lane.b32.xlu1 %v2789_v32, %s9668_s22  ;;  %v1201_v31 = vrot.slane %v13444_v43, %v9902_v8 }
 0x294   :  { %v2309_v55 = vpop.permute.xlu1 %2308  ;;  %v1763_v36 = vpop.permute.xlu0 %1762 }
 0x295   :  { %1254 = vrot.lane.b32.xlu0 %v1173_v29, %s9668_s22  ;;  %2395 = vst.msk [vmem:[#allocation3 + $0x4d] sm:$0x1] %vm1049_vm3, %v2309_v55  ;;  %1852 = vst.msk [vmem:[#allocation3 + $0x33] sm:$0x1] %vm1049_vm3, %v1763_v36  ;;  %v13445_v55 = vld [vmem:[#allocation25_spill] sm:$0xff]  ;;  %v13446_v36 = vld [vmem:[#allocation27_spill] sm:$0xff] }
 0x296   :  { %1256 = vrot.lane.b32.xlu1 %v1177_v9, %s9668_s22  ;;  %v2277_v45 = vrot.slane %v13445_v55, %v9902_v8  ;;  %v2281_v54 = vrot.slane %v13446_v36, %v9902_v8 }
 0x298   :  { %v1765_v57 = vpop.permute.xlu1 %1764 }
 0x299   :  { %2334 = vrot.lane.b32.xlu0 %v2253_v35, %s9668_s22  ;;  %1853 = vst.msk [vmem:[#allocation3 + $0x3b] sm:$0x1] %vm1049_vm3, %v1765_v57  ;;  %v13447_v57 = vld [vmem:[#allocation49_spill] sm:$0xff] }
 0x29a   :  { %2336 = vrot.lane.b32.xlu1 %v2257_v17, %s9668_s22  ;;  %v1729_v44 = vrot.slane %v13447_v57, %v9902_v8 }
 0x29b   :  { %v2843_v14 = vpop.permute.xlu0 %2842 }
 0x29c   :  { %2932 = vst.msk [vmem:[#allocation3 + $0x37] sm:$0x1] %vm1049_vm3, %v2843_v14  ;;  %v2845_v37 = vpop.permute.xlu1 %2844  ;;  %v13448_v14 = vld [vmem:[#allocation50_spill] sm:$0xff] }
 0x29d   :  { %1258 = vrot.lane.b32.xlu0 %v1181_v46, %s9668_s22  ;;  %2933 = vst.msk [vmem:[#allocation3 + $0x3f] sm:$0x1] %vm1049_vm3, %v2845_v37  ;;  %v1733_v46 = vrot.slane %v13448_v14, %v9902_v8 }
 0x29e   :  { %1260 = vrot.lane.b32.xlu1 %v1185_v59, %s9668_s22  ;;  %v13449_v59 = vld [vmem:[#allocation51_spill] sm:$0xff] }
 0x29f   :  { %v1767_v19 = vpop.permute.xlu0 %1766 }
 0x2a0   :  { %1854 = vst.msk [vmem:[#allocation3 + $0x43] sm:$0x1] %vm1049_vm3, %v1767_v19  ;;  %v1769_v38 = vpop.permute.xlu1 %1768  ;;  %v2809_v19 = vrot.slane %v13449_v59, %v9902_v8 }
 0x2a1   :  { %2338 = vrot.lane.b32.xlu0 %v2261_v42, %s9668_s22  ;;  %1855 = vst.msk [vmem:[#allocation3 + $0x4b] sm:$0x1] %vm1049_vm3, %v1769_v38  ;;  %v13450_v38 = vld [vmem:[#allocation52_spill] sm:$0xff] }
 0x2a2   :  { %2340 = vrot.lane.b32.xlu1 %v2265_v4, %s9668_s22  ;;  %v2813_v4 = vrot.slane %v13450_v38, %v9902_v8 }
 0x2a3   :  { %v2847_v22 = vpop.permute.xlu0 %2846 }
 0x2a4   :  { %2934 = vst.msk [vmem:[#allocation3 + $0x47] sm:$0x1] %vm1049_vm3, %v2847_v22  ;;  %v2849_v56 = vpop.permute.xlu1 %2848 }
 0x2a5   :  { %1794 = vrot.lane.b32.xlu0 %v1713_v39, %s9668_s22  ;;  %2935 = vst.msk [vmem:[#allocation3 + $0x4f] sm:$0x1] %vm1049_vm3, %v2849_v56  ;;  %v1737_v39 = vrot.slane %v13451_v47, %v9902_v8 }
 0x2a6   :  { %1796 = vrot.lane.b32.xlu1 %v1717_v51, %s9668_s22  ;;  %v1741_v51 = vrot.slane %v13415_v27, %v9902_v8  ;;  %v1205_v27 = vrot.slane %v10942_v34, %v9902_v8 }
 0x2a7   :  { %v1231_v25 = vpop.permute.xlu0 %1230 }
 0x2a8   :  { %1316 = vst.msk [vmem:[#allocation3 + $0x51] sm:$0x1] %vm1049_vm3, %v1231_v25  ;;  %v1233_v6 = vpop.permute.xlu1 %1232 }
 0x2a9   :  { %2874 = vrot.lane.b32.xlu0 %v2793_v60, %s9668_s22  ;;  %1317 = vst.msk [vmem:[#allocation3 + $0x59] sm:$0x1] %vm1049_vm3, %v1233_v6  ;;  %v2821_v6 = vrot.slane %v13417_v50, %v9902_v8  ;;  %v2285_v50 = vrot.slane %v10950_v13, %v9902_v8 }
 0x2aa   :  { %2876 = vrot.lane.b32.xlu1 %v2797_v52, %s9668_s22  ;;  %v1209_v52 = vrot.slane %v10946_v23, %v9902_v8  ;;  %v1745_v23 = vrot.slane %v10958_v12, %v9902_v8 }
 0x2ab   :  { %v2311_v40 = vpop.permute.xlu0 %2310 }
 0x2ac   :  { %2396 = vst.msk [vmem:[#allocation3 + $0x55] sm:$0x1] %vm1049_vm3, %v2311_v40  ;;  %v2313_v16 = vpop.permute.xlu1 %2312 }
 0x2ad   :  { %1798 = vrot.lane.b32.xlu0 %v1721_v3, %s9668_s22  ;;  %2397 = vst.msk [vmem:[#allocation3 + $0x5d] sm:$0x1] %vm1049_vm3, %v2313_v16  ;;  %v13452_v3 = vld [vmem:[#allocation53_spill] sm:$0xff] }
 0x2ae   :  { %1800 = vrot.lane.b32.xlu1 %v1725_v33, %s9668_s22  ;;  %v2289_v16 = vrot.slane %v13452_v3, %v9902_v8 }
 0x2af   :  { %v1235_v53 = vpop.permute.xlu0 %1234 }
 0x2b0   :  { %1318 = vst.msk [vmem:[#allocation3 + $0x61] sm:$0x1] %vm1049_vm3, %v1235_v53  ;;  %v1237_v0 = vpop.permute.xlu1 %1236  ;;  %v1749_v53 = vrot.slane %v10967_v26, %v9902_v8 }
 0x2b1   :  { %2878 = vrot.lane.b32.xlu0 %v2801_v24, %s9668_s22  ;;  %1319 = vst.msk [vmem:[#allocation3 + $0x69] sm:$0x1] %vm1049_vm3, %v1237_v0  ;;  %v2825_v0 = vrot.slane %v10971_v49, %v9902_v8 }
 0x2b2   :  { %2880 = vrot.lane.b32.xlu1 %v2805_v20, %s9668_s22  ;;  %v13453_v20 = vld [vmem:[#allocation24_spill] sm:$0xff] }
 0x2b3   :  { %v2315_v1 = vpop.permute.xlu0 %2314 }
 0x2b4   :  { %2398 = vst.msk [vmem:[#allocation3 + $0x65] sm:$0x1] %vm1049_vm3, %v2315_v1  ;;  %v2317_v62 = vpop.permute.xlu1 %2316  ;;  %v2829_v1 = vrot.slane %v13453_v20, %v9902_v8  ;;  %v3470_v20 = vld [vmem:[#allocation9 + $0x18] sm:$0xff] }
 0x2b5   :  { %1262 = vrot.lane.b32.xlu0 %v1189_v41, %s9668_s22  ;;  %2399 = vst.msk [vmem:[#allocation3 + $0x6d] sm:$0x1] %vm1049_vm3, %v2317_v62 }
 0x2b6   :  { %1264 = vrot.lane.b32.xlu1 %v1193_v18, %s9668_s22 }
 0x2b7   :  { %v1771_v15 = vpop.permute.xlu0 %1770 }
 0x2b8   :  { %1856 = vst.msk [vmem:[#allocation3 + $0x53] sm:$0x1] %vm1049_vm3, %v1771_v15  ;;  %v1773_v5 = vpop.permute.xlu1 %1772 }
 0x2b9   :  { %2342 = vrot.lane.b32.xlu0 %v2269_v58, %s9668_s22  ;;  %1857 = vst.msk [vmem:[#allocation3 + $0x5b] sm:$0x1] %vm1049_vm3, %v1773_v5 }
 0x2ba   :  { %2344 = vrot.lane.b32.xlu1 %v2273_v28, %s9668_s22 }
 0x2bb   :  { %v2851_v11 = vpop.permute.xlu0 %2850 }
 0x2bc   :  { %2936 = vst.msk [vmem:[#allocation3 + $0x57] sm:$0x1] %vm1049_vm3, %v2851_v11  ;;  %v2853_v32 = vpop.permute.xlu1 %2852 }
 0x2bd   :  { %1266 = vrot.lane.b32.xlu0 %v1197_v48, %s9668_s22  ;;  %2937 = vst.msk [vmem:[#allocation3 + $0x5f] sm:$0x1] %vm1049_vm3, %v2853_v32 }
 0x2be   :  { %1268 = vrot.lane.b32.xlu1 %v1201_v31, %s9668_s22 }
 0x2bf   :  { %v1775_v29 = vpop.permute.xlu0 %1774 }
 0x2c0   :  { %1858 = vst.msk [vmem:[#allocation3 + $0x63] sm:$0x1] %vm1049_vm3, %v1775_v29  ;;  %v1777_v9 = vpop.permute.xlu1 %1776 }
 0x2c1   :  { %2346 = vrot.lane.b32.xlu0 %v2277_v45, %s9668_s22  ;;  %1859 = vst.msk [vmem:[#allocation3 + $0x6b] sm:$0x1] %vm1049_vm3, %v1777_v9 }
 0x2c2   :  { %2348 = vrot.lane.b32.xlu1 %v2281_v54, %s9668_s22 }
 0x2c3   :  { %v2855_v35 = vpop.permute.xlu0 %2854 }
 0x2c4   :  { %2938 = vst.msk [vmem:[#allocation3 + $0x67] sm:$0x1] %vm1049_vm3, %v2855_v35  ;;  %v2857_v17 = vpop.permute.xlu1 %2856 }
 0x2c5   :  { %1802 = vrot.lane.b32.xlu0 %v1729_v44, %s9668_s22  ;;  %2939 = vst.msk [vmem:[#allocation3 + $0x6f] sm:$0x1] %vm1049_vm3, %v2857_v17 }
 0x2c6   :  { %1804 = vrot.lane.b32.xlu1 %v1733_v46, %s9668_s22 }
 0x2c7   :  { %v1239_v37 = vpop.permute.xlu0 %1238 }
 0x2c8   :  { %1320 = vst.msk [vmem:[#allocation3 + $0x71] sm:$0x1] %vm1049_vm3, %v1239_v37  ;;  %v1241_v42 = vpop.permute.xlu1 %1240 }
 0x2c9   :  { %2882 = vrot.lane.b32.xlu0 %v2809_v19, %s9668_s22  ;;  %1321 = vst.msk [vmem:[#allocation3 + $0x79] sm:$0x1] %vm1049_vm3, %v1241_v42 }
 0x2ca   :  { %2884 = vrot.lane.b32.xlu1 %v2813_v4, %s9668_s22 }
 0x2cb   :  { %v2319_v22 = vpop.permute.xlu0 %2318 }
 0x2cc   :  { %2400 = vst.msk [vmem:[#allocation3 + $0x75] sm:$0x1] %vm1049_vm3, %v2319_v22  ;;  %v2321_v56 = vpop.permute.xlu1 %2320 }
 0x2cd   :  { %1806 = vrot.lane.b32.xlu0 %v1737_v39, %s9668_s22  ;;  %2401 = vst.msk [vmem:[#allocation3 + $0x7d] sm:$0x1] %vm1049_vm3, %v2321_v56 }
 0x2ce   :  { %1808 = vrot.lane.b32.xlu1 %v1741_v51, %s9668_s22 }
 0x2cf   :  { %v1243_v25 = vpop.permute.xlu0 %1242 }
 0x2d0   :  { %1322 = vst.msk [vmem:[#allocation3 + $0x81] sm:$0x1] %vm1049_vm3, %v1243_v25  ;;  %v1245_v60 = vpop.permute.xlu1 %1244 }
 0x2d1   :  { %2886 = vrot.lane.b32.xlu0 %v2817_v63, %s9668_s22  ;;  %1323 = vst.msk [vmem:[#allocation3 + $0x89] sm:$0x1] %vm1049_vm3, %v1245_v60 }
 0x2d2   :  { %2888 = vrot.lane.b32.xlu1 %v2821_v6, %s9668_s22  ;;  %v2961_v6 = vld [vmem:[#allocation3 + $0x18] sm:$0xff] }
 0x2d3   :  { %v2323_v21 = vpop.permute.xlu0 %2322 }
 0x2d4   :  { %2402 = vst.msk [vmem:[#allocation3 + $0x85] sm:$0x1] %vm1049_vm3, %v2323_v21  ;;  %v2325_v2 = vpop.permute.xlu1 %2324  ;;  %v2959_v21 = vld [vmem:[#allocation3 + $0x8] sm:$0xff] }
 0x2d5   :  { %1270 = vrot.lane.b32.xlu0 %v1205_v27, %s9668_s22  ;;  %2403 = vst.msk [vmem:[#allocation3 + $0x8d] sm:$0x1] %vm1049_vm3, %v2325_v2  ;;  %v2960_v27 = vld [vmem:[#allocation3 + $0x10] sm:$0xff]  ;;  %v2963_v2 = vld [vmem:[#allocation3 + $0x28] sm:$0xff] }
 0x2d6   :  { %1272 = vrot.lane.b32.xlu1 %v1209_v52, %s9668_s22 }
 0x2d7   :  { %v1779_v40 = vpop.permute.xlu0 %1778 }
 0x2d8   :  { %1860 = vst.msk [vmem:[#allocation3 + $0x73] sm:$0x1] %vm1049_vm3, %v1779_v40  ;;  %v1781_v34 = vpop.permute.xlu1 %1780  ;;  %v3475_v40 = vld [vmem:[#allocation9 + $0x40] sm:$0xff] }
 0x2d9   :  { %2350 = vrot.lane.b32.xlu0 %v2285_v50, %s9668_s22  ;;  %1861 = vst.msk [vmem:[#allocation3 + $0x7b] sm:$0x1] %vm1049_vm3, %v1781_v34  ;;  %v3476_v50 = vld [vmem:[#allocation9 + $0x48] sm:$0xff]  ;;  %v3477_v34 = vld [vmem:[#allocation9 + $0x50] sm:$0xff] }
 0x2da   :  { %2352 = vrot.lane.b32.xlu1 %v2289_v16, %s9668_s22  ;;  %v9101_v3 = vpack.c.bf16 %v3476_v50, %v3475_v40  ;;  %v3478_v16 = vld [vmem:[#allocation9 + $0x58] sm:$0xff] }
 0x2db   :  { %v2859_v33 = vpop.permute.xlu0 %2858 }
 0x2dc   :  { %2940 = vst.msk [vmem:[#allocation3 + $0x77] sm:$0x1] %vm1049_vm3, %v2859_v33  ;;  %v2861_v13 = vpop.permute.xlu1 %2860  ;;  %v3467_v33 = vld [vmem:[#allocation9] sm:$0xff]  ;;  %9102 = vmatprep.subr.bf16.mxu0 %v9101_v3 }
 0x2dd   :  { %1810 = vrot.lane.b32.xlu0 %v1745_v23, %s9668_s22  ;;  %2941 = vst.msk [vmem:[#allocation3 + $0x7f] sm:$0x1] %vm1049_vm3, %v2861_v13  ;;  %v3468_v23 = vld [vmem:[#allocation9 + $0x8] sm:$0xff]  ;;  %v2958_v13 = vld [vmem:[#allocation3] sm:$0xff]  ;;  %9104 = vmatpush3.bf16.msra.mxu0 %v9101_v3 }
 0x2de   :  { %1812 = vrot.lane.b32.xlu1 %v1749_v53, %s9668_s22 }
 0x2df   :  { %v1783_v24 = vpop.permute.xlu0 %1782 }
 0x2e0   :  { %1862 = vst.msk [vmem:[#allocation3 + $0x83] sm:$0x1] %vm1049_vm3, %v1783_v24  ;;  %v1785_v12 = vpop.permute.xlu1 %1784  ;;  %v9105_v24 = vpack.c.bf16 %v3478_v16, %v3477_v34 }
 0x2e1   :  { %2890 = vrot.lane.b32.xlu0 %v2825_v0, %s9668_s22  ;;  %1863 = vst.msk [vmem:[#allocation3 + $0x8b] sm:$0x1] %vm1049_vm3, %v1785_v12  ;;  %v9085_v0 = vpack.c.bf16 %v3468_v23, %v3467_v33  ;;  %v3469_v12 = vld [vmem:[#allocation9 + $0x10] sm:$0xff] }
 0x2e2   :  { %2892 = vrot.lane.b32.xlu1 %v2829_v1, %s9668_s22  ;;  %v3227_v1 = vld [vmem:[#allocation4] sm:$0xff]  ;;  %9106 = vmatprep.subr.bf16.mxu0 %v9105_v24 }
 0x2e3   :  { %v2863_v41 = vpop.permute.xlu0 %2862  ;;  %9086 = vmatprep.subr.bf16.mxu1 %v9085_v0  ;;  %9108 = vmatpush3.bf16.msra.mxu0 %v9105_v24 }
 0x2e4   :  { %2942 = vst.msk [vmem:[#allocation3 + $0x87] sm:$0x1] %vm1049_vm3, %v2863_v41  ;;  %v2865_v26 = vpop.permute.xlu1 %2864  ;;  %v11386_v41 = vmax.f32 %v2960_v27, %v2961_v6  ;;  %9088 = vmatpush3.bf16.msra.mxu1 %v9085_v0 }
 0x2e5   :  { %2943 = vst.msk [vmem:[#allocation3 + $0x8f] sm:$0x1] %vm1049_vm3, %v2865_v26  ;;  %v9089_v26 = vpack.c.bf16 %v3470_v20, %v3469_v12 }
 0x2e7   :  { %v1247_v62 = vpop.permute.xlu0 %1246  ;;  %9090 = vmatprep.subr.bf16.mxu1 %v9089_v26 }
 0x2e8   :  { %1324 = vst.msk [vmem:[#allocation3 + $0x91] sm:$0x1] %vm1049_vm3, %v1247_v62  ;;  %v1249_v49 = vpop.permute.xlu1 %1248  ;;  %v11389_v62 = vld [vmem:[#allocation4 + $0x8] sm:$0xff]  ;;  %9092 = vmatpush3.bf16.msra.mxu1 %v9089_v26 }
 0x2e9   :  { %1325 = vst.msk [vmem:[#allocation3 + $0x99] sm:$0x1] %vm1049_vm3, %v1249_v49  ;;  %v3319_v49 = vrot.slane %v3227_v1, 7 }
 0x2eb   :  { %v2327_v7 = vpop.permute.xlu0 %2326 }
 0x2ec   :  { %2404 = vst.msk [vmem:[#allocation3 + $0x95] sm:$0x1] %vm1049_vm3, %v2327_v7  ;;  %v2329_v18 = vpop.permute.xlu1 %2328  ;;  %v3229_v7 = vld [vmem:[#allocation4 + $0x10] sm:$0xff] }
 0x2ed   :  { %2405 = vst.msk [vmem:[#allocation3 + $0x9d] sm:$0x1] %vm1049_vm3, %v2329_v18  ;;  %v3479_v18 = vld [vmem:[#allocation9 + $0x60] sm:$0xff] }
 0x2ef   :  { %v1251_v15 = vpop.permute.xlu0 %1250 }
 0x2f0   :  { %1326 = vst.msk [vmem:[#allocation3 + $0xa1] sm:$0x1] %vm1049_vm3, %v1251_v15  ;;  %v1253_v61 = vpop.permute.xlu1 %1252  ;;  %v2962_v15 = vld [vmem:[#allocation3 + $0x20] sm:$0xff] }
 0x2f1   :  { %1327 = vst.msk [vmem:[#allocation3 + $0xa9] sm:$0x1] %vm1049_vm3, %v1253_v61  ;;  %v2965_v61 = vld [vmem:[#allocation3 + $0x38] sm:$0xff] }
 0x2f3   :  { %v2331_v58 = vpop.permute.xlu0 %2330 }
 0x2f4   :  { %2406 = vst.msk [vmem:[#allocation3 + $0xa5] sm:$0x1] %vm1049_vm3, %v2331_v58  ;;  %v2333_v5 = vpop.permute.xlu1 %2332 }
 0x2f5   :  { %2407 = vst.msk [vmem:[#allocation3 + $0xad] sm:$0x1] %vm1049_vm3, %v2333_v5  ;;  %v3320_v5 = vrot.slane %v11389_v62, 7 }
 0x2f7   :  { %v1787_v30 = vpop.permute.xlu0 %1786 }
 0x2f8   :  { %1864 = vst.msk [vmem:[#allocation3 + $0x93] sm:$0x1] %vm1049_vm3, %v1787_v30  ;;  %v1789_v28 = vpop.permute.xlu1 %1788  ;;  %v3383_v30 = vrot.slane %v11389_v62, 1 }
 0x2f9   :  { %1865 = vst.msk [vmem:[#allocation3 + $0x9b] sm:$0x1] %vm1049_vm3, %v1789_v28  ;;  %v3384_v28 = vrot.slane %v3229_v7, 1 }
 0x2fb   :  { %v2867_v11 = vpop.permute.xlu0 %2866 }
 0x2fc   :  { %2944 = vst.msk [vmem:[#allocation3 + $0x97] sm:$0x1] %vm1049_vm3, %v2867_v11  ;;  %v2869_v10 = vpop.permute.xlu1 %2868  ;;  %v3480_v11 = vld [vmem:[#allocation9 + $0x68] sm:$0xff] }
 0x2fd   :  { %2945 = vst.msk [vmem:[#allocation3 + $0x9f] sm:$0x1] %vm1049_vm3, %v2869_v10  ;;  %v11393_v10 = vmax.f32 %v2958_v13, %v2959_v21 }
 0x2ff   :  { %v1791_v48 = vpop.permute.xlu0 %1790 }
 0x300   :  { %1866 = vst.msk [vmem:[#allocation3 + $0xa3] sm:$0x1] %vm1049_vm3, %v1791_v48  ;;  %v1793_v32 = vpop.permute.xlu1 %1792  ;;  %v11395_v48 = vmax.f32 %v2962_v15, %v2963_v2 }
 0x301   :  { %1867 = vst.msk [vmem:[#allocation3 + $0xab] sm:$0x1] %vm1049_vm3, %v1793_v32  ;;  %v11398_v32 = vpack.c.bf16 %v3480_v11, %v3479_v18 }
 0x303   :  { %v2871_v43 = vpop.permute.xlu0 %2870  ;;  %9110 = vmatprep.subr.bf16.mxu0 %v11398_v32  ;;  %v2976_v33 = vld [vmem:[#allocation3 + $0x90] sm:$0xff] }
 0x304   :  { %2946 = vst.msk [vmem:[#allocation3 + $0xa7] sm:$0x1] %vm1049_vm3, %v2871_v43  ;;  %v2873_v31 = vpop.permute.xlu1 %2872  ;;  %v2964_v43 = vld [vmem:[#allocation3 + $0x30] sm:$0xff]  ;;  %v2977_v40 = vld [vmem:[#allocation3 + $0x98] sm:$0xff] }
 0x305   :  { %2947 = vst.msk [vmem:[#allocation3 + $0xaf] sm:$0x1] %vm1049_vm3, %v2873_v31  ;;  %v2967_v31 = vld [vmem:[#allocation3 + $0x48] sm:$0xff]  ;;  %v11439_v24 = vmax.f32 %v2976_v33, %v2977_v40 }
 0x307   :  { %v1255_v29 = vpop.permute.xlu0 %1254 }
 0x308   :  { %1328 = vst.msk [vmem:[#allocation3 + $0xb1] sm:$0x1] %vm1049_vm3, %v1255_v29  ;;  %v1257_v55 = vpop.permute.xlu1 %1256 }
 0x309   :  { %1329 = vst.msk [vmem:[#allocation3 + $0xb9] sm:$0x1] %vm1049_vm3, %v1257_v55  ;;  %v3321_v55 = vsel %vm119_vm2, %v3319_v49, %v3320_v5 }
 0x30a   :  { %8548 = vmatprep.mubr.msk.f32.mxu1 %vm3008_vm4, %v3321_v55 }
 0x30b   :  { %v2335_v45 = vpop.permute.xlu0 %2334  ;;  %v2978_v12 = vld [vmem:[#allocation3 + $0xa0] sm:$0xff] }
 0x30c   :  { %2408 = vst.msk [vmem:[#allocation3 + $0xb5] sm:$0x1] %vm1049_vm3, %v2335_v45  ;;  %v2337_v9 = vpop.permute.xlu1 %2336  ;;  %v3385_v45 = vsel %vm335_vm1, %v3383_v30, %v3384_v28  ;;  %v2979_v23 = vld [vmem:[#allocation3 + $0xa8] sm:$0xff] }
 0x30d   :  { %2409 = vst.msk [vmem:[#allocation3 + $0xbd] sm:$0x1] %vm1049_vm3, %v2337_v9  ;;  %v3010_v9 = vsel %vm3008_vm4, %v11386_v41, 0.0  ;;  %8612 = vmatprep.mubr.msk.f32.mxu0 %vm3008_vm4, %v3385_v45  ;;  %v11444_v49 = vmax.f32 %v2978_v12, %v2979_v23 }
 0x30f   :  { %v1259_v36 = vpop.permute.xlu0 %1258 }
 0x310   :  { %1330 = vst.msk [vmem:[#allocation3 + $0xc1] sm:$0x1] %vm1049_vm3, %v1259_v36  ;;  %v1261_v54 = vpop.permute.xlu1 %1260  ;;  %v11404_v36 = vmax.f32 %v2964_v43, %v2965_v61 }
 0x311   :  { %1331 = vst.msk [vmem:[#allocation3 + $0xc9] sm:$0x1] %vm1049_vm3, %v1261_v54  ;;  %v2966_v54 = vld [vmem:[#allocation3 + $0x40] sm:$0xff] }
 0x313   :  { %v2339_v35 = vpop.permute.xlu0 %2338 }
 0x314   :  { %2410 = vst.msk [vmem:[#allocation3 + $0xc5] sm:$0x1] %vm1049_vm3, %v2339_v35  ;;  %v2341_v57 = vpop.permute.xlu1 %2340  ;;  %v2969_v35 = vld [vmem:[#allocation3 + $0x58] sm:$0xff] }
 0x315   :  { %2411 = vst.msk [vmem:[#allocation3 + $0xcd] sm:$0x1] %vm1049_vm3, %v2341_v57 }
 0x317   :  { %v1795_v44 = vpop.permute.xlu0 %1794 }
 0x318   :  { %1868 = vst.msk [vmem:[#allocation3 + $0xb3] sm:$0x1] %vm1049_vm3, %v1795_v44  ;;  %v1797_v17 = vpop.permute.xlu1 %1796  ;;  %v3009_v44 = vsel %vm3008_vm4, %v11393_v10, 0.0 }
 0x319   :  { %1869 = vst.msk [vmem:[#allocation3 + $0xbb] sm:$0x1] %vm1049_vm3, %v1797_v17  ;;  %v3012_v17 = vsel %vm3008_vm4, %v11395_v48, 0.0 }
 0x31b   :  { %v2875_v14 = vpop.permute.xlu0 %2874 }
 0x31c   :  { %2948 = vst.msk [vmem:[#allocation3 + $0xb7] sm:$0x1] %vm1049_vm3, %v2875_v14  ;;  %v2877_v46 = vpop.permute.xlu1 %2876  ;;  %v11413_v14 = vmax.f32 %v2966_v54, %v2967_v31  ;;  %v3028_v31 = vsel %vm3008_vm4, %v11444_v49, 0.0 }
 0x31d   :  { %2949 = vst.msk [vmem:[#allocation3 + $0xbf] sm:$0x1] %vm1049_vm3, %v2877_v46  ;;  %v3011_v46 = vadd.f32 %v3010_v9, %v3009_v44 }
 0x31f   :  { %v1799_v37 = vpop.permute.xlu0 %1798 }
 0x320   :  { %1870 = vst.msk [vmem:[#allocation3 + $0xc3] sm:$0x1] %vm1049_vm3, %v1799_v37  ;;  %v1801_v59 = vpop.permute.xlu1 %1800  ;;  %v2968_v37 = vld [vmem:[#allocation3 + $0x50] sm:$0xff] }
 0x321   :  { %1871 = vst.msk [vmem:[#allocation3 + $0xcb] sm:$0x1] %vm1049_vm3, %v1801_v59  ;;  %v2971_v59 = vld [vmem:[#allocation3 + $0x68] sm:$0xff] }
 0x323   :  { %v2879_v19 = vpop.permute.xlu0 %2878  ;;  %v2980_v18 = vld [vmem:[#allocation3 + $0xb0] sm:$0xff] }
 0x324   :  { %2950 = vst.msk [vmem:[#allocation3 + $0xc7] sm:$0x1] %vm1049_vm3, %v2879_v19  ;;  %v2881_v42 = vpop.permute.xlu1 %2880  ;;  %v2981_v20 = vld [vmem:[#allocation3 + $0xb8] sm:$0xff] }
 0x325   :  { %2951 = vst.msk [vmem:[#allocation3 + $0xcf] sm:$0x1] %vm1049_vm3, %v2881_v42  ;;  %v3014_v42 = vsel %vm3008_vm4, %v11404_v36, 0.0  ;;  %v11449_v5 = vmax.f32 %v2980_v18, %v2981_v20 }
 0x327   :  { %v1263_v38 = vpop.permute.xlu0 %1262 }
 0x328   :  { %1332 = vst.msk [vmem:[#allocation3 + $0xd1] sm:$0x1] %vm1049_vm3, %v1263_v38  ;;  %v1265_v4 = vpop.permute.xlu1 %1264  ;;  %v11419_v38 = vmax.f32 %v2968_v37, %v2969_v35  ;;  %v3030_v35 = vsel %vm3008_vm4, %v11449_v5, 0.0 }
 0x329   :  { %1333 = vst.msk [vmem:[#allocation3 + $0xd9] sm:$0x1] %vm1049_vm3, %v1265_v4  ;;  %v3013_v4 = vadd.f32 %v3012_v17, %v3011_v46 }
 0x32a   :  { %v3018_v21 = vsel %vm3008_vm4, %v11419_v38, 0.0 }
 0x32b   :  { %v2343_v22 = vpop.permute.xlu0 %2342  ;;  %v2982_v28 = vld [vmem:[#allocation3 + $0xc0] sm:$0xff] }
 0x32c   :  { %2412 = vst.msk [vmem:[#allocation3 + $0xd5] sm:$0x1] %vm1049_vm3, %v2343_v22  ;;  %v2345_v47 = vpop.permute.xlu1 %2344  ;;  %v2970_v22 = vld [vmem:[#allocation3 + $0x60] sm:$0xff]  ;;  %v2983_v15 = vld [vmem:[#allocation3 + $0xc8] sm:$0xff] }
 0x32d   :  { %2413 = vst.msk [vmem:[#allocation3 + $0xdd] sm:$0x1] %vm1049_vm3, %v2345_v47  ;;  %v2973_v47 = vld [vmem:[#allocation3 + $0x78] sm:$0xff] }
 0x32f   :  { %v1267_v39 = vpop.permute.xlu0 %1266 }
 0x330   :  { %1334 = vst.msk [vmem:[#allocation3 + $0xe1] sm:$0x1] %vm1049_vm3, %v1267_v39  ;;  %v1269_v56 = vpop.permute.xlu1 %1268 }
 0x331   :  { %1335 = vst.msk [vmem:[#allocation3 + $0xe9] sm:$0x1] %vm1049_vm3, %v1269_v56  ;;  %v3016_v56 = vsel %vm3008_vm4, %v11413_v14, 0.0 }
 0x333   :  { %v2347_v51 = vpop.permute.xlu0 %2346 }
 0x334   :  { %2414 = vst.msk [vmem:[#allocation3 + $0xe5] sm:$0x1] %vm1049_vm3, %v2347_v51  ;;  %v2349_v25 = vpop.permute.xlu1 %2348  ;;  %v11424_v51 = vmax.f32 %v2970_v22, %v2971_v59 }
 0x335   :  { %2415 = vst.msk [vmem:[#allocation3 + $0xed] sm:$0x1] %vm1049_vm3, %v2349_v25  ;;  %v3015_v25 = vadd.f32 %v3014_v42, %v3013_v4 }
 0x336   :  { %v3020_v34 = vsel %vm3008_vm4, %v11424_v51, 0.0 }
 0x337   :  { %v1803_v63 = vpop.permute.xlu0 %1802  ;;  %v3017_v2 = vadd.f32 %v3016_v56, %v3015_v25  ;;  %v3471_v25 = vld [vmem:[#allocation9 + $0x20] sm:$0xff] }
 0x338   :  { %1872 = vst.msk [vmem:[#allocation3 + $0xd3] sm:$0x1] %vm1049_vm3, %v1803_v63  ;;  %v1805_v60 = vpop.permute.xlu1 %1804  ;;  %v2972_v63 = vld [vmem:[#allocation3 + $0x70] sm:$0xff] }
 0x339   :  { %1873 = vst.msk [vmem:[#allocation3 + $0xdb] sm:$0x1] %vm1049_vm3, %v1805_v60  ;;  %v2975_v60 = vld [vmem:[#allocation3 + $0x88] sm:$0xff]  ;;  %v11429_v27 = vmax.f32 %v2972_v63, %v2973_v47  ;;  %v3019_v16 = vadd.f32 %v3018_v21, %v3017_v2 }
 0x33a   :  { %v3472_v63 = vld [vmem:[#allocation9 + $0x28] sm:$0xff] }
 0x33b   :  { %v2883_v52 = vpop.permute.xlu0 %2882  ;;  %v3021_v0 = vadd.f32 %v3020_v34, %v3019_v16 }
 0x33c   :  { %2952 = vst.msk [vmem:[#allocation3 + $0xd7] sm:$0x1] %vm1049_vm3, %v2883_v52  ;;  %v2885_v53 = vpop.permute.xlu1 %2884  ;;  %v2974_v52 = vld [vmem:[#allocation3 + $0x80] sm:$0xff] }
 0x33d   :  { %2953 = vst.msk [vmem:[#allocation3 + $0xdf] sm:$0x1] %vm1049_vm3, %v2885_v53  ;;  %v11434_v3 = vmax.f32 %v2974_v52, %v2975_v60  ;;  %v3022_v53 = vsel %vm3008_vm4, %v11429_v27, 0.0 }
 0x33e   :  { %v3023_v7 = vadd.f32 %v3022_v53, %v3021_v0 }
 0x33f   :  { %v1807_v58 = vpop.permute.xlu0 %1806  ;;  %v3024_v26 = vsel %vm3008_vm4, %v11434_v3, 0.0 }
 0x340   :  { %1874 = vst.msk [vmem:[#allocation3 + $0xe3] sm:$0x1] %vm1049_vm3, %v1807_v58  ;;  %v1809_v29 = vpop.permute.xlu1 %1808  ;;  %v3026_v58 = vsel %vm3008_vm4, %v11439_v24, 0.0  ;;  %v3025_v30 = vadd.f32 %v3024_v26, %v3023_v7 }
 0x341   :  { %1875 = vst.msk [vmem:[#allocation3 + $0xeb] sm:$0x1] %vm1049_vm3, %v1809_v29  ;;  %v11454_v29 = vmax.f32 %v2982_v28, %v2983_v15 }
 0x342   :  { %v3027_v55 = vadd.f32 %v3026_v58, %v3025_v30 }
 0x343   :  { %v2887_v57 = vpop.permute.xlu0 %2886  ;;  %v2984_v45 = vld [vmem:[#allocation3 + $0xd0] sm:$0xff]  ;;  %v3032_v46 = vsel %vm3008_vm4, %v11454_v29, 0.0 }
 0x344   :  { %2954 = vst.msk [vmem:[#allocation3 + $0xe7] sm:$0x1] %vm1049_vm3, %v2887_v57  ;;  %v2889_v19 = vpop.permute.xlu1 %2888  ;;  %v2985_v11 = vld [vmem:[#allocation3 + $0xd8] sm:$0xff]  ;;  %v3029_v44 = vadd.f32 %v3028_v31, %v3027_v55 }
 0x345   :  { %2955 = vst.msk [vmem:[#allocation3 + $0xef] sm:$0x1] %vm1049_vm3, %v2889_v19  ;;  %v11459_v57 = vmax.f32 %v2984_v45, %v2985_v11 }
 0x346   :  { %v3031_v59 = vadd.f32 %v3030_v35, %v3029_v44 }
 0x347   :  { %v1271_v39 = vpop.permute.xlu0 %1270  ;;  %v3034_v19 = vsel %vm3008_vm4, %v11459_v57, 0.0 }
 0x348   :  { %1336 = vst.msk [vmem:[#allocation3 + $0xf1] sm:$0x1] %vm1049_vm3, %v1271_v39  ;;  %v1273_v6 = vpop.permute.xlu1 %1272  ;;  %v3033_v42 = vadd.f32 %v3032_v46, %v3031_v59 }
 0x349   :  { %1337 = vst.msk [vmem:[#allocation3 + $0xf9] sm:$0x1] %vm1049_vm3, %v1273_v6  ;;  %v11472_v6 = vpack.c.bf16 %v3472_v63, %v3471_v25 }
 0x34a   :  { %v3035_v22 = vadd.f32 %v3034_v19, %v3033_v42 }
 0x34b   :  { %v2351_v50 = vpop.permute.xlu0 %2350  ;;  %v2986_v17 = vld [vmem:[#allocation3 + $0xe0] sm:$0xff]  ;;  %9094 = vmatprep.subr.bf16.mxu1 %v11472_v6 }
 0x34c   :  { %2416 = vst.msk [vmem:[#allocation3 + $0xf5] sm:$0x1] %vm1049_vm3, %v2351_v50  ;;  %v2353_v13 = vpop.permute.xlu1 %2352  ;;  %v2987_v9 = vld [vmem:[#allocation3 + $0xe8] sm:$0xff] }
 0x34d   :  { %2417 = vst.msk [vmem:[#allocation3 + $0xfd] sm:$0x1] %vm1049_vm3, %v2353_v13  ;;  %v11464_v37 = vmax.f32 %v2986_v17, %v2987_v9 }
 0x34f   :  { %v1811_v1 = vpop.permute.xlu0 %1810  ;;  %v3036_v4 = vsel %vm3008_vm4, %v11464_v37, 0.0 }
 0x350   :  { %1876 = vst.msk [vmem:[#allocation3 + $0xf3] sm:$0x1] %vm1049_vm3, %v1811_v1  ;;  %v1813_v61 = vpop.permute.xlu1 %1812  ;;  %v3037_v60 = vadd.f32 %v3036_v4, %v3035_v22 }
 0x351   :  { %1877 = vst.msk [vmem:[#allocation3 + $0xfb] sm:$0x1] %vm1049_vm3, %v1813_v61 }
 0x353   :  { %v2891_v43 = vpop.permute.xlu0 %2890 }
 0x354   :  { %2956 = vst.msk [vmem:[#allocation3 + $0xf7] sm:$0x1] %vm1049_vm3, %v2891_v43  ;;  %v2893_v54 = vpop.permute.xlu1 %2892 }
 0x355   :  { %2957 = vst.msk [vmem:[#allocation3 + $0xff] sm:$0x1] %vm1049_vm3, %v2893_v54  ;;  %vm7827_vm3 = vcmask 1043456  }
 0x35b   :  { %v2988_v47 = vld [vmem:[#allocation3 + $0xf0] sm:$0xff] }
 0x35c   :  { %v2989_v39 = vld [vmem:[#allocation3 + $0xf8] sm:$0xff] }
 0x35d   :  { %v11470_v56 = vmax.f32 %v2988_v47, %v2989_v39 }
 0x35f   :  { %v3038_v21 = vsel %vm3008_vm4, %v11470_v56, 0.0 }
 0x360   :  { %v3039_v2 = vadd.f32 %v3038_v21, %v3037_v60 }
 0x362   :  { %v3040_v52 = vrot.slane %v3039_v2, 4 }
 0x364   :  { %v3041_v40 = vadd.f32 %v3040_v52, %v3039_v2 }
 0x366   :  { %v3042_v50 = vrot.slane %v3041_v40, 2 }
 0x368   :  { %v3043_v34 = vadd.f32 %v3042_v50, %v3041_v40 }
 0x36a   :  { %v3044_v16 = vrot.slane %v3043_v34, 1 }
 0x36c   :  { %v3045_v33 = vadd.f32 %v3044_v16, %v3043_v34 }
 0x36e   :  { %v3046_v23 = vmul.f32 0.0078125, %v3045_v33 }
 0x370   :  { %v11478_v13 = vsub.f32 %v11393_v10, %v3046_v23  ;;  %v11481_v53 = vsub.f32 %v11386_v41, %v3046_v23  ;;  %v11484_v0 = vsub.f32 %v11395_v48, %v3046_v23  ;;  %v11487_v12 = vsub.f32 %v11404_v36, %v3046_v23 }
 0x371   :  { %v11494_v26 = vsub.f32 %v11413_v14, %v3046_v23  ;;  %v11499_v41 = vsub.f32 %v11419_v38, %v3046_v23  ;;  %v11506_v15 = vsub.f32 %v11424_v51, %v3046_v23  ;;  %v11512_v38 = vsub.f32 %v11429_v27, %v3046_v23 }
 0x372   :  { %v3063_v20 = vmul.f32 %v11478_v13, %v11478_v13  ;;  %v3064_v1 = vmul.f32 %v11481_v53, %v11481_v53  ;;  %v3065_v10 = vmul.f32 %v11484_v0, %v11484_v0  ;;  %v3066_v48 = vmul.f32 %v11487_v12, %v11487_v12 }
 0x373   :  { %v3067_v14 = vmul.f32 %v11494_v26, %v11494_v26  ;;  %v3068_v30 = vmul.f32 %v11499_v41, %v11499_v41  ;;  %v11518_v43 = vsub.f32 %v11434_v3, %v3046_v23  ;;  %v3069_v51 = vmul.f32 %v11506_v15, %v11506_v15 }
 0x374   :  { %v3079_v36 = vsel %vm3008_vm4, %v3063_v20, 0.0  ;;  %v3080_v7 = vsel %vm3008_vm4, %v3064_v1, 0.0  ;;  %v3082_v61 = vsel %vm3008_vm4, %v3065_v10, 0.0  ;;  %v3084_v28 = vsel %vm3008_vm4, %v3066_v48, 0.0 }
 0x375   :  { %v3081_v18 = vadd.f32 %v3080_v7, %v3079_v36  ;;  %v3086_v31 = vsel %vm3008_vm4, %v3067_v14, 0.0  ;;  %v11524_v45 = vsub.f32 %v11439_v24, %v3046_v23  ;;  %v3070_v27 = vmul.f32 %v11512_v38, %v11512_v38 }
 0x376   :  { %v3088_v9 = vsel %vm3008_vm4, %v3068_v30, 0.0  ;;  %v11530_v35 = vsub.f32 %v11444_v49, %v3046_v23  ;;  %v3071_v3 = vmul.f32 %v11518_v43, %v11518_v43  ;;  %v3090_v44 = vsel %vm3008_vm4, %v3069_v51, 0.0 }
 0x377   :  { %v3083_v58 = vadd.f32 %v3082_v61, %v3081_v18  ;;  %v11536_v46 = vsub.f32 %v11449_v5, %v3046_v23  ;;  %v3072_v24 = vmul.f32 %v11524_v45, %v11524_v45  ;;  %v3092_v59 = vsel %vm3008_vm4, %v3070_v27, 0.0 }
 0x378   :  { %v11542_v42 = vsub.f32 %v11454_v29, %v3046_v23  ;;  %v3073_v49 = vmul.f32 %v11530_v35, %v11530_v35  ;;  %v3094_v4 = vsel %vm3008_vm4, %v3071_v3, 0.0  ;;  %v11548_v47 = vsub.f32 %v11459_v57, %v3046_v23 }
 0x379   :  { %v3085_v11 = vadd.f32 %v3084_v28, %v3083_v58  ;;  %v3074_v5 = vmul.f32 %v11536_v46, %v11536_v46  ;;  %v3096_v39 = vsel %vm3008_vm4, %v3072_v24, 0.0  ;;  %v3061_v63 = vsub.f32 %v11464_v37, %v3046_v23  ;;  %v3006_v28 = vld [vmem:[%s13277_s3] sm:$0x1] }
 0x37a   :  { %v3075_v29 = vmul.f32 %v11542_v42, %v11542_v42  ;;  %v3098_v60 = vsel %vm3008_vm4, %v3073_v49, 0.0  ;;  %v3062_v2 = vsub.f32 %v11470_v56, %v3046_v23  ;;  %v3076_v57 = vmul.f32 %v11548_v47, %v11548_v47 }
 0x37b   :  { %v3087_v55 = vadd.f32 %v3086_v31, %v3085_v11  ;;  %v3100_v52 = vsel %vm3008_vm4, %v3074_v5, 0.0  ;;  %v3077_v50 = vmul.f32 %v3061_v63, %v3061_v63 }
 0x37c   :  { %v3102_v34 = vsel %vm3008_vm4, %v3075_v29, 0.0  ;;  %v3078_v33 = vmul.f32 %v3062_v2, %v3062_v2  ;;  %v3104_v37 = vsel %vm3008_vm4, %v3076_v57, 0.0  ;;  %v3233_v57 = vld [vmem:[#allocation4 + $0x30] sm:$0xff] }
 0x37d   :  { %v3089_v54 = vadd.f32 %v3088_v9, %v3087_v55  ;;  %v3106_v1 = vsel %vm3008_vm4, %v3077_v50, 0.0  ;;  %v7985_v55 = vld [vmem:[%s13278_s4] ss:$0 sm:$0xff] }
 0x37e   :  { %v3108_v48 = vsel %vm3008_vm4, %v3078_v33, 0.0  ;;  %v3325_v33 = vrot.slane %v3233_v57, 7  ;;  %v3259_v57 = vld [vmem:[#allocation4 + $0x100] sm:$0xff] }
 0x37f   :  { %v3091_v17 = vadd.f32 %v3090_v44, %v3089_v54 }
 0x381   :  { %v3093_v19 = vadd.f32 %v3092_v59, %v3091_v17 }
 0x383   :  { %v3095_v22 = vadd.f32 %v3094_v4, %v3093_v19 }
 0x385   :  { %v3097_v25 = vadd.f32 %v3096_v39, %v3095_v22 }
 0x387   :  { %v3099_v21 = vadd.f32 %v3098_v60, %v3097_v25 }
 0x389   :  { %v3101_v40 = vadd.f32 %v3100_v52, %v3099_v21  ;;  %v3235_v52 = vld [vmem:[#allocation4 + $0x40] sm:$0xff] }
 0x38b   :  { %v3103_v16 = vadd.f32 %v3102_v34, %v3101_v40 }
 0x38d   :  { %v3105_v20 = vadd.f32 %v3104_v37, %v3103_v16  ;;  %v3238_v16 = vld [vmem:[#allocation4 + $0x58] sm:$0xff]  ;;  %v3390_v37 = vrot.slane %v3235_v52, 1 }
 0x38f   :  { %v3107_v10 = vadd.f32 %v3106_v1, %v3105_v20  ;;  %v3239_v20 = vld [vmem:[#allocation4 + $0x60] sm:$0xff]  ;;  %v3241_v1 = vld [vmem:[#allocation4 + $0x70] sm:$0xff] }
 0x391   :  { %v3109_v56 = vadd.f32 %v3108_v48, %v3107_v10  ;;  %v3481_v10 = vld [vmem:[#allocation9 + $0x70] sm:$0xff]  ;;  %v3482_v48 = vld [vmem:[#allocation9 + $0x78] sm:$0xff] }
 0x393   :  { %v3110_v23 = vrot.slane %v3109_v56, 4 }
 0x395   :  { %v3111_v36 = vadd.f32 %v3110_v23, %v3109_v56 }
 0x397   :  { %v3112_v7 = vrot.slane %v3111_v36, 2 }
 0x399   :  { %v3113_v18 = vadd.f32 %v3112_v7, %v3111_v36  ;;  %v11609_v7 = vld [vmem:[#allocation4 + $0x78] sm:$0xff] }
 0x39b   :  { %v3114_v14 = vrot.slane %v3113_v18, 1 }
 0x39d   :  { %v3115_v61 = vadd.f32 %v3114_v14, %v3113_v18  ;;  %v11611_v18 = vld [vmem:[#allocation4 + $0x88] sm:$0xff] }
 0x39f   :  { %v3116_v58 = vmul.f32 0.0078125, %v3115_v61 }
 0x3a1   :  { %v3117_v30 = vadd.f32 1e-05, %v3116_v58 }
 0x3a3   :  { %9558 = vrsqrt.f32 %v3117_v30 }
 0x3ad   :  { %v9559_v11 = vpop.eup %9558 }
 0x3ae   :  { %v3119_v51 = vmul.f32 %v9559_v11, %v3006_v28 }
 0x3b0   :  { %v3124_v31 = vrot.slane %v3119_v51, %v9902_v8 }
 0x3b2   :  { %v3140_v27 = vmul.f32 %v3124_v31, %v3061_v63  ;;  %v3141_v9 = vmul.f32 %v3124_v31, %v3062_v2  ;;  %v3126_v54 = vmul.f32 %v3124_v31, %v11478_v13  ;;  %v3127_v3 = vmul.f32 %v3124_v31, %v11481_v53  ;;  %v3232_v2 = vld [vmem:[#allocation4 + $0x28] sm:$0xff] }
 0x3b3   :  { %v3128_v44 = vmul.f32 %v3124_v31, %v11484_v0  ;;  %v3129_v17 = vmul.f32 %v3124_v31, %v11487_v12  ;;  %v3130_v24 = vmul.f32 %v3124_v31, %v11494_v26  ;;  %v3131_v59 = vmul.f32 %v3124_v31, %v11499_v41 }
 0x3b4   :  { %v3163_v19 = vadd.f32 %v7985_v55, %v3141_v9  ;;  %v3148_v49 = vadd.f32 %v7985_v55, %v3126_v54  ;;  %v3149_v4 = vadd.f32 %v7985_v55, %v3127_v3  ;;  %v3132_v22 = vmul.f32 %v3124_v31, %v11506_v15  ;;  %v11625_v9 = vld [vmem:[#allocation4 + $0xa0] sm:$0xff]  ;;  %v3473_v3 = vld [vmem:[#allocation9 + $0x30] sm:$0xff] }
 0x3b5   :  { %v3150_v5 = vadd.f32 %v7985_v55, %v3128_v44  ;;  %v3151_v39 = vadd.f32 %v7985_v55, %v3129_v17  ;;  %v3152_v25 = vadd.f32 %v7985_v55, %v3130_v24  ;;  %v3153_v63 = vadd.f32 %v7985_v55, %v3131_v59 }
 0x3b6   :  { %3226 = vst.msk [vmem:[#allocation4 + $0x1b8] sm:$0xff] %vm3008_vm4, %v3163_v19  ;;  %3211 = vst.msk [vmem:[#allocation4 + $0x20] sm:$0xff] %vm3008_vm4, %v3148_v49  ;;  %v3154_v13 = vadd.f32 %v7985_v55, %v3132_v22  ;;  %v3134_v53 = vmul.f32 %v3124_v31, %v11518_v43  ;;  %v3135_v0 = vmul.f32 %v3124_v31, %v11524_v45  ;;  %v3230_v43 = vld [vmem:[#allocation4 + $0x18] sm:$0xff]  ;;  %v3483_v49 = vld [vmem:[#allocation9 + $0x80] sm:$0xff]  ;;  %v3331_v22 = vrot.slane %v3239_v20, 7 }
 0x3b7   :  { %3212 = vst.msk [vmem:[#allocation4 + $0x38] sm:$0xff] %vm3008_vm4, %v3149_v4  ;;  %v3136_v12 = vmul.f32 %v3124_v31, %v11530_v35  ;;  %3213 = vst.msk [vmem:[#allocation4 + $0x50] sm:$0xff] %vm3008_vm4, %v3150_v5  ;;  %v3137_v26 = vmul.f32 %v3124_v31, %v11536_v46  ;;  %v3138_v41 = vmul.f32 %v3124_v31, %v11542_v42  ;;  %v11595_v46 = vld [vmem:[#allocation4 + $0x48] sm:$0xff]  ;;  %v3474_v19 = vld [vmem:[#allocation9 + $0x38] sm:$0xff] }
 0x3b8   :  { %3214 = vst.msk [vmem:[#allocation4 + $0x68] sm:$0xff] %vm3008_vm4, %v3151_v39  ;;  %3215 = vst.msk [vmem:[#allocation4 + $0x80] sm:$0xff] %vm3008_vm4, %v3152_v25  ;;  %v3139_v15 = vmul.f32 %v3124_v31, %v11548_v47  ;;  %v3162_v29 = vadd.f32 %v7985_v55, %v3140_v27  ;;  %v3156_v45 = vadd.f32 %v7985_v55, %v3134_v53  ;;  %v3322_v47 = vrot.slane %v3230_v43, 7  ;;  %v11623_v27 = vld [vmem:[#allocation4 + $0x90] sm:$0xff]  ;;  %v3484_v4 = vld [vmem:[#allocation9 + $0x88] sm:$0xff] }
 0x3b9   :  { %3216 = vst.msk [vmem:[#allocation4 + $0x98] sm:$0xff] %vm3008_vm4, %v3153_v63  ;;  %3217 = vst.msk [vmem:[#allocation4 + $0xb0] sm:$0xff] %vm3008_vm4, %v3154_v13  ;;  %v3157_v35 = vadd.f32 %v7985_v55, %v3135_v0  ;;  %v3158_v60 = vadd.f32 %v7985_v55, %v3136_v12  ;;  %v3133_v21 = vmul.f32 %v3124_v31, %v11512_v38  ;;  %v3387_v38 = vrot.slane %v3232_v2, 1  ;;  %v11668_v2 = vld [vmem:[#allocation4 + $0xf8] sm:$0xff] }
 0x3ba   :  { %v3159_v40 = vadd.f32 %v7985_v55, %v3137_v26  ;;  %v3160_v50 = vadd.f32 %v7985_v55, %v3138_v41  ;;  %v3161_v34 = vadd.f32 %v7985_v55, %v3139_v15  ;;  %3225 = vst.msk [vmem:[#allocation4 + $0x1a0] sm:$0xff] %vm3008_vm4, %v3162_v29  ;;  %3219 = vst.msk [vmem:[#allocation4 + $0x110] sm:$0xff] %vm3008_vm4, %v3156_v45  ;;  %v3328_v36 = vrot.slane %v11595_v46, 7  ;;  %v3248_v41 = vld [vmem:[#allocation4 + $0xa8] sm:$0xff]  ;;  %v3250_v15 = vld [vmem:[#allocation4 + $0xb8] sm:$0xff] }
 0x3bb   :  { %3220 = vst.msk [vmem:[#allocation4 + $0x128] sm:$0xff] %vm3008_vm4, %v3157_v35  ;;  %3221 = vst.msk [vmem:[#allocation4 + $0x140] sm:$0xff] %vm3008_vm4, %v3158_v60  ;;  %v3155_v42 = vadd.f32 %v7985_v55, %v3133_v21  ;;  %v3393_v55 = vrot.slane %v3238_v16, 1  ;;  %v9113_v54 = vpack.c.bf16 %v3482_v48, %v3481_v10  ;;  %v3396_v25 = vrot.slane %v3241_v1, 1  ;;  %v3257_v21 = vld [vmem:[#allocation4 + $0xf0] sm:$0xff]  ;;  %v3260_v48 = vld [vmem:[#allocation4 + $0x108] sm:$0xff] }
 0x3bc   :  { %3222 = vst.msk [vmem:[#allocation4 + $0x158] sm:$0xff] %vm3008_vm4, %v3159_v40  ;;  %3223 = vst.msk [vmem:[#allocation4 + $0x170] sm:$0xff] %vm3008_vm4, %v3160_v50  ;;  %v3334_v13 = vrot.slane %v11609_v7, 7  ;;  %v3399_v53 = vrot.slane %v11611_v18, 1  ;;  %v3337_v12 = vrot.slane %v11623_v27, 7  ;;  %v3402_v26 = vrot.slane %v11625_v9, 1 }
 0x3bd   :  { %3224 = vst.msk [vmem:[#allocation4 + $0x188] sm:$0xff] %vm3008_vm4, %v3161_v34  ;;  %3218 = vst.msk [vmem:[#allocation4 + $0xc8] sm:$0xff] %vm3008_vm4, %v3155_v42  ;;  %v11604_v56 = vld [vmem:[#allocation4 + $0x20] sm:$0xff]  ;;  %v11658_v29 = vpack.c.bf16 %v3484_v4, %v3483_v49  ;;  %v3405_v42 = vrot.slane %v3250_v15, 1  ;;  %v3344_v16 = vrot.slane %v11668_v2, 7  ;;  %v3266_v9 = vld [vmem:[#allocation4 + $0x138] sm:$0xff] }
 0x3be   :  { %v11606_v23 = vld [vmem:[#allocation4 + $0x38] sm:$0xff]  ;;  %v3323_v14 = vrot.slane %v11604_v56, 7  ;;  %v3386_v61 = vrot.slane %v11604_v56, 1  ;;  %v11617_v28 = vld [vmem:[#allocation4 + $0x50] sm:$0xff]  ;;  %v3268_v4 = vld [vmem:[#allocation4 + $0x148] sm:$0xff] }
 0x3bf   :  { %v3326_v58 = vrot.slane %v11606_v23, 7  ;;  %v3389_v30 = vrot.slane %v11606_v23, 1  ;;  %v11619_v11 = vld [vmem:[#allocation4 + $0x68] sm:$0xff]  ;;  %v3329_v51 = vrot.slane %v11617_v28, 7  ;;  %v3392_v31 = vrot.slane %v11617_v28, 1  ;;  %v11645_v63 = vld [vmem:[#allocation4 + $0x80] sm:$0xff] }
 0x3c0   :  { %v11628_v44 = vsel %vm119_vm2, %v3322_v47, %v3323_v14  ;;  %v11631_v17 = vsel %vm335_vm1, %v3386_v61, %v3387_v38  ;;  %v3332_v5 = vrot.slane %v11619_v11, 7  ;;  %v3395_v39 = vrot.slane %v11619_v11, 1  ;;  %v11652_v0 = vld [vmem:[#allocation4 + $0x98] sm:$0xff]  ;;  %v11683_v46 = vld [vmem:[#allocation4 + $0xb0] sm:$0xff]  ;;  %v3263_v61 = vld [vmem:[#allocation4 + $0x120] sm:$0xff] }
 0x3c1   :  { %v11634_v24 = vsel %vm119_vm2, %v3325_v33, %v3326_v58  ;;  %v11637_v59 = vsel %vm335_vm1, %v3389_v30, %v3390_v37  ;;  %8549 = vmatmul.mubr.msk.f32.vlgmr.msra.gmra.mrb[8].mxu1 %vm3008_vm4, %v11628_v44  ;;  %8613 = vmatmul.mubr.msk.f32.vlgmr.msra.gmra.mrb[8].mxu0 %vm3008_vm4, %v11631_v17  ;;  %v11661_v43 = vsel %vm119_vm2, %v3328_v36, %v3329_v51  ;;  %v3335_v35 = vrot.slane %v11645_v63, 7  ;;  %v3262_v36 = vld [vmem:[#allocation4 + $0x118] sm:$0xff]  ;;  %v11710_v14 = vld [vmem:[#allocation4 + $0x110] sm:$0xff] }
 0x3c2   :  { %9112 = vmatpush3.bf16.msra.mxu0 %v11398_v32  ;;  %8551 = vmatprep.mubr.msk.f32.mxu1 %vm3008_vm4, %v11634_v24  ;;  %v9097_v32 = vpack.c.bf16 %v3474_v19, %v3473_v3  ;;  %v11664_v45 = vsel %vm335_vm1, %v3392_v31, %v3393_v55  ;;  %v3398_v60 = vrot.slane %v11645_v63, 1  ;;  %v11676_v52 = vsel %vm119_vm2, %v3331_v22, %v3332_v5  ;;  %v11716_v58 = vld [vmem:[#allocation4 + $0x128] sm:$0xff]  ;;  %v3265_v30 = vld [vmem:[#allocation4 + $0x130] sm:$0xff]  ;;  %v3271_v5 = vld [vmem:[#allocation4 + $0x160] sm:$0xff] }
 0x3c3   :  { %8615 = vmatprep.mubr.msk.f32.mxu0 %vm3008_vm4, %v11637_v59  ;;  %9114 = vmatprep.subr.bf16.mxu0 %v9113_v54  ;;  %v11679_v40 = vsel %vm335_vm1, %v3395_v39, %v3396_v25  ;;  %v3338_v50 = vrot.slane %v11652_v0, 7  ;;  %v3401_v34 = vrot.slane %v11652_v0, 1  ;;  %v3343_v47 = vrot.slane %v3257_v21, 7  ;;  %v3269_v22 = vld [vmem:[#allocation4 + $0x150] sm:$0xff] }
 0x3c4   :  { %9096 = vmatpush3.bf16.msra.mxu1 %v11472_v6  ;;  %v3340_v6 = vrot.slane %v3248_v41, 7  ;;  %v3407_v38 = vrot.slane %v11668_v2, 1  ;;  %v3408_v33 = vrot.slane %v3259_v57, 1  ;;  %v11692_v37 = vsel %vm119_vm2, %v3334_v13, %v3335_v35 }
 0x3c5   :  { %8552 = vmatmul.mubr.msk.f32.gmra.mrb[10].mxu1 %vm3008_vm4, %v11661_v43  ;;  %8616 = vmatmul.mubr.msk.f32.gmra.mrb[10].mxu0 %vm3008_vm4, %v11664_v45  ;;  %v11695_v20 = vsel %vm335_vm1, %v3398_v60, %v3399_v53  ;;  %v3341_v1 = vrot.slane %v11683_v46, 7  ;;  %v3404_v10 = vrot.slane %v11683_v46, 1  ;;  %v11705_v7 = vsel %vm119_vm2, %v3337_v12, %v3338_v50  ;;  %v11734_v12 = vld [vmem:[#allocation4 + $0x140] sm:$0xff]  ;;  %v3272_v60 = vld [vmem:[#allocation4 + $0x168] sm:$0xff] }
 0x3c6   :  { %8554 = vmatprep.mubr.msk.f32.mxu1 %vm3008_vm4, %v11676_v52  ;;  %8618 = vmatprep.mubr.msk.f32.mxu0 %vm3008_vm4, %v11679_v40  ;;  %v11708_v18 = vsel %vm335_vm1, %v3401_v34, %v3402_v26  ;;  %v3345_v51 = vsel %vm119_vm2, %v3343_v47, %v3344_v16  ;;  %v3409_v31 = vsel %vm335_vm1, %v3407_v38, %v3408_v33  ;;  %v3346_v55 = vrot.slane %v3260_v48, 7  ;;  %v11738_v26 = vld [vmem:[#allocation4 + $0x158] sm:$0xff]  ;;  %v3277_v47 = vld [vmem:[#allocation4 + $0x190] sm:$0xff]  ;;  %v11766_v48 = vld [vmem:[#allocation4 + $0x188] sm:$0xff] }
 0x3c7   :  { %9116 = vmatpush3.bf16.msra.mxu0 %v9113_v54  ;;  %9098 = vmatprep.subr.bf16.mxu1 %v9097_v32  ;;  %v3411_v27 = vrot.slane %v3262_v36, 1  ;;  %v11721_v54 = vsel %vm119_vm2, %v3340_v6, %v3341_v1  ;;  %v11724_v3 = vsel %vm335_vm1, %v3404_v10, %v3405_v42  ;;  %v3347_v19 = vrot.slane %v11710_v14, 7  ;;  %v3274_v6 = vld [vmem:[#allocation4 + $0x178] sm:$0xff]  ;;  %v3275_v42 = vld [vmem:[#allocation4 + $0x180] sm:$0xff]  ;;  %v11760_v10 = vld [vmem:[#allocation4 + $0x170] sm:$0xff] }
 0x3c8   :  { %9100 = vmatpush3.bf16.msra.mxu1 %v9097_v32  ;;  %9118 = vmatprep.subr.bf16.mxu0 %v11658_v29  ;;  %v3410_v49 = vrot.slane %v11710_v14, 1  ;;  %v3349_v39 = vrot.slane %v3263_v61, 7  ;;  %v3350_v25 = vrot.slane %v11716_v58, 7  ;;  %v3413_v13 = vrot.slane %v11716_v58, 1 }
 0x3c9   :  { %8555 = vmatmul.mubr.msk.f32.gmra.mrb[12].mxu1 %vm3008_vm4, %v11692_v37  ;;  %8619 = vmatmul.mubr.msk.f32.gmra.mrb[12].mxu0 %vm3008_vm4, %v11695_v20  ;;  %v3414_v53 = vrot.slane %v3265_v30, 1  ;;  %v3352_v41 = vrot.slane %v3266_v9, 7  ;;  %v3417_v15 = vrot.slane %v3268_v4, 1  ;;  %v3355_v32 = vrot.slane %v3269_v22, 7 }
 0x3ca   :  { %8557 = vmatprep.mubr.msk.f32.mxu1 %vm3008_vm4, %v11705_v7  ;;  %8621 = vmatprep.mubr.msk.f32.mxu0 %vm3008_vm4, %v11708_v18  ;;  %v3420_v35 = vrot.slane %v3271_v5, 1  ;;  %v11741_v21 = vsel %vm119_vm2, %v3346_v55, %v3347_v19  ;;  %v11744_v57 = vsel %vm335_vm1, %v3410_v49, %v3411_v27  ;;  %v3353_v50 = vrot.slane %v11734_v12, 7  ;;  %v3278_v19 = vld [vmem:[#allocation4 + $0x198] sm:$0xff]  ;;  %v3280_v49 = vld [vmem:[#allocation4 + $0x1a8] sm:$0xff] }
 0x3cb   :  { %v3416_v34 = vrot.slane %v11734_v12, 1  ;;  %v11753_v16 = vsel %vm119_vm2, %v3349_v39, %v3350_v25  ;;  %v11756_v38 = vsel %vm335_vm1, %v3413_v13, %v3414_v53  ;;  %v3356_v33 = vrot.slane %v11738_v26, 7  ;;  %v11788_v25 = vld [vmem:[#allocation4 + $0x1a0] sm:$0xff] }
 0x3cc   :  { %v3419_v1 = vrot.slane %v11738_v26, 1  ;;  %v3358_v36 = vrot.slane %v3272_v60, 7  ;;  %v3423_v61 = vrot.slane %v3274_v6, 1  ;;  %v3361_v30 = vrot.slane %v3275_v42, 7  ;;  %v3485_v42 = vld [vmem:[#allocation9 + $0x90] sm:$0xff] }
 0x3cd   :  { %8558 = vmatmul.mubr.msk.f32.gmra.mrb[14].mxu1 %vm3008_vm4, %v11721_v54  ;;  %8622 = vmatmul.mubr.msk.f32.gmra.mrb[14].mxu0 %vm3008_vm4, %v11724_v3  ;;  %v11772_v55 = vsel %vm335_vm1, %v3416_v34, %v3417_v15  ;;  %v3359_v27 = vrot.slane %v11760_v10, 7  ;;  %v3422_v9 = vrot.slane %v11760_v10, 1  ;;  %v11781_v4 = vsel %vm119_vm2, %v3355_v32, %v3356_v33 }
 0x3ce   :  { %8560 = vmatprep.mubr.msk.f32.mxu1 %vm3008_vm4, %v3345_v51  ;;  %8624 = vmatprep.mubr.msk.f32.mxu0 %vm3008_vm4, %v3409_v31  ;;  %v3426_v51 = vrot.slane %v3277_v47, 1  ;;  %v11769_v31 = vsel %vm119_vm2, %v3352_v41, %v3353_v50  ;;  %v11784_v22 = vsel %vm335_vm1, %v3419_v1, %v3420_v35  ;;  %v3362_v5 = vrot.slane %v11766_v48, 7  ;;  %v3486_v47 = vld [vmem:[#allocation9 + $0x98] sm:$0xff]  ;;  %v3487_v1 = vld [vmem:[#allocation9 + $0xa0] sm:$0xff] }
 0x3cf   :  { %v3425_v39 = vrot.slane %v11766_v48, 1  ;;  %v3364_v13 = vrot.slane %v3278_v19, 7  ;;  %v3429_v53 = vrot.slane %v3280_v49, 1  ;;  %v11795_v41 = vsel %vm119_vm2, %v3358_v36, %v3359_v27  ;;  %v3488_v36 = vld [vmem:[#allocation9 + $0xa8] sm:$0xff]  ;;  %v3489_v49 = vld [vmem:[#allocation9 + $0xb0] sm:$0xff] }
 0x3d0   :  { %v11798_v15 = vsel %vm335_vm1, %v3422_v9, %v3423_v61  ;;  %v3365_v32 = vrot.slane %v11788_v25, 7  ;;  %v3428_v35 = vrot.slane %v11788_v25, 1  ;;  %v11807_v60 = vsel %vm119_vm2, %v3361_v30, %v3362_v5  ;;  %v11843_v61 = vld [vmem:[#allocation4 + $0xc8] sm:$0xff]  ;;  %v3490_v5 = vld [vmem:[#allocation9 + $0xb8] sm:$0xff] }
 0x3d1   :  { %8561 = vmatmul.mubr.msk.f32.gmra.mrb[16].mxu1 %vm3008_vm4, %v11741_v21  ;;  %8625 = vmatmul.mubr.msk.f32.gmra.mrb[16].mxu0 %vm3008_vm4, %v11744_v57  ;;  %v11810_v50 = vsel %vm335_vm1, %v3425_v39, %v3426_v51  ;;  %v9121_v33 = vpack.c.bf16 %v3486_v47, %v3485_v42  ;;  %v3436_v30 = vrot.slane %v11843_v61, 7  ;;  %v9129_v39 = vpack.c.bf16 %v3490_v5, %v3489_v49  ;;  %v3495_v42 = vld [vmem:[#allocation9 + $0xe0] sm:$0xff]  ;;  %v3496_v47 = vld [vmem:[#allocation9 + $0xe8] sm:$0xff] }
 0x3d2   :  { %8563 = vmatprep.mubr.msk.f32.mxu1 %vm3008_vm4, %v11753_v16  ;;  %8627 = vmatprep.mubr.msk.f32.mxu0 %vm3008_vm4, %v11756_v38  ;;  %v11817_v34 = vsel %vm119_vm2, %v3364_v13, %v3365_v32  ;;  %v11820_v6 = vsel %vm335_vm1, %v3428_v35, %v3429_v53  ;;  %v3491_v13 = vld [vmem:[#allocation9 + $0xc0] sm:$0xff]  ;;  %v3492_v53 = vld [vmem:[#allocation9 + $0xc8] sm:$0xff] }
 0x3d3   :  { %v9133_v32 = vpack.c.bf16 %v3492_v53, %v3491_v13  ;;  %v3499_v49 = vld [vmem:[#allocation9 + $0x100] sm:$0xff]  ;;  %v3500_v5 = vld [vmem:[#allocation9 + $0x108] sm:$0xff] }
 0x3d4   :  { %v3255_v13 = vld [vmem:[#allocation4 + $0xe0] sm:$0xff]  ;;  %v9149_v53 = vpack.c.bf16 %v3500_v5, %v3499_v49 }
 0x3d5   :  { %8564 = vmatmul.mubr.msk.f32.gmra.mrb[18].mxu1 %vm3008_vm4, %v11769_v31  ;;  %8628 = vmatmul.mubr.msk.f32.gmra.mrb[18].mxu0 %vm3008_vm4, %v11772_v55 }
 0x3d6   :  { %8566 = vmatprep.mubr.msk.f32.mxu1 %vm3008_vm4, %v11781_v4  ;;  %8630 = vmatprep.mubr.msk.f32.mxu0 %vm3008_vm4, %v11784_v22 }
 0x3d9   :  { %8567 = vmatmul.mubr.msk.f32.gmra.mrb[20].mxu1 %vm3008_vm4, %v11795_v41  ;;  %8631 = vmatmul.mubr.msk.f32.gmra.mrb[20].mxu0 %vm3008_vm4, %v11798_v15 }
 0x3da   :  { %8569 = vmatprep.mubr.msk.f32.mxu1 %vm3008_vm4, %v11807_v60  ;;  %8633 = vmatprep.mubr.msk.f32.mxu0 %vm3008_vm4, %v11810_v50 }
 0x3dd   :  { %8570 = vmatmul.mubr.msk.f32.gmra.mrb[22].mxu1 %vm3008_vm4, %v11817_v34  ;;  %8634 = vmatmul.mubr.msk.f32.gmra.mrb[22].mxu0 %vm3008_vm4, %v11820_v6 }
 0x3de   :  { %8644 = vmatprep.mubr.msk.f32.mxu0 %vm3008_vm4, %v11628_v44  ;;  %8580 = vmatprep.mubr.msk.f32.mxu1 %vm3008_vm4, %v11389_v62  ;;  %v9125_v44 = vpack.c.bf16 %v3488_v36, %v3487_v1  ;;  %v3251_v62 = vld [vmem:[#allocation4 + $0xc0] sm:$0xff]  ;;  %v3253_v1 = vld [vmem:[#allocation4 + $0xd0] sm:$0xff] }
 0x3df   :  { %v3444_v36 = vrot.slane %v3253_v1, 1 }
 0x3e1   :  { %8581 = vmatmul.mubr.msk.f32.vlgmr.msra.gmra.mrb[8].mxu1 %vm3008_vm4, %v11604_v56  ;;  %8645 = vmatmul.mubr.msk.f32.vlgmr.msra.gmra.mrb[8].mxu0 %vm3008_vm4, %v11634_v24 }
 0x3e2   :  { %9120 = vmatpush3.bf16.msra.mxu0 %v11658_v29  ;;  %8583 = vmatprep.mubr.msk.f32.mxu1 %vm3008_vm4, %v11606_v23  ;;  %v3435_v29 = vrot.slane %v3251_v62, 7  ;;  %v3283_v62 = vld [vmem:[#allocation4 + $0x1c0] sm:$0xff] }
 0x3e3   :  { %8647 = vmatprep.mubr.msk.f32.mxu0 %vm3008_vm4, %v11661_v43  ;;  %9122 = vmatprep.subr.bf16.mxu0 %v9121_v33 }
 0x3e4   :  { %v11859_v51 = vsel %vm119_vm2, %v3435_v29, %v3436_v30  ;;  %v3447_v30 = vrot.slane %v3283_v62, 1 }
 0x3e5   :  { %8584 = vmatmul.mubr.msk.f32.gmra.mrb[10].mxu1 %vm3008_vm4, %v11617_v28  ;;  %8648 = vmatmul.mubr.msk.f32.gmra.mrb[10].mxu0 %vm3008_vm4, %v11676_v52 }
 0x3e6   :  { %8586 = vmatprep.mubr.msk.f32.mxu1 %vm3008_vm4, %v11619_v11  ;;  %8650 = vmatprep.mubr.msk.f32.mxu0 %vm3008_vm4, %v11692_v37 }
 0x3e7   :  { %9124 = vmatpush3.bf16.msra.mxu0 %v9121_v33  ;;  %v9141_v33 = vpack.c.bf16 %v3496_v47, %v3495_v42 }
 0x3e8   :  { %9126 = vmatprep.subr.bf16.mxu0 %v9125_v44 }
 0x3e9   :  { %8587 = vmatmul.mubr.msk.f32.gmra.mrb[12].mxu1 %vm3008_vm4, %v11645_v63  ;;  %8651 = vmatmul.mubr.msk.f32.gmra.mrb[12].mxu0 %vm3008_vm4, %v11705_v7 }
 0x3ea   :  { %8589 = vmatprep.mubr.msk.f32.mxu1 %vm3008_vm4, %v11652_v0  ;;  %8653 = vmatprep.mubr.msk.f32.mxu0 %vm3008_vm4, %v11721_v54 }
 0x3ed   :  { %8590 = vmatmul.mubr.msk.f32.gmra.mrb[14].mxu1 %vm3008_vm4, %v11683_v46  ;;  %8654 = vmatmul.mubr.msk.f32.gmra.mrb[14].mxu0 %vm3008_vm4, %v11859_v51 }
 0x3ee   :  { %8656 = vmatprep.mubr.msk.f32.mxu0 %vm3008_vm4, %v11741_v21  ;;  %8592 = vmatprep.mubr.msk.f32.mxu1 %vm3008_vm4, %v11668_v2  ;;  %v3281_v21 = vld [vmem:[#allocation4 + $0x1b0] sm:$0xff]  ;;  %v11881_v2 = vld [vmem:[#allocation4 + $0x1b8] sm:$0xff] }
 0x3ef   :  { %v3438_v27 = vrot.slane %v3281_v21, 7  ;;  %v3439_v9 = vrot.slane %v11881_v2, 7  ;;  %v3446_v29 = vrot.slane %v11881_v2, 1  ;;  %v3497_v21 = vld [vmem:[#allocation9 + $0xf0] sm:$0xff] }
 0x3f1   :  { %8593 = vmatmul.mubr.msk.f32.gmra.mrb[16].mxu1 %vm3008_vm4, %v11710_v14  ;;  %8657 = vmatmul.mubr.msk.f32.gmra.mrb[16].mxu0 %vm3008_vm4, %v11753_v16  ;;  %v11897_v19 = vsel %vm119_vm2, %v3438_v27, %v3439_v9  ;;  %v3498_v27 = vld [vmem:[#allocation9 + $0xf8] sm:$0xff] }
 0x3f2   :  { %8595 = vmatprep.mubr.msk.f32.mxu1 %vm3008_vm4, %v11716_v58  ;;  %8659 = vmatprep.mubr.msk.f32.mxu0 %vm3008_vm4, %v11769_v31  ;;  %v9145_v9 = vpack.c.bf16 %v3498_v27, %v3497_v21 }
 0x3f5   :  { %8596 = vmatmul.mubr.msk.f32.gmra.mrb[18].mxu1 %vm3008_vm4, %v11734_v12  ;;  %8660 = vmatmul.mubr.msk.f32.gmra.mrb[18].mxu0 %vm3008_vm4, %v11781_v4 }
 0x3f6   :  { %8598 = vmatprep.mubr.msk.f32.mxu1 %vm3008_vm4, %v11738_v26  ;;  %8662 = vmatprep.mubr.msk.f32.mxu0 %vm3008_vm4, %v11795_v41 }
 0x3f9   :  { %8599 = vmatmul.mubr.msk.f32.gmra.mrb[20].mxu1 %vm3008_vm4, %v11760_v10  ;;  %8663 = vmatmul.mubr.msk.f32.gmra.mrb[20].mxu0 %vm3008_vm4, %v11807_v60 }
 0x3fa   :  { %8601 = vmatprep.mubr.msk.f32.mxu1 %vm3008_vm4, %v11766_v48  ;;  %8665 = vmatprep.mubr.msk.f32.mxu0 %vm3008_vm4, %v11817_v34 }
 0x3fd   :  { %8602 = vmatmul.mubr.msk.f32.gmra.mrb[22].mxu1 %vm3008_vm4, %v11788_v25  ;;  %8666 = vmatmul.mubr.msk.f32.gmra.mrb[22].mxu0 %vm3008_vm4, %v11897_v19 }
 0x3fe   :  { %8676 = vmatprep.mubr.msk.f32.mxu0 %vm3008_vm4, %v11604_v56  ;;  %v3493_v56 = vld [vmem:[#allocation9 + $0xd0] sm:$0xff] }
 0x401   :  { %8677 = vmatmul.mubr.msk.f32.vlgmr.msra.gmra.mrb[8].mxu0 %vm3008_vm4, %v11606_v23 }
 0x402   :  { %9128 = vmatpush3.bf16.msra.mxu0 %v9125_v44  ;;  %8679 = vmatprep.mubr.msk.f32.mxu0 %vm3008_vm4, %v11617_v28 }
 0x403   :  { %9130 = vmatprep.subr.bf16.mxu0 %v9129_v39 }
 0x405   :  { %8680 = vmatmul.mubr.msk.f32.gmra.mrb[10].mxu0 %vm3008_vm4, %v11619_v11 }
 0x406   :  { %8682 = vmatprep.mubr.msk.f32.mxu0 %vm3008_vm4, %v11645_v63  ;;  %9132 = vmatpush3.bf16.msra.mxu0 %v9129_v39  ;;  %v3254_v39 = vld [vmem:[#allocation4 + $0xd8] sm:$0xff] }
 0x407   :  { %9134 = vmatprep.subr.bf16.mxu0 %v9133_v32 }
 0x409   :  { %8683 = vmatmul.mubr.msk.f32.gmra.mrb[12].mxu0 %vm3008_vm4, %v11652_v0 }
 0x40a   :  { %8685 = vmatprep.mubr.msk.f32.mxu0 %vm3008_vm4, %v11683_v46 }
 0x40d   :  { %8686 = vmatmul.mubr.msk.f32.gmra.mrb[14].mxu0 %vm3008_vm4, %v11843_v61 }
 0x40e   :  { %8688 = vmatprep.mubr.msk.f32.mxu0 %vm3008_vm4, %v11710_v14  ;;  %v3494_v14 = vld [vmem:[#allocation9 + $0xd8] sm:$0xff] }
 0x40f   :  { %v9137_v35 = vpack.c.bf16 %v3494_v14, %v3493_v56 }
 0x411   :  { %8689 = vmatmul.mubr.msk.f32.gmra.mrb[16].mxu0 %vm3008_vm4, %v11716_v58 }
 0x412   :  { %8691 = vmatprep.mubr.msk.f32.mxu0 %vm3008_vm4, %v11734_v12 }
 0x415   :  { %8692 = vmatmul.mubr.msk.f32.gmra.mrb[18].mxu0 %vm3008_vm4, %v11738_v26 }
 0x416   :  { %8694 = vmatprep.mubr.msk.f32.mxu0 %vm3008_vm4, %v11760_v10 }
 0x419   :  { %8695 = vmatmul.mubr.msk.f32.gmra.mrb[20].mxu0 %vm3008_vm4, %v11766_v48 }
 0x41a   :  { %8697 = vmatprep.mubr.msk.f32.mxu0 %vm3008_vm4, %v11788_v25 }
 0x41d   :  { %8698 = vmatmul.mubr.msk.f32.gmra.mrb[22].mxu0 %vm3008_vm4, %v11881_v2 }
 0x41e   :  { %8708 = vmatprep.mubr.msk.f32.mxu0 %vm3008_vm4, %v11631_v17  ;;  %v3443_v17 = vrot.slane %v11843_v61, 1 }
 0x420   :  { %v11951_v44 = vsel %vm335_vm1, %v3443_v17, %v3444_v36 }
 0x421   :  { %8709 = vmatmul.mubr.msk.f32.vlgmr.msra.gmra.mrb[8].mxu0 %vm3008_vm4, %v11637_v59 }
 0x422   :  { %9136 = vmatpush3.bf16.msra.mxu0 %v9133_v32  ;;  %8711 = vmatprep.mubr.msk.f32.mxu0 %vm3008_vm4, %v11664_v45  ;;  %v3454_v32 = vrot.slane %v3255_v13, 7 }
 0x423   :  { %9138 = vmatprep.subr.bf16.mxu0 %v9137_v35 }
 0x425   :  { %8712 = vmatmul.mubr.msk.f32.gmra.mrb[10].mxu0 %vm3008_vm4, %v11679_v40 }
 0x426   :  { %8714 = vmatprep.mubr.msk.f32.mxu0 %vm3008_vm4, %v11695_v20  ;;  %9140 = vmatpush3.bf16.msra.mxu0 %v9137_v35 }
 0x427   :  { %9142 = vmatprep.subr.bf16.mxu0 %v9141_v33 }
 0x429   :  { %8715 = vmatmul.mubr.msk.f32.gmra.mrb[12].mxu0 %vm3008_vm4, %v11708_v18 }
 0x42a   :  { %8717 = vmatprep.mubr.msk.f32.mxu0 %vm3008_vm4, %v11724_v3 }
 0x42d   :  { %8718 = vmatmul.mubr.msk.f32.gmra.mrb[14].mxu0 %vm3008_vm4, %v11951_v44 }
 0x42e   :  { %8720 = vmatprep.mubr.msk.f32.mxu0 %vm3008_vm4, %v11744_v57  ;;  %v11971_v57 = vsel %vm335_vm1, %v3446_v29, %v3447_v30 }
 0x431   :  { %8721 = vmatmul.mubr.msk.f32.gmra.mrb[16].mxu0 %vm3008_vm4, %v11756_v38 }
 0x432   :  { %8723 = vmatprep.mubr.msk.f32.mxu0 %vm3008_vm4, %v11772_v55 }
 0x435   :  { %8724 = vmatmul.mubr.msk.f32.gmra.mrb[18].mxu0 %vm3008_vm4, %v11784_v22 }
 0x436   :  { %8726 = vmatprep.mubr.msk.f32.mxu0 %vm3008_vm4, %v11798_v15 }
 0x439   :  { %8727 = vmatmul.mubr.msk.f32.gmra.mrb[20].mxu0 %vm3008_vm4, %v11810_v50 }
 0x43a   :  { %8729 = vmatprep.mubr.msk.f32.mxu0 %vm3008_vm4, %v11820_v6 }
 0x43d   :  { %8730 = vmatmul.mubr.msk.f32.gmra.mrb[22].mxu0 %vm3008_vm4, %v11971_v57 }
 0x43e   :  { %8740 = vmatprep.mubr.msk.f32.mxu0 %vm3008_vm4, %v11634_v24  ;;  %v3453_v24 = vrot.slane %v3254_v39, 7 }
 0x441   :  { %8741 = vmatmul.mubr.msk.f32.vlgmr.msra.gmra.mrb[8].mxu0 %vm3008_vm4, %v11661_v43  ;;  %v3455_v43 = vsel %vm119_vm2, %v3453_v24, %v3454_v32 }
 0x442   :  { %9144 = vmatpush3.bf16.msra.mxu0 %v9141_v33  ;;  %8743 = vmatprep.mubr.msk.f32.mxu0 %vm3008_vm4, %v11676_v52  ;;  %v3284_v52 = vld [vmem:[#allocation4 + $0x1c8] sm:$0xff] }
 0x443   :  { %9146 = vmatprep.subr.bf16.mxu0 %v9145_v9 }
 0x445   :  { %8744 = vmatmul.mubr.msk.f32.gmra.mrb[10].mxu0 %vm3008_vm4, %v11692_v37  ;;  %v3285_v37 = vld [vmem:[#allocation4 + $0x1d0] sm:$0xff] }
 0x446   :  { %8746 = vmatprep.mubr.msk.f32.mxu0 %vm3008_vm4, %v11705_v7  ;;  %9148 = vmatpush3.bf16.msra.mxu0 %v9145_v9  ;;  %v3456_v7 = vrot.slane %v3284_v52, 7 }
 0x447   :  { %9150 = vmatprep.subr.bf16.mxu0 %v9149_v53 }
 0x449   :  { %8747 = vmatmul.mubr.msk.f32.gmra.mrb[12].mxu0 %vm3008_vm4, %v11721_v54  ;;  %v3457_v54 = vrot.slane %v3285_v37, 7 }
 0x44a   :  { %8749 = vmatprep.mubr.msk.f32.mxu0 %vm3008_vm4, %v11859_v51  ;;  %v12116_v51 = vld [vmem:[%s13280_s6] ss:$0 sm:$0xff] }
 0x44d   :  { %8750 = vmatmul.mubr.msk.f32.gmra.mrb[14].mxu0 %vm3008_vm4, %v3455_v43 }
 0x44e   :  { %8752 = vmatprep.mubr.msk.f32.mxu0 %vm3008_vm4, %v11753_v16  ;;  %v3458_v16 = vsel %vm119_vm2, %v3456_v7, %v3457_v54  ;;  %vm9671_vm2 = vmmov 0  }
 0x451   :  { %8753 = vmatmul.mubr.msk.f32.gmra.mrb[16].mxu0 %vm3008_vm4, %v11769_v31  ;;  %v3501_v31 = vld [vmem:[#allocation9 + $0x110] sm:$0xff] }
 0x452   :  { %8755 = vmatprep.mubr.msk.f32.mxu0 %vm3008_vm4, %v11781_v4  ;;  %v3502_v4 = vld [vmem:[#allocation9 + $0x118] sm:$0xff] }
 0x455   :  { %8756 = vmatmul.mubr.msk.f32.gmra.mrb[18].mxu0 %vm3008_vm4, %v11795_v41  ;;  %v9153_v41 = vpack.c.bf16 %v3502_v4, %v3501_v31 }
 0x456   :  { %8758 = vmatprep.mubr.msk.f32.mxu0 %vm3008_vm4, %v11807_v60 }
 0x459   :  { %8759 = vmatmul.mubr.msk.f32.gmra.mrb[20].mxu0 %vm3008_vm4, %v11817_v34  ;;  %v13454_v34 = vmov 0.0  }
 0x45a   :  { %8761 = vmatprep.mubr.msk.f32.mxu0 %vm3008_vm4, %v11897_v19  ;;  %6062 = vst.msk [vmem:[#allocation5] sm:$0xff] %vm5607_vm5, %v13454_v34  ;;  %6063 = vst.msk [vmem:[#allocation5 + $0x10] sm:$0xff] %vm5607_vm5, %v13454_v34 }
 0x45b   :  { %6064 = vst.msk [vmem:[#allocation5 + $0x20] sm:$0xff] %vm5607_vm5, %v13454_v34  ;;  %6065 = vst.msk [vmem:[#allocation5 + $0x30] sm:$0xff] %vm5607_vm5, %v13454_v34 }
 0x45c   :  { %6066 = vst.msk [vmem:[#allocation5 + $0x40] sm:$0xff] %vm5607_vm5, %v13454_v34  ;;  %6067 = vst.msk [vmem:[#allocation5 + $0x50] sm:$0xff] %vm5607_vm5, %v13454_v34 }
 0x45d   :  { %8762 = vmatmul.mubr.msk.f32.gmra.mrb[22].mxu0 %vm3008_vm4, %v3458_v16  ;;  %6068 = vst.msk [vmem:[#allocation5 + $0x60] sm:$0xff] %vm5607_vm5, %v13454_v34  ;;  %6069 = vst.msk [vmem:[#allocation5 + $0x70] sm:$0xff] %vm5607_vm5, %v13454_v34 }
 0x45e   :  { %8772 = vmatprep.mubr.msk.f32.mxu0 %vm3008_vm4, %v11606_v23  ;;  %v3256_v23 = vld [vmem:[#allocation4 + $0xe8] sm:$0xff]  ;;  %6070 = vst.msk [vmem:[#allocation5 + $0x80] sm:$0xff] %vm5607_vm5, %v13454_v34  ;;  %6071 = vst.msk [vmem:[#allocation5 + $0x90] sm:$0xff] %vm5607_vm5, %v13454_v34 }
 0x45f   :  { %6072 = vst.msk [vmem:[#allocation5 + $0xa0] sm:$0xff] %vm5607_vm5, %v13454_v34  ;;  %6073 = vst.msk [vmem:[#allocation5 + $0xb0] sm:$0xff] %vm5607_vm5, %v13454_v34 }
 0x460   :  { %6075 = vst.msk [vmem:[#allocation5 + $0xc] sm:$0xf] %vm6074_vm13, %v13454_v34  ;;  %6076 = vst.msk [vmem:[#allocation5 + $0x1c] sm:$0xf] %vm6074_vm13, %v13454_v34 }
 0x461   :  { %8773 = vmatmul.mubr.msk.f32.vlgmr.msra.gmra.mrb[8].mxu0 %vm3008_vm4, %v11617_v28  ;;  %v3461_v28 = vrot.slane %v3255_v13, 1  ;;  %6077 = vst.msk [vmem:[#allocation5 + $0x2c] sm:$0xf] %vm6074_vm13, %v13454_v34  ;;  %6078 = vst.msk [vmem:[#allocation5 + $0x3c] sm:$0xf] %vm6074_vm13, %v13454_v34 }
 0x462   :  { %9152 = vmatpush3.bf16.msra.mxu0 %v9149_v53  ;;  %8775 = vmatprep.mubr.msk.f32.mxu0 %vm3008_vm4, %v11619_v11  ;;  %v3462_v11 = vrot.slane %v3256_v23, 1  ;;  %6079 = vst.msk [vmem:[#allocation5 + $0x4c] sm:$0xf] %vm6074_vm13, %v13454_v34  ;;  %6080 = vst.msk [vmem:[#allocation5 + $0x5c] sm:$0xf] %vm6074_vm13, %v13454_v34 }
 0x463   :  { %9154 = vmatprep.subr.bf16.mxu0 %v9153_v41  ;;  %6081 = vst.msk [vmem:[#allocation5 + $0x6c] sm:$0xf] %vm6074_vm13, %v13454_v34  ;;  %6082 = vst.msk [vmem:[#allocation5 + $0x7c] sm:$0xf] %vm6074_vm13, %v13454_v34 }
 0x464   :  { %6083 = vst.msk [vmem:[#allocation5 + $0x8c] sm:$0xf] %vm6074_vm13, %v13454_v34  ;;  %6084 = vst.msk [vmem:[#allocation5 + $0x9c] sm:$0xf] %vm6074_vm13, %v13454_v34 }
 0x465   :  { %8776 = vmatmul.mubr.msk.f32.gmra.mrb[10].mxu0 %vm3008_vm4, %v11645_v63  ;;  %v3286_v63 = vld [vmem:[#allocation4 + $0x1d8] sm:$0xff]  ;;  %6085 = vst.msk [vmem:[#allocation5 + $0xac] sm:$0xf] %vm6074_vm13, %v13454_v34  ;;  %6086 = vst.msk [vmem:[#allocation5 + $0xbc] sm:$0xf] %vm6074_vm13, %v13454_v34 }
 0x466   :  { %8778 = vmatprep.mubr.msk.f32.mxu0 %vm3008_vm4, %v11652_v0  ;;  %9156 = vmatpush3.bf16.msra.mxu0 %v9153_v41  ;;  %v3464_v0 = vrot.slane %v3285_v37, 1  ;;  %6087 = vst.msk [vmem:[#allocation5 + $0x8] sm:$0xf] %vm6074_vm13, %v13454_v34  ;;  %6088 = vst.msk [vmem:[#allocation5 + $0x68] sm:$0xf] %vm6074_vm13, %v13454_v34 }
 0x467   :  { %6090 = vst.msk [vmem:[#allocation5 + $0x58] sm:$0xf] %vm6074_vm13, %v13454_v34  ;;  %6091 = vst.msk [vmem:[#allocation5 + $0xb8] sm:$0xf] %vm6074_vm13, %v13454_v34 }
 0x469   :  { %8779 = vmatmul.mubr.msk.f32.gmra.mrb[12].mxu0 %vm3008_vm4, %v11683_v46 }
 0x46a   :  { %8781 = vmatprep.mubr.msk.f32.mxu0 %vm3008_vm4, %v11843_v61 }
 0x46d   :  { %8782 = vmatmul.mubr.msk.f32.gmra.mrb[14].mxu0 %vm3008_vm4, %v3255_v13 }
 0x46e   :  { %8784 = vmatprep.mubr.msk.f32.mxu0 %vm3008_vm4, %v11716_v58 }
 0x471   :  { %8785 = vmatmul.mubr.msk.f32.gmra.mrb[16].mxu0 %vm3008_vm4, %v11734_v12 }
 0x472   :  { %8787 = vmatprep.mubr.msk.f32.mxu0 %vm3008_vm4, %v11738_v26 }
 0x475   :  { %8788 = vmatmul.mubr.msk.f32.gmra.mrb[18].mxu0 %vm3008_vm4, %v11760_v10 }
 0x476   :  { %8790 = vmatprep.mubr.msk.f32.mxu0 %vm3008_vm4, %v11766_v48 }
 0x479   :  { %8791 = vmatmul.mubr.msk.f32.gmra.mrb[20].mxu0 %vm3008_vm4, %v11788_v25 }
 0x47a   :  { %8793 = vmatprep.mubr.msk.f32.mxu0 %vm3008_vm4, %v11881_v2 }
 0x47d   :  { %8794 = vmatmul.mubr.msk.f32.gmra.mrb[22].mxu0 %vm3008_vm4, %v3285_v37 }
 0x47e   :  { %8804 = vmatprep.mubr.msk.f32.mxu0 %vm3008_vm4, %v11637_v59  ;;  %v3463_v59 = vsel %vm335_vm1, %v3461_v28, %v3462_v11 }
 0x481   :  { %8805 = vmatmul.mubr.msk.f32.vlgmr.msra.gmra.mrb[8].mxu0 %vm3008_vm4, %v11664_v45  ;;  %v3465_v45 = vrot.slane %v3286_v63, 1 }
 0x482   :  { %8807 = vmatprep.mubr.msk.f32.mxu0 %vm3008_vm4, %v11679_v40 }
 0x483   :  { %v3466_v40 = vsel %vm335_vm1, %v3464_v0, %v3465_v45  ;;  %vm12931_vm1 = vmor %vm6382_vm15, %vm6383_vm0 }
 0x485   :  { %8808 = vmatmul.mubr.msk.f32.gmra.mrb[10].mxu0 %vm3008_vm4, %v11695_v20 }
 0x486   :  { %8810 = vmatprep.mubr.msk.f32.mxu0 %vm3008_vm4, %v11708_v18 }
 0x489   :  { %8811 = vmatmul.mubr.msk.f32.gmra.mrb[12].mxu0 %vm3008_vm4, %v11724_v3 }
 0x48a   :  { %8813 = vmatprep.mubr.msk.f32.mxu0 %vm3008_vm4, %v11951_v44  ;;  %v13455_v44 = vld [vmem:[#allocation16_spill] sm:$0xff] }
 0x48d   :  { %8814 = vmatmul.mubr.msk.f32.gmra.mrb[14].mxu0 %vm3008_vm4, %v3463_v59 }
 0x48e   :  { %8816 = vmatprep.mubr.msk.f32.mxu0 %vm3008_vm4, %v11756_v38 }
 0x491   :  { %8817 = vmatmul.mubr.msk.f32.gmra.mrb[16].mxu0 %vm3008_vm4, %v11772_v55 }
 0x492   :  { %8819 = vmatprep.mubr.msk.f32.mxu0 %vm3008_vm4, %v11784_v22 }
 0x495   :  { %8820 = vmatmul.mubr.msk.f32.gmra.mrb[18].mxu0 %vm3008_vm4, %v11798_v15 }
 0x496   :  { %8822 = vmatprep.mubr.msk.f32.mxu0 %vm3008_vm4, %v11810_v50 }
 0x499   :  { %8823 = vmatmul.mubr.msk.f32.gmra.mrb[20].mxu0 %vm3008_vm4, %v11820_v6  ;;  %v9669_v6 = vmov 1983009808  }
 0x49a   :  { %8825 = vmatprep.mubr.msk.f32.mxu0 %vm3008_vm4, %v11971_v57  ;;  %v5114_v61 = vunpack.c.l.s4 %v9669_v6 }
 0x49c   :  { %v5115_v14 = vunpack.c.0.s8 %v5114_v61 }
 0x49d   :  { %8826 = vmatmul.mubr.msk.f32.gmra.mrb[22].mxu0 %vm3008_vm4, %v3466_v40  ;;  %vm7943_vm4 = vcmask 74752  }
 0x49e   :  { %v12121_v62 = vsub.s32 %v5115_v14, %v13455_v44 }
 0x4b4   :  { %v8582_v46 = vpop.f32.mrb[8].mxu1 }
 0x4b5   :  { %v3778_v20 = vpop.f32.mrb[9].mxu1 }
 0x4b8   :  { %v8585_v18 = vpop.f32.mrb[10].mxu1 }
 0x4b9   :  { %v3788_v58 = vpop.f32.mrb[11].mxu1 }
 0x4bc   :  { %v8588_v3 = vpop.f32.mrb[12].mxu1 }
 0x4bd   :  { %v3798_v12 = vpop.f32.mrb[13].mxu1 }
 0x4c0   :  { %v12069_v26 = vpop.f32.mrb[14].mxu1 }
 0x4c1   :  { %v12071_v38 = vpop.f32.mrb[15].mxu1 }
 0x4c4   :  { %v12073_v10 = vpop.f32.mrb[16].mxu1 }
 0x4c5   :  { %v12075_v48 = vpop.f32.mrb[17].mxu1 }
 0x4c8   :  { %v12077_v55 = vpop.f32.mrb[18].mxu1 }
 0x4c9   :  { %v12079_v22 = vpop.f32.mrb[19].mxu1 }
 0x4cc   :  { %v12081_v25 = vpop.f32.mrb[20].mxu1 }
 0x4cd   :  { %v12083_v15 = vpop.f32.mrb[21].mxu1 }
 0x4d0   :  { %v12085_v60 = vpop.f32.mrb[22].mxu1 }
 0x4d1   :  { %v12087_v50 = vpop.f32.mrb[23].mxu1 }
 0x554   :  { %v8806_v2 = vpop.f32.mrb[8].mxu0 }
 0x555   :  { %v9325_v19 = vadd.f32 %v8806_v2, %v8582_v46  ;;  %v4849_v56 = vpop.f32.mrb[9].mxu0 }
 0x556   :  { %v9326_v35 = vadd.f32 %v4849_v56, %v3778_v20 }
 0x557   :  { %v5063_v42 = vadd.f32 %v9325_v19, %v12116_v51 }
 0x558   :  { %v5062_v47 = vadd.f32 %v9326_v35, %v12116_v51  ;;  %v8809_v33 = vpop.f32.mrb[10].mxu0 }
 0x559   :  { %v5079_v1 = vmax.f32 %v5063_v42, 0.0  ;;  %v9327_v17 = vadd.f32 %v8809_v33, %v8585_v18  ;;  %v4859_v36 = vpop.f32.mrb[11].mxu0 }
 0x55a   :  { %v5078_v29 = vmax.f32 %v5062_v47, 0.0  ;;  %v9328_v30 = vadd.f32 %v4859_v36, %v3788_v58 }
 0x55b   :  { %v5065_v57 = vadd.f32 %v9327_v17, %v12116_v51 }
 0x55c   :  { %v5096_v21 = vmax.f32 %v5078_v29, %v5079_v1  ;;  %v5064_v27 = vadd.f32 %v9328_v30, %v12116_v51  ;;  %v8812_v9 = vpop.f32.mrb[12].mxu0 }
 0x55d   :  { %v5081_v49 = vmax.f32 %v5065_v57, 0.0  ;;  %v9329_v5 = vadd.f32 %v8812_v9, %v8588_v3  ;;  %v4869_v39 = vpop.f32.mrb[13].mxu0 }
 0x55e   :  { %v5112_v13 = vcombine.high %v5096_v21, %v5096_v21  ;;  %v5119_v53 = vrot.slane %v5096_v21, %v12121_v62  ;;  %v5080_v24 = vmax.f32 %v5064_v27, 0.0  ;;  %v9330_v32 = vadd.f32 %v4869_v39, %v3798_v12 }
 0x55f   :  { %v5067_v43 = vadd.f32 %v9329_v5, %v12116_v51 }
 0x560   :  { %v5126_v52 = vrot.slane %v5112_v13, %v12121_v62  ;;  %v5127_v37 = vcombine.high %v5119_v53, %v5119_v53  ;;  %v8131_v7 = vrot.slane %v5119_v53, 9  ;;  %v5097_v54 = vmax.f32 %v5080_v24, %v5081_v49  ;;  %v8815_v16 = vpop.f32.mrb[14].mxu0 }
 0x561   :  { %v5083_v31 = vmax.f32 %v5067_v43, 0.0  ;;  %v5066_v4 = vadd.f32 %v9330_v32, %v12116_v51  ;;  %v9331_v41 = vadd.f32 %v8815_v16, %v12069_v26  ;;  %v4879_v23 = vpop.f32.mrb[15].mxu0 }
 0x562   :  { %v5128_v28 = vcombine.high %v5126_v52, %v5126_v52  ;;  %v8132_v11 = vrot.slane %v5127_v37, 9  ;;  %v8133_v59 = vrot.slane %v5126_v52, 9  ;;  %v12130_v63 = vmax.f32 %v5119_v53, %v8131_v7 }
 0x563   :  { %v5129_v0 = vcombine.high %v5097_v54, %v5097_v54  ;;  %v5136_v45 = vrot.slane %v5097_v54, %v12121_v62  ;;  %v5082_v40 = vmax.f32 %v5066_v4, 0.0  ;;  %v12134_v46 = vadd.f32 %v9331_v41, %v12116_v51 }
 0x564   :  { %v8134_v20 = vrot.slane %v5128_v28, 9  ;;  %v12136_v18 = vmax.f32 %v5127_v37, %v8132_v11  ;;  %v12138_v58 = vmax.f32 %v5126_v52, %v8133_v59  ;;  %v5443_v3 = vrot.slane %v12130_v63, %v9902_v8  ;;  %v8818_v12 = vpop.f32.mrb[16].mxu0 }
 0x565   :  { %v5143_v26 = vrot.slane %v5129_v0, %v12121_v62  ;;  %v5144_v6 = vcombine.high %v5136_v45, %v5136_v45  ;;  %v8135_v61 = vrot.slane %v5136_v45, 9  ;;  %v5098_v2 = vmax.f32 %v5082_v40, %v5083_v31  ;;  %v4889_v19 = vpop.f32.mrb[17].mxu0 }
 0x566   :  { %v12143_v56 = vmax.f32 %v5128_v28, %v8134_v20  ;;  %v5447_v14 = vrot.slane %v12136_v18, %v9902_v8  ;;  %v5451_v35 = vrot.slane %v12138_v58, %v9902_v8  ;;  %v5085_v42 = vmax.f32 %v12134_v46, 0.0 }
 0x567   :  { %v5145_v47 = vcombine.high %v5143_v26, %v5143_v26  ;;  %v8136_v33 = vrot.slane %v5144_v6, 9  ;;  %v8137_v1 = vrot.slane %v5143_v26, 9  ;;  %v12150_v17 = vmax.f32 %v5136_v45, %v8135_v61 }
 0x568   :  { %v5455_v36 = vrot.slane %v12143_v56, %v9902_v8  ;;  %v5569_v44 = vsel %vm5568_vm6, %v5447_v14, %v5443_v3  ;;  %v5146_v29 = vcombine.high %v5098_v2, %v5098_v2  ;;  %v5153_v30 = vrot.slane %v5098_v2, %v12121_v62  ;;  %v8821_v57 = vpop.f32.mrb[18].mxu0 }
 0x569   :  { %v5571_v21 = vsel %vm5570_vm7, %v5451_v35, %v5569_v44  ;;  %v8138_v27 = vrot.slane %v5145_v47, 9  ;;  %v12157_v9 = vmax.f32 %v5144_v6, %v8136_v33  ;;  %v12159_v49 = vmax.f32 %v5143_v26, %v8137_v1  ;;  %v4899_v5 = vpop.f32.mrb[19].mxu0 }
 0x56a   :  { %v5459_v39 = vrot.slane %v12150_v17, %v9902_v8  ;;  %v5573_v13 = vsel %vm5572_vm8, %v5455_v36, %v5571_v21  ;;  %v5160_v53 = vrot.slane %v5146_v29, %v12121_v62  ;;  %v5161_v24 = vcombine.high %v5153_v30, %v5153_v30 }
 0x56b   :  { %v12165_v32 = vmax.f32 %v5145_v47, %v8138_v27  ;;  %v5463_v43 = vrot.slane %v12157_v9, %v9902_v8  ;;  %v5467_v52 = vrot.slane %v12159_v49, %v9902_v8  ;;  %v8139_v37 = vrot.slane %v5153_v30, 9 }
 0x56c   :  { %v5575_v7 = vsel %vm5574_vm9, %v5459_v39, %v5573_v13  ;;  %v5162_v54 = vcombine.high %v5160_v53, %v5160_v53  ;;  %v8140_v16 = vrot.slane %v5161_v24, 9  ;;  %v8141_v31 = vrot.slane %v5160_v53, 9  ;;  %v8824_v4 = vpop.f32.mrb[20].mxu0 }
 0x56d   :  { %v5471_v41 = vrot.slane %v12165_v32, %v9902_v8  ;;  %v5577_v28 = vsel %vm5576_vm10, %v5463_v43, %v5575_v7  ;;  %v12175_v11 = vmax.f32 %v5153_v30, %v8139_v37  ;;  %v9332_v59 = vadd.f32 %v4879_v23, %v12071_v38  ;;  %v4909_v0 = vpop.f32.mrb[21].mxu0 }
 0x56e   :  { %v5579_v45 = vsel %vm5578_vm11, %v5467_v52, %v5577_v28  ;;  %v8142_v40 = vrot.slane %v5162_v54, 9  ;;  %v12179_v46 = vmax.f32 %v5161_v24, %v8140_v16  ;;  %v12181_v20 = vmax.f32 %v5160_v53, %v8141_v31 }
 0x56f   :  { %v5581_v3 = vsel %vm5580_vm12, %v5471_v41, %v5579_v45  ;;  %v5475_v26 = vrot.slane %v12175_v11, %v9902_v8  ;;  %v5068_v6 = vadd.f32 %v9332_v59, %v12116_v51  ;;  %v9333_v61 = vadd.f32 %v8818_v12, %v12073_v10 }
 0x570   :  { %v12189_v2 = vsel %vm5607_vm5, %v5581_v3, 0.0  ;;  %v12191_v38 = vmax.f32 %v5162_v54, %v8142_v40  ;;  %v5479_v23 = vrot.slane %v12179_v46, %v9902_v8  ;;  %v5483_v14 = vrot.slane %v12181_v20, %v9902_v8  ;;  %v8827_v35 = vpop.f32.mrb[22].mxu0 }
 0x571   :  { %v5084_v47 = vmax.f32 %v5068_v6, 0.0  ;;  %v5071_v33 = vadd.f32 %v9333_v61, %v12116_v51  ;;  %v9334_v1 = vadd.f32 %v4889_v19, %v12075_v48  ;;  %v9335_v36 = vadd.f32 %v8821_v57, %v12077_v55  ;;  %v4919_v10 = vpop.f32.mrb[23].mxu0 }
 0x572   :  { %v5487_v12 = vrot.slane %v12191_v38, %v9902_v8  ;;  %v5582_v44 = vsel %vm5568_vm6, %v5479_v23, %v5475_v26  ;;  %v9336_v29 = vadd.f32 %v4899_v5, %v12079_v22  ;;  %v9337_v30 = vadd.f32 %v8824_v4, %v12081_v25 }
 0x573   :  { %v5583_v21 = vsel %vm5570_vm7, %v5483_v14, %v5582_v44  ;;  %v5099_v27 = vmax.f32 %v5084_v47, %v5085_v42  ;;  %v5087_v39 = vmax.f32 %v5071_v33, 0.0  ;;  %v5070_v13 = vadd.f32 %v9334_v1, %v12116_v51 }
 0x574   :  { %v5584_v48 = vsel %vm5572_vm8, %v5487_v12, %v5583_v21  ;;  %v5073_v55 = vadd.f32 %v9335_v36, %v12116_v51  ;;  %v5072_v19 = vadd.f32 %v9336_v29, %v12116_v51  ;;  %v12211_v57 = vadd.f32 %v9337_v30, %v12116_v51 }
 0x575   :  { %v5163_v53 = vcombine.high %v5099_v27, %v5099_v27  ;;  %v5170_v22 = vrot.slane %v5099_v27, %v12121_v62  ;;  %v5086_v5 = vmax.f32 %v5070_v13, 0.0  ;;  %v9338_v25 = vadd.f32 %v4909_v0, %v12083_v15 }
 0x576   :  { %v5089_v24 = vmax.f32 %v5073_v55, 0.0  ;;  %v5088_v42 = vmax.f32 %v5072_v19, 0.0  ;;  %v5091_v43 = vmax.f32 %v12211_v57, 0.0  ;;  %v9339_v52 = vadd.f32 %v8827_v35, %v12085_v60 }
 0x577   :  { %v5177_v37 = vrot.slane %v5163_v53, %v12121_v62  ;;  %v5178_v7 = vcombine.high %v5170_v22, %v5170_v22  ;;  %v8143_v54 = vrot.slane %v5170_v22, 9  ;;  %v5100_v16 = vmax.f32 %v5086_v5, %v5087_v39 }
 0x578   :  { %v5101_v31 = vmax.f32 %v5088_v42, %v5089_v24  ;;  %v5074_v4 = vadd.f32 %v9338_v25, %v12116_v51  ;;  %v12220_v41 = vadd.f32 %v9339_v52, %v12116_v51  ;;  %v9340_v28 = vadd.f32 %v4919_v10, %v12087_v50 }
 0x579   :  { %v5179_v15 = vcombine.high %v5177_v37, %v5177_v37  ;;  %v8144_v59 = vrot.slane %v5178_v7, 9  ;;  %v8145_v0 = vrot.slane %v5177_v37, 9  ;;  %v12223_v45 = vmax.f32 %v5170_v22, %v8143_v54 }
 0x57a   :  { %v5180_v40 = vcombine.high %v5100_v16, %v5100_v16  ;;  %v5187_v60 = vrot.slane %v5100_v16, %v12121_v62  ;;  %v5197_v3 = vcombine.high %v5101_v31, %v5101_v31  ;;  %v5204_v26 = vrot.slane %v5101_v31, %v12121_v62 }
 0x57b   :  { %v8146_v6 = vrot.slane %v5179_v15, 9  ;;  %v12227_v61 = vmax.f32 %v5178_v7, %v8144_v59  ;;  %v12229_v23 = vmax.f32 %v5177_v37, %v8145_v0  ;;  %v5491_v14 = vrot.slane %v12223_v45, %v9902_v8 }
 0x57c   :  { %v5194_v50 = vrot.slane %v5180_v40, %v12121_v62  ;;  %v5195_v35 = vcombine.high %v5187_v60, %v5187_v60  ;;  %v8147_v47 = vrot.slane %v5187_v60, 9  ;;  %v5211_v33 = vrot.slane %v5197_v3, %v12121_v62 }
 0x57d   :  { %v12235_v1 = vmax.f32 %v5179_v15, %v8146_v6  ;;  %v5495_v36 = vrot.slane %v12227_v61, %v9902_v8  ;;  %v5499_v10 = vrot.slane %v12229_v23, %v9902_v8  ;;  %v5585_v12 = vsel %vm5574_vm9, %v5491_v14, %v5584_v48 }
 0x57e   :  { %v5196_v44 = vcombine.high %v5194_v50, %v5194_v50  ;;  %v8148_v29 = vrot.slane %v5195_v35, 9  ;;  %v8149_v30 = vrot.slane %v5194_v50, 9  ;;  %v12242_v21 = vmax.f32 %v5187_v60, %v8147_v47 }
 0x57f   :  { %v5503_v27 = vrot.slane %v12235_v1, %v9902_v8  ;;  %v5586_v39 = vsel %vm5576_vm10, %v5495_v36, %v5585_v12  ;;  %v5212_v13 = vcombine.high %v5204_v26, %v5204_v26  ;;  %v5213_v55 = vcombine.high %v5211_v33, %v5211_v33 }
 0x580   :  { %v5587_v19 = vsel %vm5578_vm11, %v5499_v10, %v5586_v39  ;;  %v8150_v53 = vrot.slane %v5196_v44, 9  ;;  %v12248_v22 = vmax.f32 %v5195_v35, %v8148_v29  ;;  %v12250_v5 = vmax.f32 %v5194_v50, %v8149_v30 }
 0x581   :  { %v5588_v48 = vsel %vm5580_vm12, %v5503_v27, %v5587_v19  ;;  %v5507_v25 = vrot.slane %v12242_v21, %v9902_v8  ;;  %v8151_v24 = vrot.slane %v5204_v26, 9  ;;  %v8152_v42 = vrot.slane %v5212_v13, 9 }
 0x582   :  { %v5609_v52 = vsel %vm5607_vm5, %v5588_v48, 0.0  ;;  %v12256_v37 = vmax.f32 %v5196_v44, %v8150_v53  ;;  %v5511_v7 = vrot.slane %v12248_v22, %v9902_v8  ;;  %v5515_v54 = vrot.slane %v12250_v5, %v9902_v8 }
 0x583   :  { %v5610_v16 = vadd.f32 %v5609_v52, %v12189_v2  ;;  %v8153_v31 = vrot.slane %v5211_v33, 9  ;;  %v8154_v15 = vrot.slane %v5213_v55, 9  ;;  %v12263_v59 = vmax.f32 %v5204_v26, %v8151_v24 }
 0x584   :  { %v5519_v0 = vrot.slane %v12256_v37, %v9902_v8  ;;  %v5589_v40 = vsel %vm5568_vm6, %v5511_v7, %v5507_v25  ;;  %v12268_v60 = vmax.f32 %v5212_v13, %v8152_v42  ;;  %v5090_v3 = vmax.f32 %v5074_v4, 0.0 }
 0x585   :  { %v5590_v6 = vsel %vm5570_vm7, %v5515_v54, %v5589_v40  ;;  %v12271_v14 = vmax.f32 %v5211_v33, %v8153_v31  ;;  %v12273_v50 = vmax.f32 %v5213_v55, %v8154_v15  ;;  %v5523_v2 = vrot.slane %v12263_v59, %v9902_v8 }
 0x586   :  { %v5527_v26 = vrot.slane %v12268_v60, %v9902_v8  ;;  %v5591_v35 = vsel %vm5572_vm8, %v5519_v0, %v5590_v6  ;;  %v5102_v47 = vmax.f32 %v5090_v3, %v5091_v43  ;;  %v5093_v36 = vmax.f32 %v12220_v41, 0.0 }
 0x587   :  { %v5531_v4 = vrot.slane %v12271_v14, %v9902_v8  ;;  %v5535_v33 = vrot.slane %v12273_v50, %v9902_v8  ;;  %v5592_v10 = vsel %vm5574_vm9, %v5523_v2, %v5591_v35  ;;  %v5076_v12 = vadd.f32 %v9340_v28, %v12116_v51 }
 0x588   :  { %v5593_v44 = vsel %vm5576_vm10, %v5527_v26, %v5592_v10  ;;  %v5214_v29 = vcombine.high %v5102_v47, %v5102_v47  ;;  %v5221_v30 = vrot.slane %v5102_v47, %v12121_v62 }
 0x589   :  { %v5594_v57 = vsel %vm5578_vm11, %v5531_v4, %v5593_v44  ;;  %v5092_v43 = vmax.f32 %v5076_v12, 0.0 }
 0x58a   :  { %v5595_v41 = vsel %vm5580_vm12, %v5535_v33, %v5594_v57  ;;  %v5228_v27 = vrot.slane %v5214_v29, %v12121_v62  ;;  %v5229_v39 = vcombine.high %v5221_v30, %v5221_v30  ;;  %v8155_v13 = vrot.slane %v5221_v30, 9  ;;  %v6465_v29 = vld [vmem:[#allocation11] sm:$0xff] }
 0x58b   :  { %v5611_v51 = vsel %vm5607_vm5, %v5595_v41, 0.0  ;;  %v5103_v28 = vmax.f32 %v5092_v43, %v5093_v36 }
 0x58c   :  { %v5612_v55 = vadd.f32 %v5611_v51, %v5610_v16  ;;  %v5230_v19 = vcombine.high %v5228_v27, %v5228_v27  ;;  %v8156_v53 = vrot.slane %v5229_v39, 9  ;;  %v8157_v48 = vrot.slane %v5228_v27, 9 }
 0x58d   :  { %v12327_v25 = vmax.f32 %v5221_v30, %v8155_v13  ;;  %v5231_v24 = vcombine.high %v5103_v28, %v5103_v28  ;;  %v5238_v42 = vrot.slane %v5103_v28, %v12121_v62  ;;  %v6466_v30 = vld [vmem:[#allocation11 + $0x8] sm:$0xff] }
 0x58e   :  { %v8158_v52 = vrot.slane %v5230_v19, 9  ;;  %v12330_v7 = vmax.f32 %v5229_v39, %v8156_v53  ;;  %v12332_v54 = vmax.f32 %v5228_v27, %v8157_v48  ;;  %v9157_v41 = vpack.c.bf16 %v6466_v30, %v6465_v29  ;;  %v6467_v53 = vld [vmem:[#allocation11 + $0x10] sm:$0xff]  ;;  %v6468_v48 = vld [vmem:[#allocation11 + $0x18] sm:$0xff]  ;;  %v6474_v29 = vld [vmem:[#allocation11 + $0x48] sm:$0xff] }
 0x58f   :  { %v5245_v31 = vrot.slane %v5231_v24, %v12121_v62  ;;  %v5246_v15 = vcombine.high %v5238_v42, %v5238_v42  ;;  %v8159_v0 = vrot.slane %v5238_v42, 9  ;;  %v5539_v16 = vrot.slane %v12327_v25, %v9902_v8 }
 0x590   :  { %v12335_v40 = vmax.f32 %v5230_v19, %v8158_v52  ;;  %v5543_v3 = vrot.slane %v12330_v7, %v9902_v8  ;;  %v5547_v6 = vrot.slane %v12332_v54, %v9902_v8  ;;  %9158 = vmatprep.subr.bf16.mxu1 %v9157_v41  ;;  %v6469_v52 = vld [vmem:[#allocation11 + $0x20] sm:$0xff] }
 0x591   :  { %v5247_v2 = vcombine.high %v5245_v31, %v5245_v31  ;;  %v8160_v26 = vrot.slane %v5246_v15, 9  ;;  %v8161_v35 = vrot.slane %v5245_v31, 9  ;;  %v12343_v47 = vmax.f32 %v5238_v42, %v8159_v0  ;;  %9160 = vmatpush3.bf16.msra.mxu1 %v9157_v41 }
 0x592   :  { %v5551_v36 = vrot.slane %v12335_v40, %v9902_v8  ;;  %v5596_v4 = vsel %vm5568_vm6, %v5543_v3, %v5539_v16  ;;  %v9161_v42 = vpack.c.bf16 %v6468_v48, %v6467_v53  ;;  %v6471_v16 = vld [vmem:[#allocation11 + $0x30] sm:$0xff]  ;;  %v6472_v3 = vld [vmem:[#allocation11 + $0x38] sm:$0xff] }
 0x593   :  { %v5597_v33 = vsel %vm5570_vm7, %v5547_v6, %v5596_v4  ;;  %v8162_v10 = vrot.slane %v5247_v2, 9  ;;  %v12349_v12 = vmax.f32 %v5246_v15, %v8160_v26  ;;  %v12351_v44 = vmax.f32 %v5245_v31, %v8161_v35  ;;  %v6470_v31 = vld [vmem:[#allocation11 + $0x28] sm:$0xff] }
 0x594   :  { %v5555_v57 = vrot.slane %v12343_v47, %v9902_v8  ;;  %v5598_v43 = vsel %vm5572_vm8, %v5551_v36, %v5597_v33  ;;  %v9165_v0 = vpack.c.bf16 %v6470_v31, %v6469_v52  ;;  %9162 = vmatprep.subr.bf16.mxu1 %v9161_v42  ;;  %v9169_v26 = vpack.c.bf16 %v6472_v3, %v6471_v16 }
 0x595   :  { %v12356_v27 = vmax.f32 %v5247_v2, %v8162_v10  ;;  %v5559_v39 = vrot.slane %v12349_v12, %v9902_v8  ;;  %v5563_v13 = vrot.slane %v12351_v44, %v9902_v8  ;;  %9164 = vmatpush3.bf16.msra.mxu1 %v9161_v42  ;;  %v6473_v10 = vld [vmem:[#allocation11 + $0x40] sm:$0xff] }
 0x596   :  { %v5599_v51 = vsel %vm5574_vm9, %v5555_v57, %v5598_v43  ;;  %9166 = vmatprep.subr.bf16.mxu1 %v9165_v0  ;;  %v12369_v30 = vpack.c.bf16 %v6474_v29, %v6473_v10 }
 0x597   :  { %v5567_v28 = vrot.slane %v12356_v27, %v9902_v8  ;;  %v5600_v19 = vsel %vm5576_vm10, %v5559_v39, %v5599_v51 }
 0x598   :  { %v5601_v24 = vsel %vm5578_vm11, %v5563_v13, %v5600_v19  ;;  %13456 = vst [vmem:[#allocation26_spill] sm:$0xff] %v12369_v30 }
 0x599   :  { %v5602_v15 = vsel %vm5580_vm12, %v5567_v28, %v5601_v24  ;;  %9168 = vmatpush3.bf16.msra.mxu1 %v9165_v0 }
 0x59a   :  { %v5613_v6 = vsel %vm5607_vm5, %v5602_v15, 0.0  ;;  %9170 = vmatprep.subr.bf16.mxu1 %v9169_v26 }
 0x59b   :  { %v5614_v2 = vadd.f32 %v5613_v6, %v5612_v55 }
 0x59d   :  { %v5615_v35 = vrot.slane %v5614_v2, 4  ;;  %9172 = vmatpush3.bf16.msra.mxu1 %v9169_v26 }
 0x59e   :  { %9174 = vmatprep.subr.bf16.mxu1 %v12369_v30 }
 0x59f   :  { %v5616_v36 = vadd.f32 %v5615_v35, %v5614_v2 }
 0x5a1   :  { %v5617_v4 = vrot.slane %v5616_v36, 2 }
 0x5a3   :  { %v5618_v33 = vadd.f32 %v5617_v4, %v5616_v36 }
 0x5a5   :  { %v5619_v57 = vrot.slane %v5618_v33, 1 }
 0x5a7   :  { %v5620_v43 = vadd.f32 %v5619_v57, %v5618_v33 }
 0x5a9   :  { %v5621_v41 = vmul.f32 0.03125, %v5620_v43 }
 0x5ab   :  { %v5625_v55 = vrot.slane %v5621_v41, %v9902_v8 }
 0x5ad   :  { %v5627_v39 = vcombine.high %v5625_v55, %v5625_v55  ;;  %v5634_v13 = vrot.slane %v5625_v55, %v12121_v62 }
 0x5af   :  { %v5641_v51 = vrot.slane %v5627_v39, %v12121_v62  ;;  %v5642_v28 = vcombine.high %v5634_v13, %v5634_v13  ;;  %v5644_v19 = vrot.slane %v5634_v13, 1  ;;  %v12376_v53 = vsub.f32 %v12130_v63, %v5634_v13 }
 0x5b0   :  { %v12379_v48 = vsub.f32 %v12175_v11, %v5634_v13  ;;  %v12382_v24 = vsub.f32 %v12242_v21, %v5634_v13  ;;  %v12385_v42 = vsub.f32 %v12327_v25, %v5634_v13 }
 0x5b1   :  { %v5643_v52 = vcombine.high %v5641_v51, %v5641_v51  ;;  %v5645_v31 = vrot.slane %v5642_v28, 1  ;;  %v5646_v15 = vrot.slane %v5641_v51, 1  ;;  %v12388_v0 = vsub.f32 %v12136_v18, %v5644_v19 }
 0x5b2   :  { %v12391_v16 = vsub.f32 %v12138_v58, %v5642_v28  ;;  %v12394_v63 = vsub.f32 %v12150_v17, %v5641_v51  ;;  %v12397_v11 = vsub.f32 %v12179_v46, %v5644_v19  ;;  %v12400_v21 = vsub.f32 %v12181_v20, %v5642_v28 }
 0x5b3   :  { %v5647_v25 = vrot.slane %v5643_v52, 1  ;;  %v12403_v3 = vsub.f32 %v12143_v56, %v5645_v31  ;;  %v12406_v6 = vsub.f32 %v12157_v9, %v5646_v15  ;;  %v12409_v18 = vsub.f32 %v12159_v49, %v5643_v52 }
 0x5b4   :  { %v12412_v58 = vsub.f32 %v12191_v38, %v5645_v31  ;;  %v12415_v17 = vsub.f32 %v12223_v45, %v5641_v51  ;;  %v12418_v46 = vsub.f32 %v12227_v61, %v5646_v15  ;;  %v12421_v20 = vsub.f32 %v12229_v23, %v5643_v52 }
 0x5b5   :  { %v12424_v56 = vsub.f32 %v12165_v32, %v5647_v25  ;;  %v12427_v9 = vsub.f32 %v12235_v1, %v5647_v25  ;;  %v12430_v49 = vsub.f32 %v12248_v22, %v5644_v19  ;;  %v12433_v38 = vsub.f32 %v12250_v5, %v5642_v28 }
 0x5b6   :  { %v12436_v45 = vsub.f32 %v12256_v37, %v5645_v31  ;;  %v12439_v61 = vsub.f32 %v12263_v59, %v5641_v51  ;;  %v12442_v23 = vsub.f32 %v12268_v60, %v5646_v15  ;;  %v12445_v32 = vsub.f32 %v12271_v14, %v5643_v52 }
 0x5b7   :  { %v12448_v1 = vsub.f32 %v12273_v50, %v5647_v25  ;;  %v12451_v22 = vsub.f32 %v12330_v7, %v5644_v19  ;;  %v12454_v5 = vsub.f32 %v12332_v54, %v5642_v28  ;;  %v12457_v37 = vsub.f32 %v12335_v40, %v5645_v31 }
 0x5b8   :  { %13457 = vst [vmem:[#allocation28_spill] sm:$0xff] %v12436_v45  ;;  %13458 = vst [vmem:[#allocation29_spill] sm:$0xff] %v12439_v61  ;;  %v12460_v59 = vsub.f32 %v12343_v47, %v5641_v51  ;;  %v12463_v60 = vsub.f32 %v12349_v12, %v5646_v15  ;;  %v12466_v14 = vsub.f32 %v12351_v44, %v5643_v52 }
 0x5b9   :  { %13459 = vst [vmem:[#allocation30_spill] sm:$0xff] %v12442_v23  ;;  %13460 = vst [vmem:[#allocation31_spill] sm:$0xff] %v12445_v32  ;;  %v12469_v50 = vsub.f32 %v12356_v27, %v5647_v25  ;;  %v12473_v7 = vmul.f32 %v12376_v53, %v12376_v53  ;;  %v12477_v54 = vmul.f32 %v12388_v0, %v12388_v0 }
 0x5ba   :  { %13461 = vst [vmem:[#allocation32_spill] sm:$0xff] %v12448_v1  ;;  %13462 = vst [vmem:[#allocation33_spill] sm:$0xff] %v12451_v22  ;;  %v12481_v40 = vmul.f32 %v12391_v16, %v12391_v16  ;;  %v12485_v47 = vmul.f32 %v12403_v3, %v12403_v3  ;;  %v12489_v12 = vmul.f32 %v12394_v63, %v12394_v63 }
 0x5bb   :  { %13463 = vst [vmem:[#allocation34_spill] sm:$0xff] %v12454_v5  ;;  %13464 = vst [vmem:[#allocation35_spill] sm:$0xff] %v12457_v37  ;;  %v12493_v44 = vmul.f32 %v12406_v6, %v12406_v6  ;;  %v12497_v27 = vmul.f32 %v12409_v18, %v12409_v18  ;;  %v12501_v2 = vmul.f32 %v12424_v56, %v12424_v56 }
 0x5bc   :  { %13465 = vst [vmem:[#allocation36_spill] sm:$0xff] %v12460_v59  ;;  %13466 = vst [vmem:[#allocation37_spill] sm:$0xff] %v12463_v60  ;;  %v5696_v26 = vmul.f32 %v12379_v48, %v12379_v48  ;;  %v5697_v35 = vmul.f32 %v12397_v11, %v12397_v11  ;;  %v5698_v36 = vmul.f32 %v12400_v21, %v12400_v21 }
 0x5bd   :  { %13467 = vst [vmem:[#allocation38_spill] sm:$0xff] %v12466_v14  ;;  %13468 = vst [vmem:[#allocation39_spill] sm:$0xff] %v12469_v50  ;;  %v12511_v4 = vmul.f32 %v12412_v58, %v12412_v58  ;;  %v12515_v33 = vmul.f32 %v12415_v17, %v12415_v17  ;;  %v12519_v10 = vmul.f32 %v12418_v46, %v12418_v46 }
 0x5be   :  { %v12523_v29 = vmul.f32 %v12421_v20, %v12421_v20  ;;  %v12527_v57 = vmul.f32 %v12427_v9, %v12427_v9  ;;  %v5704_v43 = vmul.f32 %v12382_v24, %v12382_v24  ;;  %v5705_v41 = vmul.f32 %v12430_v49, %v12430_v49 }
 0x5bf   :  { %v5706_v55 = vmul.f32 %v12433_v38, %v12433_v38  ;;  %v5707_v39 = vmul.f32 %v12436_v45, %v12436_v45  ;;  %v5708_v13 = vmul.f32 %v12439_v61, %v12439_v61  ;;  %v12541_v51 = vmul.f32 %v12442_v23, %v12442_v23 }
 0x5c0   :  { %v12545_v28 = vmul.f32 %v12445_v32, %v12445_v32  ;;  %v12549_v19 = vmul.f32 %v12448_v1, %v12448_v1  ;;  %v5712_v52 = vmul.f32 %v12385_v42, %v12385_v42  ;;  %v5713_v31 = vmul.f32 %v12451_v22, %v12451_v22 }
 0x5c1   :  { %v5714_v15 = vmul.f32 %v12454_v5, %v12454_v5  ;;  %v5715_v25 = vmul.f32 %v12457_v37, %v12457_v37  ;;  %v5716_v34 = vmul.f32 %v12460_v59, %v12460_v59  ;;  %v5717_v30 = vmul.f32 %v12463_v60, %v12463_v60 }
 0x5c2   :  { %v5718_v1 = vmul.f32 %v12466_v14, %v12466_v14  ;;  %v5719_v32 = vmul.f32 %v12469_v50, %v12469_v50  ;;  %v5755_v22 = vrot.slane %v12473_v7, %v9902_v8  ;;  %v5759_v5 = vrot.slane %v12477_v54, %v9902_v8 }
 0x5c3   :  { %v5763_v37 = vrot.slane %v12481_v40, %v9902_v8  ;;  %v5767_v59 = vrot.slane %v12485_v47, %v9902_v8  ;;  %v5771_v60 = vrot.slane %v12489_v12, %v9902_v8  ;;  %v5775_v14 = vrot.slane %v12493_v44, %v9902_v8 }
 0x5c4   :  { %v5779_v50 = vrot.slane %v12497_v27, %v9902_v8  ;;  %v5783_v7 = vrot.slane %v12501_v2, %v9902_v8  ;;  %v5787_v54 = vrot.slane %v5696_v26, %v9902_v8  ;;  %v5791_v23 = vrot.slane %v5697_v35, %v9902_v8 }
 0x5c5   :  { %v5795_v40 = vrot.slane %v5698_v36, %v9902_v8  ;;  %v5799_v47 = vrot.slane %v12511_v4, %v9902_v8  ;;  %v5803_v12 = vrot.slane %v12515_v33, %v9902_v8  ;;  %v5807_v44 = vrot.slane %v12519_v10, %v9902_v8 }
 0x5c6   :  { %v5811_v27 = vrot.slane %v12523_v29, %v9902_v8  ;;  %v5815_v2 = vrot.slane %v12527_v57, %v9902_v8  ;;  %v5819_v26 = vrot.slane %v5704_v43, %v9902_v8  ;;  %v5823_v35 = vrot.slane %v5705_v41, %v9902_v8 }
 0x5c7   :  { %v5827_v36 = vrot.slane %v5706_v55, %v9902_v8  ;;  %v5831_v4 = vrot.slane %v5707_v39, %v9902_v8  ;;  %v5835_v61 = vrot.slane %v5708_v13, %v9902_v8  ;;  %v5839_v33 = vrot.slane %v12541_v51, %v9902_v8 }
 0x5c8   :  { %v5843_v10 = vrot.slane %v12545_v28, %v9902_v8  ;;  %v5847_v29 = vrot.slane %v12549_v19, %v9902_v8  ;;  %v5851_v57 = vrot.slane %v5712_v52, %v9902_v8  ;;  %v5855_v43 = vrot.slane %v5713_v31, %v9902_v8 }
 0x5c9   :  { %v5859_v41 = vrot.slane %v5714_v15, %v9902_v8  ;;  %v5863_v55 = vrot.slane %v5715_v25, %v9902_v8  ;;  %v5867_v39 = vrot.slane %v5716_v34, %v9902_v8  ;;  %v5871_v13 = vrot.slane %v5717_v30, %v9902_v8 }
 0x5ca   :  { %v5875_v51 = vrot.slane %v5718_v1, %v9902_v8  ;;  %v5879_v45 = vrot.slane %v5719_v32, %v9902_v8  ;;  %v5880_v28 = vsel %vm5568_vm6, %v5759_v5, %v5755_v22  ;;  %v5887_v19 = vsel %vm5568_vm6, %v5791_v23, %v5787_v54 }
 0x5cb   :  { %v5894_v52 = vsel %vm5568_vm6, %v5823_v35, %v5819_v26  ;;  %v5901_v31 = vsel %vm5568_vm6, %v5855_v43, %v5851_v57  ;;  %v5881_v15 = vsel %vm5570_vm7, %v5763_v37, %v5880_v28  ;;  %v5888_v25 = vsel %vm5570_vm7, %v5795_v40, %v5887_v19 }
 0x5cc   :  { %v5895_v34 = vsel %vm5570_vm7, %v5827_v36, %v5894_v52  ;;  %v5902_v30 = vsel %vm5570_vm7, %v5859_v41, %v5901_v31  ;;  %v5882_v1 = vsel %vm5572_vm8, %v5767_v59, %v5881_v15  ;;  %v5889_v32 = vsel %vm5572_vm8, %v5799_v47, %v5888_v25  ;;  %v5094_v31 = vld [vmem:[%s13281_s7] sm:$0x1] }
 0x5cd   :  { %v5896_v22 = vsel %vm5572_vm8, %v5831_v4, %v5895_v34  ;;  %v5903_v23 = vsel %vm5572_vm8, %v5863_v55, %v5902_v30  ;;  %v5883_v5 = vsel %vm5574_vm9, %v5771_v60, %v5882_v1  ;;  %v5890_v54 = vsel %vm5574_vm9, %v5803_v12, %v5889_v32 }
 0x5ce   :  { %v5897_v37 = vsel %vm5574_vm9, %v5835_v61, %v5896_v22  ;;  %v5904_v40 = vsel %vm5574_vm9, %v5867_v39, %v5903_v23  ;;  %v5884_v26 = vsel %vm5576_vm10, %v5775_v14, %v5883_v5  ;;  %v5891_v35 = vsel %vm5576_vm10, %v5807_v44, %v5890_v54 }
 0x5cf   :  { %v5898_v59 = vsel %vm5576_vm10, %v5839_v33, %v5897_v37  ;;  %v5905_v47 = vsel %vm5576_vm10, %v5871_v13, %v5904_v40  ;;  %v5885_v36 = vsel %vm5578_vm11, %v5779_v50, %v5884_v26  ;;  %v5892_v4 = vsel %vm5578_vm11, %v5811_v27, %v5891_v35 }
 0x5d0   :  { %v5899_v60 = vsel %vm5578_vm11, %v5843_v10, %v5898_v59  ;;  %v5906_v12 = vsel %vm5578_vm11, %v5875_v51, %v5905_v47  ;;  %v5886_v61 = vsel %vm5580_vm12, %v5783_v7, %v5885_v36  ;;  %v5893_v57 = vsel %vm5580_vm12, %v5815_v2, %v5892_v4 }
 0x5d1   :  { %v5900_v14 = vsel %vm5580_vm12, %v5847_v29, %v5899_v60  ;;  %v5907_v44 = vsel %vm5580_vm12, %v5879_v45, %v5906_v12  ;;  %v5912_v33 = vsel %vm5607_vm5, %v5886_v61, 0.0  ;;  %v5913_v43 = vsel %vm5607_vm5, %v5893_v57, 0.0  ;;  %v8163_v45 = vld [vmem:[%s13282_s8] ss:$0 sm:$0xff] }
 0x5d2   :  { %v5914_v41 = vadd.f32 %v5913_v43, %v5912_v33  ;;  %v5915_v50 = vsel %vm5607_vm5, %v5900_v14, 0.0  ;;  %v5917_v10 = vsel %vm5607_vm5, %v5907_v44, 0.0  ;;  %v6000_v52 = vcombine.high %v8163_v45, %v8163_v45 }
 0x5d3   :  { %v12654_v15 = vrot.slane %v8163_v45, %v12121_v62  ;;  %v13478_v45 = vld [vmem:[#allocation37_spill] sm:$0xff] }
 0x5d4   :  { %v5916_v27 = vadd.f32 %v5915_v50, %v5914_v41  ;;  %v12657_v34 = vrot.slane %v6000_v52, %v12121_v62  ;;  %v13479_v52 = vld [vmem:[#allocation38_spill] sm:$0xff] }
 0x5d5   :  { %v12661_v1 = vcombine.high %v12654_v15, %v12654_v15  ;;  %v12670_v54 = vrot.slane %v12654_v15, 1 }
 0x5d6   :  { %v5918_v55 = vadd.f32 %v5917_v10, %v5916_v27  ;;  %v12666_v22 = vcombine.high %v12657_v34, %v12657_v34  ;;  %v12676_v40 = vrot.slane %v12657_v34, 1 }
 0x5d7   :  { %v12673_v37 = vrot.slane %v12661_v1, 1 }
 0x5d8   :  { %v5919_v39 = vrot.slane %v5918_v55, 4  ;;  %v12684_v12 = vrot.slane %v12666_v22, 1 }
 0x5da   :  { %v5920_v13 = vadd.f32 %v5919_v39, %v5918_v55  ;;  %v13469_v55 = vld [vmem:[#allocation28_spill] sm:$0xff]  ;;  %v13470_v39 = vld [vmem:[#allocation29_spill] sm:$0xff] }
 0x5dc   :  { %v5921_v7 = vrot.slane %v5920_v13, 2 }
 0x5de   :  { %v5922_v51 = vadd.f32 %v5921_v7, %v5920_v13  ;;  %v13471_v13 = vld [vmem:[#allocation30_spill] sm:$0xff]  ;;  %v13472_v7 = vld [vmem:[#allocation31_spill] sm:$0xff] }
 0x5e0   :  { %v5923_v2 = vrot.slane %v5922_v51, 1 }
 0x5e2   :  { %v5924_v28 = vadd.f32 %v5923_v2, %v5922_v51  ;;  %v13473_v51 = vld [vmem:[#allocation32_spill] sm:$0xff]  ;;  %v13474_v2 = vld [vmem:[#allocation33_spill] sm:$0xff] }
 0x5e4   :  { %v5925_v29 = vmul.f32 0.03125, %v5924_v28  ;;  %v13475_v28 = vld [vmem:[#allocation34_spill] sm:$0xff] }
 0x5e6   :  { %v5926_v19 = vadd.f32 1e-05, %v5925_v29  ;;  %v13476_v29 = vld [vmem:[#allocation35_spill] sm:$0xff] }
 0x5e8   :  { %9560 = vrsqrt.f32 %v5926_v19  ;;  %v13477_v19 = vld [vmem:[#allocation36_spill] sm:$0xff] }
 0x5f2   :  { %v9561_v25 = vpop.eup %9560 }
 0x5f3   :  { %v5928_v30 = vmul.f32 %v9561_v25, %v5094_v31  ;;  %v13480_v25 = vld [vmem:[#allocation39_spill] sm:$0xff] }
 0x5f5   :  { %v5933_v32 = vrot.slane %v5928_v30, %v9902_v8 }
 0x5f7   :  { %v5934_v23 = vcombine.high %v5933_v32, %v5933_v32  ;;  %v5941_v5 = vrot.slane %v5933_v32, %v12121_v62 }
 0x5f9   :  { %v5948_v26 = vrot.slane %v5934_v23, %v12121_v62  ;;  %v5949_v35 = vcombine.high %v5941_v5, %v5941_v5  ;;  %v5951_v59 = vrot.slane %v5941_v5, 1  ;;  %v5963_v47 = vmul.f32 %v5941_v5, %v12376_v53 }
 0x5fa   :  { %v5971_v36 = vmul.f32 %v5941_v5, %v12379_v48  ;;  %v5979_v4 = vmul.f32 %v5941_v5, %v12382_v24  ;;  %v5987_v60 = vmul.f32 %v5941_v5, %v12385_v42 }
 0x5fb   :  { %v5950_v61 = vcombine.high %v5948_v26, %v5948_v26  ;;  %v5952_v57 = vrot.slane %v5949_v35, 1  ;;  %v5953_v14 = vrot.slane %v5948_v26, 1  ;;  %v5964_v44 = vmul.f32 %v5951_v59, %v12388_v0 }
 0x5fc   :  { %v5965_v33 = vmul.f32 %v5949_v35, %v12391_v16  ;;  %v5967_v43 = vmul.f32 %v5948_v26, %v12394_v63  ;;  %v5972_v53 = vmul.f32 %v5951_v59, %v12397_v11  ;;  %v5973_v48 = vmul.f32 %v5949_v35, %v12400_v21 }
 0x5fd   :  { %v5954_v41 = vrot.slane %v5950_v61, 1  ;;  %v5966_v24 = vmul.f32 %v5952_v57, %v12403_v3  ;;  %v5968_v42 = vmul.f32 %v5953_v14, %v12406_v6  ;;  %v5969_v50 = vmul.f32 %v5950_v61, %v12409_v18 }
 0x5fe   :  { %v5974_v27 = vmul.f32 %v5952_v57, %v12412_v58  ;;  %v5975_v10 = vmul.f32 %v5948_v26, %v12415_v17  ;;  %v5976_v0 = vmul.f32 %v5953_v14, %v12418_v46  ;;  %v5977_v16 = vmul.f32 %v5950_v61, %v12421_v20 }
 0x5ff   :  { %v5970_v63 = vmul.f32 %v5954_v41, %v12424_v56  ;;  %v5978_v11 = vmul.f32 %v5954_v41, %v12427_v9  ;;  %v5980_v21 = vmul.f32 %v5951_v59, %v12430_v49  ;;  %v5981_v3 = vmul.f32 %v5949_v35, %v12433_v38 }
 0x600   :  { %v5982_v6 = vmul.f32 %v5952_v57, %v13469_v55  ;;  %v5983_v18 = vmul.f32 %v5948_v26, %v13470_v39  ;;  %v5984_v58 = vmul.f32 %v5953_v14, %v13471_v13  ;;  %v5985_v17 = vmul.f32 %v5950_v61, %v13472_v7 }
 0x601   :  { %v5986_v46 = vmul.f32 %v5954_v41, %v13473_v51  ;;  %v5988_v20 = vmul.f32 %v5951_v59, %v13474_v2  ;;  %v5989_v56 = vmul.f32 %v5949_v35, %v13475_v28  ;;  %v5990_v9 = vmul.f32 %v5952_v57, %v13476_v29 }
 0x602   :  { %v5991_v49 = vmul.f32 %v5948_v26, %v13477_v19  ;;  %v5992_v38 = vmul.f32 %v5953_v14, %v13478_v45  ;;  %v5993_v31 = vmul.f32 %v5950_v61, %v13479_v52  ;;  %v5994_v30 = vmul.f32 %v5954_v41, %v13480_v25 }
 0x603   :  { %v12715_v32 = vadd.f32 %v12654_v15, %v5963_v47  ;;  %v12718_v23 = vadd.f32 %v12670_v54, %v5964_v44  ;;  %v12721_v5 = vadd.f32 %v12661_v1, %v5965_v33  ;;  %v12724_v35 = vadd.f32 %v12673_v37, %v5966_v24 }
 0x604   :  { %v6033_v26 = vadd.f32 %v12657_v34, %v5967_v43  ;;  %v6034_v59 = vadd.f32 %v12676_v40, %v5968_v42  ;;  %v12729_v61 = vadd.f32 %v12666_v22, %v5969_v50  ;;  %v12732_v57 = vadd.f32 %v12684_v12, %v5970_v63 }
 0x605   :  { %v6037_v47 = vadd.f32 %v12654_v15, %v5971_v36  ;;  %v6038_v14 = vadd.f32 %v12670_v54, %v5972_v53  ;;  %v6039_v44 = vadd.f32 %v12661_v1, %v5973_v48  ;;  %v12738_v33 = vadd.f32 %v12673_v37, %v5974_v27 }
 0x606   :  { %v6041_v41 = vadd.f32 %v12657_v34, %v5975_v10  ;;  %v6042_v43 = vadd.f32 %v12676_v40, %v5976_v0  ;;  %v6043_v24 = vadd.f32 %v12666_v22, %v5977_v16  ;;  %v6044_v42 = vadd.f32 %v12684_v12, %v5978_v11 }
 0x607   :  { %v12745_v50 = vadd.f32 %v12654_v15, %v5979_v4  ;;  %v12748_v36 = vadd.f32 %v12670_v54, %v5980_v21  ;;  %v12751_v53 = vadd.f32 %v12661_v1, %v5981_v3  ;;  %v12754_v48 = vadd.f32 %v12673_v37, %v5982_v6 }
 0x608   :  { %v6049_v27 = vadd.f32 %v12657_v34, %v5983_v18  ;;  %v6050_v10 = vadd.f32 %v12676_v40, %v5984_v58  ;;  %v6051_v0 = vadd.f32 %v12666_v22, %v5985_v17  ;;  %v6052_v16 = vadd.f32 %v12684_v12, %v5986_v46 }
 0x609   :  { %v6053_v4 = vadd.f32 %v12654_v15, %v5987_v60  ;;  %v6054_v63 = vadd.f32 %v12670_v54, %v5988_v20  ;;  %v6055_v11 = vadd.f32 %v12661_v1, %v5989_v56  ;;  %v12764_v21 = vadd.f32 %v12673_v37, %v5990_v9 }
 0x60a   :  { %v6057_v3 = vadd.f32 %v12657_v34, %v5991_v49  ;;  %v6058_v55 = vadd.f32 %v12676_v40, %v5992_v38  ;;  %v6059_v6 = vadd.f32 %v12666_v22, %v5993_v31  ;;  %v6060_v39 = vadd.f32 %v12684_v12, %v5994_v30 }
 0x60b   :  { %v6127_v18 = vrot.slane %v12715_v32, %v9902_v8  ;;  %v6131_v15 = vrot.slane %v12718_v23, %v9902_v8  ;;  %v6135_v1 = vrot.slane %v12721_v5, %v9902_v8  ;;  %v6139_v54 = vrot.slane %v12724_v35, %v9902_v8 }
 0x60c   :  { %v6143_v34 = vrot.slane %v6033_v26, %v9902_v8  ;;  %v6147_v37 = vrot.slane %v6034_v59, %v9902_v8  ;;  %v6151_v22 = vrot.slane %v12729_v61, %v9902_v8  ;;  %v6155_v40 = vrot.slane %v12732_v57, %v9902_v8 }
 0x60d   :  { %v6159_v60 = vrot.slane %v6037_v47, %v9902_v8  ;;  %v6163_v12 = vrot.slane %v6038_v14, %v9902_v8  ;;  %v6167_v13 = vrot.slane %v6039_v44, %v9902_v8  ;;  %v6171_v58 = vrot.slane %v12738_v33, %v9902_v8 }
 0x60e   :  { %v6175_v7 = vrot.slane %v6041_v41, %v9902_v8  ;;  %v6179_v17 = vrot.slane %v6042_v43, %v9902_v8  ;;  %v6183_v51 = vrot.slane %v6043_v24, %v9902_v8  ;;  %v6187_v46 = vrot.slane %v6044_v42, %v9902_v8 }
 0x60f   :  { %v6191_v2 = vrot.slane %v12745_v50, %v9902_v8  ;;  %v6195_v20 = vrot.slane %v12748_v36, %v9902_v8  ;;  %v6199_v28 = vrot.slane %v12751_v53, %v9902_v8  ;;  %v6203_v56 = vrot.slane %v12754_v48, %v9902_v8 }
 0x610   :  { %v6207_v29 = vrot.slane %v6049_v27, %v9902_v8  ;;  %v6211_v9 = vrot.slane %v6050_v10, %v9902_v8  ;;  %v6215_v19 = vrot.slane %v6051_v0, %v9902_v8  ;;  %v6219_v49 = vrot.slane %v6052_v16, %v9902_v8 }
 0x611   :  { %v6223_v45 = vrot.slane %v6053_v4, %v9902_v8  ;;  %v6227_v38 = vrot.slane %v6054_v63, %v9902_v8  ;;  %v6231_v52 = vrot.slane %v6055_v11, %v9902_v8  ;;  %v6235_v31 = vrot.slane %v12764_v21, %v9902_v8  ;;  %v9534_v63 = vld [vmem:[#allocation5 + $0x24] ss:$0 sps:$4 sm:$0xff]  }
 0x612   :  { %v6239_v25 = vrot.slane %v6057_v3, %v9902_v8  ;;  %v6243_v30 = vrot.slane %v6058_v55, %v9902_v8  ;;  %v6247_v32 = vrot.slane %v6059_v6, %v9902_v8  ;;  %v6251_v23 = vrot.slane %v6060_v39, %v9902_v8  ;;  %v9532_v21 = vld [vmem:[#allocation5 + $0x4] ss:$0 sps:$4 sm:$0xff]   ;;  %v12846_v3 = vld [vmem:[#allocation5 + $0x8] sm:$0xff]  ;;  %v9535_v55 = vld [vmem:[#allocation5 + $0x34] ss:$0 sps:$4 sm:$0xff]  }
 0x613   :  { %v6255_v5 = vsel %vm5568_vm6, %v6147_v37, %v6143_v34  ;;  %v6258_v35 = vsel %vm5568_vm6, %v6163_v12, %v6159_v60  ;;  %v6261_v26 = vsel %vm5568_vm6, %v6179_v17, %v6175_v7  ;;  %v6267_v59 = vsel %vm5568_vm6, %v6211_v9, %v6207_v29  ;;  %v9533_v6 = vld [vmem:[#allocation5 + $0x14] ss:$0 sps:$4 sm:$0xff]   ;;  %v9536_v39 = vld [vmem:[#allocation5 + $0x64] ss:$0 sps:$4 sm:$0xff]  }
 0x614   :  { %v6256_v61 = vsel %vm5570_vm7, %v6151_v22, %v6255_v5  ;;  %v6259_v57 = vsel %vm5570_vm7, %v6167_v13, %v6258_v35  ;;  %v6262_v47 = vsel %vm5570_vm7, %v6183_v51, %v6261_v26  ;;  %v6268_v14 = vsel %vm5570_vm7, %v6215_v19, %v6267_v59  ;;  %v9539_v29 = vld [vmem:[#allocation5 + $0x94] ss:$0 sps:$4 sm:$0xff]  }
 0x615   :  { %v6257_v44 = vsel %vm5572_vm8, %v6155_v40, %v6256_v61  ;;  %v6260_v33 = vsel %vm5572_vm8, %v6171_v58, %v6259_v57  ;;  %v6263_v41 = vsel %vm5572_vm8, %v6187_v46, %v6262_v47  ;;  %v6269_v43 = vsel %vm5572_vm8, %v6219_v49, %v6268_v14  ;;  %v9538_v58 = vld [vmem:[#allocation5 + $0x84] ss:$0 sps:$4 sm:$0xff]  }
 0x616   :  { %v6270_v24 = vsel %vm5568_vm6, %v6227_v38, %v6223_v45  ;;  %v6273_v42 = vsel %vm5568_vm6, %v6243_v30, %v6239_v25  ;;  %6286 = vst.msk [vmem:[#allocation5 + $0x28] sm:$0xf] %vm6074_vm13, %v6257_v44  ;;  %6288 = vst.msk [vmem:[#allocation5 + $0x48] sm:$0xf] %vm6074_vm13, %v6263_v41  ;;  %v6252_v50 = vsel %vm5568_vm6, %v6131_v15, %v6127_v18  ;;  %v9537_v18 = vld [vmem:[#allocation5 + $0x74] ss:$0 sps:$4 sm:$0xff]  }
 0x617   :  { %6290 = vst.msk [vmem:[#allocation5 + $0x88] sm:$0xf] %vm6074_vm13, %v6269_v43  ;;  %6287 = vst.msk [vmem:[#allocation5 + $0x38] sm:$0xf] %vm6074_vm13, %v6260_v33  ;;  %v6264_v36 = vsel %vm5568_vm6, %v6195_v20, %v6191_v2  ;;  %v6271_v53 = vsel %vm5570_vm7, %v6231_v52, %v6270_v24  ;;  %v6274_v48 = vsel %vm5570_vm7, %v6247_v32, %v6273_v42  ;;  %v8166_v15 = vrot.slane %v9534_v63, 11  ;;  %v6475_v52 = vld [vmem:[#allocation11 + $0x50] sm:$0xff] }
 0x618   :  { %v6253_v27 = vsel %vm5570_vm7, %v6135_v1, %v6252_v50  ;;  %v6265_v10 = vsel %vm5570_vm7, %v6199_v28, %v6264_v36  ;;  %v6272_v0 = vsel %vm5572_vm8, %v6235_v31, %v6271_v53  ;;  %v6275_v16 = vsel %vm5572_vm8, %v6251_v23, %v6274_v48  ;;  %v12848_v1 = vld [vmem:[#allocation5 + $0x68] sm:$0xff]  ;;  %v6476_v31 = vld [vmem:[#allocation11 + $0x58] sm:$0xff]  ;;  %v6477_v44 = vld [vmem:[#allocation11 + $0x60] sm:$0xff] }
 0x619   :  { %v6254_v4 = vsel %vm5572_vm8, %v6139_v54, %v6253_v27  ;;  %v6266_v11 = vsel %vm5572_vm8, %v6203_v56, %v6265_v10  ;;  %6291 = vst.msk [vmem:[#allocation5 + $0x98] sm:$0xf] %vm6074_vm13, %v6272_v0  ;;  %6292 = vst.msk [vmem:[#allocation5 + $0xa8] sm:$0xf] %vm6074_vm13, %v6275_v16  ;;  %v8164_v54 = vrot.slane %v9532_v21, 11  ;;  %v6344_v34 = vrot.slane %v12846_v3, 7 }
 0x61a   :  { %6285 = vst.msk [vmem:[#allocation5 + $0x18] sm:$0xf] %vm6074_vm13, %v6254_v4  ;;  %6289 = vst.msk [vmem:[#allocation5 + $0x78] sm:$0xf] %vm6074_vm13, %v6266_v11  ;;  %v8167_v12 = vrot.slane %v9535_v55, 11  ;;  %v8165_v7 = vrot.slane %v9533_v6, 11  ;;  %v9177_v57 = vpack.c.bf16 %v6476_v31, %v6475_v52  ;;  %v6374_v16 = vcombine.high %v12846_v3, %v12846_v3 }
 0x61b   :  { %v8168_v17 = vrot.slane %v9536_v39, 11  ;;  %v6360_v51 = vrot.slane %v12848_v1, 7  ;;  %v8169_v46 = vrot.slane %v9537_v18, 11  ;;  %v6345_v9 = vsel %vm12857_vm14, %v8164_v54, %v6344_v34  ;;  %v6478_v33 = vld [vmem:[#allocation11 + $0x68] sm:$0xff]  ;;  %v13483_v41 = vld [vmem:[#allocation26_spill] sm:$0xff]  ;;  %v6481_v10 = vld [vmem:[#allocation11 + $0x80] sm:$0xff] }
 0x61c   :  { %v8170_v25 = vrot.slane %v9538_v58, 11  ;;  %v8171_v59 = vrot.slane %v9539_v29, 11  ;;  %v9181_v42 = vpack.c.bf16 %v6478_v33, %v6477_v44  ;;  %v6479_v36 = vld [vmem:[#allocation11 + $0x70] sm:$0xff]  ;;  %v6480_v53 = vld [vmem:[#allocation11 + $0x78] sm:$0xff]  ;;  %v6482_v0 = vld [vmem:[#allocation11 + $0x88] sm:$0xff]  ;;  %v8172_v55 = vrot.slane %v12846_v3, 9 }
 0x61d   :  { %v12851_v37 = vld [vmem:[#allocation5 + $0x28] sm:$0xff]  ;;  %v6361_v5 = vsel %vm12857_vm14, %v8168_v17, %v6360_v51  ;;  %v9185_v27 = vpack.c.bf16 %v6480_v53, %v6479_v36  ;;  %v9189_v63 = vpack.c.bf16 %v6482_v0, %v6481_v10  ;;  %v6483_v11 = vld [vmem:[#allocation11 + $0x90] sm:$0xff]  ;;  %v6484_v21 = vld [vmem:[#allocation11 + $0x98] sm:$0xff]  ;;  %v6387_v6 = vrot.slane %v6374_v16, 5 }
 0x61e   :  { %v12853_v22 = vld [vmem:[#allocation5 + $0x38] sm:$0xff]  ;;  %v6352_v60 = vrot.slane %v12851_v37, 7  ;;  %v12864_v2 = vld [vmem:[#allocation5 + $0x88] sm:$0xff]  ;;  %v9193_v54 = vpack.c.bf16 %v6484_v21, %v6483_v11  ;;  %v6491_v53 = vld [vmem:[#allocation11 + $0xd0] sm:$0xff] }
 0x61f   :  { %v6356_v13 = vrot.slane %v12853_v22, 7  ;;  %v6368_v30 = vrot.slane %v12864_v2, 7  ;;  %v6488_v29 = vld [vmem:[#allocation11 + $0xb8] sm:$0xff]  ;;  %v6377_v52 = vcombine.high %v12853_v22, %v12853_v22  ;;  %v8175_v36 = vrot.slane %v12853_v22, 9  ;;  %v7847_v18 = vld [vmem:[%s13287_s13 + $0x10] sm:$0xff] }
 0x620   :  { %v12870_v28 = vsel %vm12857_vm14, %v8166_v15, %v6352_v60  ;;  %v12878_v45 = vld [vmem:[#allocation5 + $0x98] sm:$0xff]  ;;  %v12937_v15 = vcombine.low %v12851_v37, %v12853_v22 }
 0x621   :  { %v12866_v20 = vld [vmem:[#allocation5 + $0x18] sm:$0xff]  ;;  %v12882_v38 = vsel %vm12857_vm14, %v8167_v12, %v6356_v13  ;;  %v6372_v61 = vrot.slane %v12878_v45, 7  ;;  %v12905_v14 = vsel %vm12857_vm14, %v8170_v25, %v6368_v30  ;;  %v6485_v12 = vld [vmem:[#allocation11 + $0xa0] sm:$0xff]  ;;  %v6388_v13 = vsel %vm12931_vm1, %v8172_v55, %v6387_v6 }
 0x622   :  { %v12872_v56 = vld [vmem:[#allocation5 + $0x78] sm:$0xff]  ;;  %v6348_v19 = vrot.slane %v12866_v20, 7  ;;  %v12891_v23 = vcombine.low %v12870_v28, %v12882_v38  ;;  %v6634_v50 = vcombine.low %v12846_v3, %v12866_v20  ;;  %v6375_v4 = vcombine.high %v12866_v20, %v12866_v20  ;;  %v6486_v3 = vld [vmem:[#allocation11 + $0xa8] sm:$0xff]  ;;  %v6489_v30 = vld [vmem:[#allocation11 + $0xc0] sm:$0xff] }
 0x623   :  { %v6364_v49 = vrot.slane %v12872_v56, 7  ;;  %v12913_v43 = vsel %vm12857_vm14, %v8171_v59, %v6372_v61  ;;  %v6927_v48 = vcombine.low %v12872_v56, %v12864_v2  ;;  %v8173_v34 = vrot.slane %v12866_v20, 9 }
 0x624   :  { %v12887_v32 = vsel %vm12857_vm14, %v8165_v7, %v6348_v19  ;;  %v12917_v24 = vcombine.low %v12905_v14, %v12913_v43  ;;  %v6391_v39 = vrot.slane %v6375_v4, 5  ;;  %v6636_v60 = vcombine.low %v12848_v1, %v12872_v56 }
 0x625   :  { %v12897_v35 = vsel %vm12857_vm14, %v8169_v46, %v6364_v49  ;;  %v6537_v26 = vcombine.low %v6345_v9, %v12887_v32  ;;  %v12953_v7 = vcombine.low %v12864_v2, %v12878_v45  ;;  %v9197_v17 = vpack.c.bf16 %v6486_v3, %v6485_v12  ;;  %v6487_v46 = vld [vmem:[#allocation11 + $0xb0] sm:$0xff] }
 0x626   :  { %v6539_v47 = vcombine.low %v6361_v5, %v12897_v35  ;;  %v12948_v58 = vsel %vm12931_vm1, %v8173_v34, %v6391_v39  ;;  %v6376_v9 = vcombine.high %v12851_v37, %v12851_v37  ;;  %v6378_v19 = vcombine.high %v12848_v1, %v12848_v1  ;;  %v6490_v5 = vld [vmem:[#allocation11 + $0xc8] sm:$0xff] }
 0x627   :  { %8844 = vmatprep.mubr.msk.f32.mxu1 %vm5607_vm5, %v6537_v26  ;;  %v6731_v51 = vcombine.low %v6388_v13, %v12948_v58  ;;  %v6379_v49 = vcombine.high %v12872_v56, %v12872_v56  ;;  %v9201_v31 = vpack.c.bf16 %v6488_v29, %v6487_v46  ;;  %v6380_v26 = vcombine.high %v12864_v2, %v12864_v2  ;;  %v6494_v34 = vld [vmem:[#allocation11 + $0xe8] sm:$0xff]  ;;  %v9546_v46 = vld [vmem:[#allocation5 + $0x44] ss:$0 sps:$4 sm:$0xff]  }
 0x628   :  { %8845 = vmatmul.mubr.msk.f32.vlgmr.msra.gmra.mrb[24].mxu1 %vm5607_vm5, %v12891_v23  ;;  %v6395_v25 = vrot.slane %v6376_v9, 5  ;;  %v8176_v59 = vrot.slane %v12848_v1, 9  ;;  %v6403_v61 = vrot.slane %v6378_v19, 5  ;;  %v6399_v44 = vrot.slane %v6377_v52, 5  ;;  %v13015_v29 = vld [vmem:[#allocation5 + $0x48] sm:$0xff]  ;;  %v6497_v52 = vld [vmem:[#allocation11 + $0x100] sm:$0xff] }
 0x629   :  { %9176 = vmatpush3.bf16.msra.mxu1 %v13483_v41  ;;  %8847 = vmatprep.mubr.msk.f32.mxu1 %vm5607_vm5, %v6539_v47  ;;  %v8174_v47 = vrot.slane %v12851_v37, 9  ;;  %v6381_v33 = vcombine.high %v12878_v45, %v12878_v45  ;;  %v9205_v41 = vpack.c.bf16 %v6490_v5, %v6489_v30  ;;  %v6411_v1 = vrot.slane %v6380_v26, 5 }
 0x62a   :  { %9178 = vmatprep.subr.bf16.mxu1 %v9177_v57  ;;  %v6404_v10 = vsel %vm12931_vm1, %v8176_v59, %v6403_v61  ;;  %v12987_v16 = vsel %vm12931_vm1, %v8175_v36, %v6399_v44  ;;  %v8178_v4 = vrot.slane %v12864_v2, 9  ;;  %v8179_v39 = vrot.slane %v12878_v45, 9  ;;  %v6499_v59 = vld [vmem:[#allocation11 + $0x110] sm:$0xff]  ;;  %v6500_v61 = vld [vmem:[#allocation11 + $0x118] sm:$0xff] }
 0x62b   :  { %v6828_v13 = vcombine.low %v12887_v32, %v12870_v28  ;;  %v8180_v19 = vrot.slane %v9546_v46, 11  ;;  %v13019_v28 = vld [vmem:[#allocation5 + $0xa8] sm:$0xff]  ;;  %v6830_v44 = vcombine.low %v12897_v35, %v12905_v14  ;;  %v6503_v35 = vld [vmem:[#allocation11 + $0x130] sm:$0xff]  ;;  %v6504_v14 = vld [vmem:[#allocation11 + $0x138] sm:$0xff] }
 0x62c   :  { %8848 = vmatmul.mubr.msk.f32.gmra.mrb[26].mxu1 %vm5607_vm5, %v12917_v24  ;;  %v12997_v6 = vsel %vm12931_vm1, %v8178_v4, %v6411_v1  ;;  %v6429_v26 = vrot.slane %v13019_v28, 7  ;;  %v6925_v1 = vcombine.low %v12866_v20, %v12851_v37  ;;  %v6926_v37 = vcombine.low %v12853_v22, %v13015_v29 }
 0x62d   :  { %9180 = vmatpush3.bf16.msra.mxu1 %v9177_v57  ;;  %8866 = vmatprep.mubr.msk.f32.mxu1 %vm5607_vm5, %v6634_v50  ;;  %v6407_v57 = vrot.slane %v6379_v49, 5  ;;  %v12976_v50 = vsel %vm12931_vm1, %v8174_v47, %v6395_v25  ;;  %v6425_v49 = vrot.slane %v13015_v29, 7  ;;  %v9547_v25 = vld [vmem:[#allocation5 + $0xa4] ss:$0 sps:$4 sm:$0xff]   ;;  %v9225_v47 = vpack.c.bf16 %v6500_v61, %v6499_v59  ;;  %v6519_v61 = vld [vmem:[#allocation11 + $0x1b0] sm:$0xff] }
 0x62e   :  { %9182 = vmatprep.subr.bf16.mxu1 %v9181_v42  ;;  %v12992_v11 = vcombine.low %v12976_v50, %v12987_v16  ;;  %v8181_v5 = vrot.slane %v9547_v25, 11  ;;  %v7022_v22 = vcombine.low %v12948_v58, %v12976_v50  ;;  %v8182_v58 = vrot.slane %v13015_v29, 9 }
 0x62f   :  { %v13023_v30 = vsel %vm12857_vm14, %v8180_v19, %v6425_v49  ;;  %v6516_v19 = vld [vmem:[#allocation11 + $0x198] sm:$0xff]  ;;  %v8183_v49 = vrot.slane %v13019_v28, 9 }
 0x631   :  { %9184 = vmatpush3.bf16.msra.mxu1 %v9181_v42  ;;  %v8177_v42 = vrot.slane %v12872_v56, 9 }
 0x632   :  { %9186 = vmatprep.subr.bf16.mxu1 %v9185_v27 }
 0x633   :  { %v12983_v0 = vsel %vm12931_vm1, %v8177_v42, %v6407_v57  ;;  %v6829_v57 = vcombine.low %v12882_v38, %v13023_v30  ;;  %v6502_v42 = vld [vmem:[#allocation11 + $0x128] sm:$0xff] }
 0x634   :  { %v6733_v55 = vcombine.low %v6404_v10, %v12983_v0  ;;  %v6506_v10 = vld [vmem:[#allocation11 + $0x148] sm:$0xff]  ;;  %v7024_v25 = vcombine.low %v12983_v0, %v12997_v6  ;;  %v13078_v0 = vld [vmem:[#allocation5 + $0x58] sm:$0xff] }
 0x635   :  { %9188 = vmatpush3.bf16.msra.mxu1 %v9185_v27  ;;  %v6492_v27 = vld [vmem:[#allocation11 + $0xd8] sm:$0xff] }
 0x636   :  { %9190 = vmatprep.subr.bf16.mxu1 %v9189_v63  ;;  %v9209_v21 = vpack.c.bf16 %v6492_v27, %v6491_v53  ;;  %v9233_v53 = vpack.c.bf16 %v6504_v14, %v6503_v35  ;;  %v6505_v27 = vld [vmem:[#allocation11 + $0x140] sm:$0xff] }
 0x637   :  { %v9237_v4 = vpack.c.bf16 %v6506_v10, %v6505_v27  ;;  %v6524_v27 = vld [vmem:[#allocation11 + $0x1d8] sm:$0xff] }
 0x638   :  { %8867 = vmatmul.mubr.msk.f32.vlgmr.msra.gmra.mrb[24].mxu1 %vm5607_vm5, %v12937_v15 }
 0x639   :  { %8869 = vmatprep.mubr.msk.f32.mxu1 %vm5607_vm5, %v6636_v60  ;;  %9192 = vmatpush3.bf16.msra.mxu1 %v9189_v63  ;;  %v6415_v63 = vrot.slane %v6381_v33, 5  ;;  %v13032_v33 = vsel %vm12857_vm14, %v8181_v5, %v6429_v26  ;;  %v6517_v5 = vld [vmem:[#allocation11 + $0x1a0] sm:$0xff]  ;;  %v6518_v26 = vld [vmem:[#allocation11 + $0x1a8] sm:$0xff] }
 0x63a   :  { %9194 = vmatprep.subr.bf16.mxu1 %v9193_v54  ;;  %v6831_v36 = vcombine.low %v12913_v43, %v13032_v33  ;;  %v6507_v43 = vld [vmem:[#allocation11 + $0x150] sm:$0xff] }
 0x63b   :  { %v13005_v60 = vsel %vm12931_vm1, %v8179_v39, %v6415_v63  ;;  %v6508_v63 = vld [vmem:[#allocation11 + $0x158] sm:$0xff]  ;;  %v6928_v39 = vcombine.low %v12878_v45, %v13019_v28  ;;  %v6514_v45 = vld [vmem:[#allocation11 + $0x188] sm:$0xff] }
 0x63c   :  { %8870 = vmatmul.mubr.msk.f32.gmra.mrb[26].mxu1 %vm5607_vm5, %v12953_v7  ;;  %v13009_v12 = vcombine.low %v12997_v6, %v13005_v60  ;;  %v9241_v20 = vpack.c.bf16 %v6508_v63, %v6507_v43  ;;  %v6525_v63 = vld [vmem:[#allocation11 + $0x1e0] sm:$0xff] }
 0x63d   :  { %9196 = vmatpush3.bf16.msra.mxu1 %v9193_v54  ;;  %8888 = vmatprep.mubr.msk.f32.mxu1 %vm5607_vm5, %v6731_v51  ;;  %v6493_v54 = vld [vmem:[#allocation11 + $0xe0] sm:$0xff]  ;;  %v6496_v51 = vld [vmem:[#allocation11 + $0xf8] sm:$0xff] }
 0x63e   :  { %9198 = vmatprep.subr.bf16.mxu1 %v9197_v17  ;;  %v9213_v3 = vpack.c.bf16 %v6494_v34, %v6493_v54  ;;  %v6511_v34 = vld [vmem:[#allocation11 + $0x170] sm:$0xff] }
 0x641   :  { %9200 = vmatpush3.bf16.msra.mxu1 %v9197_v17  ;;  %v6495_v17 = vld [vmem:[#allocation11 + $0xf0] sm:$0xff] }
 0x642   :  { %9202 = vmatprep.subr.bf16.mxu1 %v9201_v31  ;;  %v9217_v9 = vpack.c.bf16 %v6496_v51, %v6495_v17  ;;  %v6432_v17 = vcombine.high %v13019_v28, %v13019_v28 }
 0x644   :  { %v6439_v46 = vrot.slane %v6432_v17, 5 }
 0x645   :  { %9204 = vmatpush3.bf16.msra.mxu1 %v9201_v31  ;;  %v6498_v31 = vld [vmem:[#allocation11 + $0x108] sm:$0xff] }
 0x646   :  { %9206 = vmatprep.subr.bf16.mxu1 %v9205_v41  ;;  %v9221_v32 = vpack.c.bf16 %v6498_v31, %v6497_v52 }
 0x648   :  { %8889 = vmatmul.mubr.msk.f32.vlgmr.msra.gmra.mrb[24].mxu1 %vm5607_vm5, %v12992_v11 }
 0x649   :  { %8891 = vmatprep.mubr.msk.f32.mxu1 %vm5607_vm5, %v6733_v55  ;;  %9208 = vmatpush3.bf16.msra.mxu1 %v9205_v41  ;;  %v6501_v41 = vld [vmem:[#allocation11 + $0x120] sm:$0xff]  ;;  %v6510_v55 = vld [vmem:[#allocation11 + $0x168] sm:$0xff] }
 0x64a   :  { %9210 = vmatprep.subr.bf16.mxu1 %v9209_v21  ;;  %v9229_v38 = vpack.c.bf16 %v6502_v42, %v6501_v41  ;;  %v6449_v41 = vrot.slane %v13078_v0, 7  ;;  %v6521_v42 = vld [vmem:[#allocation11 + $0x1c0] sm:$0xff] }
 0x64c   :  { %8892 = vmatmul.mubr.msk.f32.gmra.mrb[26].mxu1 %vm5607_vm5, %v13009_v12 }
 0x64d   :  { %9212 = vmatpush3.bf16.msra.mxu1 %v9209_v21  ;;  %8910 = vmatprep.mubr.msk.f32.mxu1 %vm5607_vm5, %v6828_v13  ;;  %v6509_v21 = vld [vmem:[#allocation11 + $0x160] sm:$0xff]  ;;  %v6431_v13 = vcombine.high %v13015_v29, %v13015_v29 }
 0x64e   :  { %9214 = vmatprep.subr.bf16.mxu1 %v9213_v3  ;;  %v9245_v54 = vpack.c.bf16 %v6510_v55, %v6509_v21  ;;  %v6527_v55 = vld [vmem:[#allocation11 + $0x1f0] sm:$0xff] }
 0x64f   :  { %v6435_v56 = vrot.slane %v6431_v13, 5  ;;  %v6533_v13 = vld [vmem:[#allocation11 + $0x220] sm:$0xff] }
 0x651   :  { %9216 = vmatpush3.bf16.msra.mxu1 %v9213_v3  ;;  %v6512_v3 = vld [vmem:[#allocation11 + $0x178] sm:$0xff]  ;;  %v13062_v51 = vsel %vm12931_vm1, %v8182_v58, %v6435_v56 }
 0x652   :  { %9218 = vmatprep.subr.bf16.mxu1 %v9217_v9  ;;  %v9249_v2 = vpack.c.bf16 %v6512_v3, %v6511_v34  ;;  %v7023_v52 = vcombine.low %v12987_v16, %v13062_v51  ;;  %v9261_v16 = vpack.c.bf16 %v6518_v26, %v6517_v5  ;;  %v6532_v34 = vld [vmem:[#allocation11 + $0x218] sm:$0xff]  ;;  %v7849_v26 = vld [vmem:[%s13287_s13 + $0x20] sm:$0xff] }
 0x655   :  { %9220 = vmatpush3.bf16.msra.mxu1 %v9217_v9  ;;  %v6515_v9 = vld [vmem:[#allocation11 + $0x190] sm:$0xff] }
 0x656   :  { %9222 = vmatprep.subr.bf16.mxu1 %v9221_v32  ;;  %v9257_v31 = vpack.c.bf16 %v6516_v19, %v6515_v9 }
 0x658   :  { %8911 = vmatmul.mubr.msk.f32.vlgmr.msra.gmra.mrb[24].mxu1 %vm5607_vm5, %v6829_v57  ;;  %v6520_v57 = vld [vmem:[#allocation11 + $0x1b8] sm:$0xff] }
 0x659   :  { %8913 = vmatprep.mubr.msk.f32.mxu1 %vm5607_vm5, %v6830_v44  ;;  %9224 = vmatpush3.bf16.msra.mxu1 %v9221_v32  ;;  %v13071_v32 = vsel %vm12931_vm1, %v8183_v49, %v6439_v46  ;;  %v9265_v6 = vpack.c.bf16 %v6520_v57, %v6519_v61  ;;  %v7851_v61 = vld [vmem:[%s13287_s13 + $0x30] sm:$0xff]  ;;  %v7852_v57 = vld [vmem:[%s13287_s13 + $0x38] sm:$0xff] }
 0x65a   :  { %9226 = vmatprep.subr.bf16.mxu1 %v9225_v47  ;;  %v7025_v59 = vcombine.low %v13005_v60, %v13071_v32  ;;  %v6522_v60 = vld [vmem:[#allocation11 + $0x1c8] sm:$0xff] }
 0x65c   :  { %8914 = vmatmul.mubr.msk.f32.gmra.mrb[26].mxu1 %vm5607_vm5, %v6831_v36  ;;  %v9553_v36 = vld [vmem:[#allocation5 + $0xb4] ss:$0 sps:$4 sm:$0xff]  }
 0x65d   :  { %9228 = vmatpush3.bf16.msra.mxu1 %v9225_v47  ;;  %8932 = vmatprep.mubr.msk.f32.mxu1 %vm5607_vm5, %v6925_v1  ;;  %v9552_v47 = vld [vmem:[#allocation5 + $0x54] ss:$0 sps:$4 sm:$0xff]   ;;  %v9269_v1 = vpack.c.bf16 %v6522_v60, %v6521_v42  ;;  %v8185_v14 = vrot.slane %v9553_v36, 11  ;;  %v7856_v42 = vld [vmem:[%s13287_s13 + $0x58] sm:$0xff]  ;;  %v7857_v36 = vld [vmem:[%s13287_s13 + $0x60] sm:$0xff] }
 0x65e   :  { %9230 = vmatprep.subr.bf16.mxu1 %v9229_v38  ;;  %v8184_v44 = vrot.slane %v9552_v47, 11  ;;  %v9311_v47 = vpack.c.bf16 %v7852_v57, %v7851_v61 }
 0x660   :  { %v6450_v35 = vsel %vm12857_vm14, %v8184_v44, %v6449_v41  ;;  %v7855_v41 = vld [vmem:[%s13287_s13 + $0x50] sm:$0xff] }
 0x661   :  { %9232 = vmatpush3.bf16.msra.mxu1 %v9229_v38  ;;  %v13083_v38 = vld [vmem:[#allocation5 + $0xb8] sm:$0xff]  ;;  %v7119_v10 = vcombine.low %v13023_v30, %v6450_v35  ;;  %v6529_v30 = vld [vmem:[#allocation11 + $0x200] sm:$0xff]  ;;  %v9317_v60 = vpack.c.bf16 %v7856_v42, %v7855_v41 }
 0x662   :  { %9234 = vmatprep.subr.bf16.mxu1 %v9233_v53  ;;  %v8187_v46 = vrot.slane %v13083_v38, 9  ;;  %v8224_v35 = vld [vmem:[%s13284_s10] ss:$0 sm:$0xff] }
 0x665   :  { %9236 = vmatpush3.bf16.msra.mxu1 %v9233_v53  ;;  %v6453_v53 = vrot.slane %v13083_v38, 7 }
 0x666   :  { %9238 = vmatprep.subr.bf16.mxu1 %v9237_v4 }
 0x667   :  { %v6454_v43 = vsel %vm12857_vm14, %v8185_v14, %v6453_v53  ;;  %v7859_v14 = vld [vmem:[%s13287_s13 + $0x70] sm:$0xff]  ;;  %v7860_v53 = vld [vmem:[%s13287_s13 + $0x78] sm:$0xff] }
 0x668   :  { %8933 = vmatmul.mubr.msk.f32.vlgmr.msra.gmra.mrb[24].mxu1 %vm5607_vm5, %v6926_v37  ;;  %v6526_v37 = vld [vmem:[#allocation11 + $0x1e8] sm:$0xff] }
 0x669   :  { %8935 = vmatprep.mubr.msk.f32.mxu1 %vm5607_vm5, %v6927_v48  ;;  %9240 = vmatpush3.bf16.msra.mxu1 %v9237_v4  ;;  %v6513_v48 = vld [vmem:[#allocation11 + $0x180] sm:$0xff]  ;;  %v9277_v21 = vpack.c.bf16 %v6526_v37, %v6525_v63 }
 0x66a   :  { %9242 = vmatprep.subr.bf16.mxu1 %v9241_v20  ;;  %v9253_v50 = vpack.c.bf16 %v6514_v45, %v6513_v48  ;;  %v6535_v48 = vld [vmem:[#allocation11 + $0x230] sm:$0xff]  ;;  %v6536_v45 = vld [vmem:[#allocation11 + $0x238] sm:$0xff] }
 0x66b   :  { %v9297_v17 = vpack.c.bf16 %v6536_v45, %v6535_v48 }
 0x66c   :  { %8936 = vmatmul.mubr.msk.f32.gmra.mrb[26].mxu1 %vm5607_vm5, %v6928_v39  ;;  %v6528_v39 = vld [vmem:[#allocation11 + $0x1f8] sm:$0xff] }
 0x66d   :  { %9244 = vmatpush3.bf16.msra.mxu1 %v9241_v20  ;;  %8954 = vmatprep.mubr.msk.f32.mxu1 %vm5607_vm5, %v7022_v22  ;;  %v7120_v20 = vcombine.low %v13032_v33, %v6454_v43  ;;  %v9281_v40 = vpack.c.bf16 %v6528_v39, %v6527_v55  ;;  %v6531_v22 = vld [vmem:[#allocation11 + $0x210] sm:$0xff]  ;;  %v7210_v33 = vcombine.low %v13015_v29, %v13078_v0 }
 0x66e   :  { %9246 = vmatprep.subr.bf16.mxu1 %v9245_v54  ;;  %v9289_v3 = vpack.c.bf16 %v6532_v34, %v6531_v22  ;;  %v6455_v29 = vcombine.high %v13078_v0, %v13078_v0 }
 0x670   :  { %v6459_v58 = vrot.slane %v6455_v29, 5 }
 0x671   :  { %9248 = vmatpush3.bf16.msra.mxu1 %v9245_v54  ;;  %v6530_v54 = vld [vmem:[#allocation11 + $0x208] sm:$0xff] }
 0x672   :  { %9250 = vmatprep.subr.bf16.mxu1 %v9249_v2 }
 0x675   :  { %9252 = vmatpush3.bf16.msra.mxu1 %v9249_v2  ;;  %v6534_v2 = vld [vmem:[#allocation11 + $0x228] sm:$0xff] }
 0x676   :  { %9254 = vmatprep.subr.bf16.mxu1 %v9253_v50  ;;  %v9293_v56 = vpack.c.bf16 %v6534_v2, %v6533_v13 }
 0x678   :  { %8955 = vmatmul.mubr.msk.f32.vlgmr.msra.gmra.mrb[24].mxu1 %vm5607_vm5, %v7023_v52  ;;  %v7845_v52 = vld [vmem:[%s13287_s13] sm:$0xff] }
 0x679   :  { %8957 = vmatprep.mubr.msk.f32.mxu1 %vm5607_vm5, %v7024_v25  ;;  %9256 = vmatpush3.bf16.msra.mxu1 %v9253_v50 }
 0x67a   :  { %9258 = vmatprep.subr.bf16.mxu1 %v9257_v31 }
 0x67c   :  { %8958 = vmatmul.mubr.msk.f32.gmra.mrb[26].mxu1 %vm5607_vm5, %v7025_v59  ;;  %v7850_v59 = vld [vmem:[%s13287_s13 + $0x28] sm:$0xff] }
 0x67d   :  { %9260 = vmatpush3.bf16.msra.mxu1 %v9257_v31  ;;  %8976 = vmatprep.mubr.msk.f32.mxu1 %vm5607_vm5, %v12891_v23  ;;  %v6523_v23 = vld [vmem:[#allocation11 + $0x1d0] sm:$0xff]  ;;  %v9670_v31 = vmov 0.0|0.0  }
 0x67e   :  { %9262 = vmatprep.subr.bf16.mxu1 %v9261_v16  ;;  %v9273_v4 = vpack.c.bf16 %v6524_v27, %v6523_v23 }
 0x681   :  { %9264 = vmatpush3.bf16.msra.mxu1 %v9261_v16  ;;  %v9308_v16 = vpack.c.bf16 %v7850_v59, %v7849_v26 }
 0x682   :  { %9266 = vmatprep.subr.bf16.mxu1 %v9265_v6 }
 0x685   :  { %9268 = vmatpush3.bf16.msra.mxu1 %v9265_v6  ;;  %v7854_v6 = vld [vmem:[%s13287_s13 + $0x48] sm:$0xff] }
 0x686   :  { %9270 = vmatprep.subr.bf16.mxu1 %v9269_v1 }
 0x688   :  { %8977 = vmatmul.mubr.msk.f32.vlgmr.msra.gmra.mrb[24].mxu1 %vm5607_vm5, %v7119_v10 }
 0x689   :  { %8979 = vmatprep.mubr.msk.f32.mxu1 %vm5607_vm5, %v12917_v24  ;;  %9272 = vmatpush3.bf16.msra.mxu1 %v9269_v1  ;;  %v9285_v24 = vpack.c.bf16 %v6530_v54, %v6529_v30 }
 0x68a   :  { %9274 = vmatprep.subr.bf16.mxu1 %v9273_v4 }
 0x68c   :  { %8980 = vmatmul.mubr.msk.f32.gmra.mrb[26].mxu1 %vm5607_vm5, %v7120_v20 }
 0x68d   :  { %9276 = vmatpush3.bf16.msra.mxu1 %v9273_v4  ;;  %8998 = vmatprep.mubr.msk.f32.mxu1 %vm5607_vm5, %v12937_v15  ;;  %v7211_v15 = vcombine.low %v13019_v28, %v13083_v38  ;;  %v6456_v28 = vcombine.high %v13083_v38, %v13083_v38  ;;  %v7858_v38 = vld [vmem:[%s13287_s13 + $0x68] sm:$0xff]  ;;  %v9323_v4 = vpack.c.bf16 %v7860_v53, %v7859_v14 }
 0x68e   :  { %9278 = vmatprep.subr.bf16.mxu1 %v9277_v21  ;;  %v9320_v1 = vpack.c.bf16 %v7858_v38, %v7857_v36 }
 0x68f   :  { %v6463_v9 = vrot.slane %v6456_v28, 5 }
 0x691   :  { %9280 = vmatpush3.bf16.msra.mxu1 %v9277_v21 }
 0x692   :  { %9282 = vmatprep.subr.bf16.mxu1 %v9281_v40 }
 0x695   :  { %9284 = vmatpush3.bf16.msra.mxu1 %v9281_v40 }
 0x696   :  { %9286 = vmatprep.subr.bf16.mxu1 %v9285_v24 }
 0x698   :  { %8999 = vmatmul.mubr.msk.f32.vlgmr.msra.gmra.mrb[24].mxu1 %vm5607_vm5, %v7210_v33 }
 0x699   :  { %9001 = vmatprep.mubr.msk.f32.mxu1 %vm5607_vm5, %v12953_v7  ;;  %9288 = vmatpush3.bf16.msra.mxu1 %v9285_v24  ;;  %v8186_v7 = vrot.slane %v13078_v0, 9  ;;  %v7853_v0 = vld [vmem:[%s13287_s13 + $0x40] sm:$0xff] }
 0x69a   :  { %9290 = vmatprep.subr.bf16.mxu1 %v9289_v3  ;;  %v9314_v44 = vpack.c.bf16 %v7854_v6, %v7853_v0 }
 0x69b   :  { %v6460_v50 = vsel %vm12931_vm1, %v8186_v7, %v6459_v58 }
 0x69c   :  { %9002 = vmatmul.mubr.msk.f32.gmra.mrb[26].mxu1 %vm5607_vm5, %v7211_v15  ;;  %v7301_v19 = vcombine.low %v13062_v51, %v6460_v50  ;;  %v7846_v51 = vld [vmem:[%s13287_s13 + $0x8] sm:$0xff] }
 0x69d   :  { %9292 = vmatpush3.bf16.msra.mxu1 %v9289_v3  ;;  %9020 = vmatprep.mubr.msk.f32.mxu1 %vm5607_vm5, %v12992_v11  ;;  %v6464_v11 = vsel %vm12931_vm1, %v8187_v46, %v6463_v9  ;;  %v9302_v25 = vpack.c.bf16 %v7846_v51, %v7845_v52 }
 0x69e   :  { %9294 = vmatprep.subr.bf16.mxu1 %v9293_v56  ;;  %v7302_v49 = vcombine.low %v13071_v32, %v6464_v11  ;;  %v13486_v32 = vmov 0.0  }
 0x6a1   :  { %9296 = vmatpush3.bf16.msra.mxu1 %v9293_v56 }
 0x6a2   :  { %9298 = vmatprep.subr.bf16.mxu1 %v9297_v17 }
 0x6a5   :  { %9300 = vmatpush3.bf16.msra.mxu1 %v9297_v17 }
 0x6a6   :  { %9301 = vmatprep.subr.bf16.mxu1 %v9670_v31 }
 0x6a8   :  { %9021 = vmatmul.mubr.msk.f32.vlgmr.msra.gmra.mrb[24].mxu1 %vm5607_vm5, %v7301_v19 }
 0x6a9   :  { %9023 = vmatprep.mubr.msk.f32.mxu1 %vm5607_vm5, %v13009_v12  ;;  %v7848_v12 = vld [vmem:[%s13287_s13 + $0x18] sm:$0xff]  ;;  %9303 = vmatpush3.bf16.msra.mxu1 %v9302_v25 }
 0x6aa   :  { %v9305_v5 = vpack.c.bf16 %v7848_v12, %v7847_v18  ;;  %9304 = vmatprep.subr.bf16.mxu1 %v9670_v31 }
 0x6ac   :  { %9024 = vmatmul.mubr.msk.f32.gmra.mrb[26].mxu1 %vm5607_vm5, %v7302_v49 }
 0x6ad   :  { %9058 = vmatprep.mubr.msk.f32.mxu1 %vm9671_vm2, %v13486_v32  ;;  %9306 = vmatpush3.bf16.msra.mxu1 %v9305_v5 }
 0x6ae   :  { %9307 = vmatprep.subr.bf16.mxu1 %v9670_v31 }
 0x6b1   :  { %9309 = vmatpush3.bf16.msra.mxu1 %v9308_v16 }
 0x6b2   :  { %9310 = vmatprep.subr.bf16.mxu1 %v9670_v31 }
 0x6b5   :  { %9312 = vmatpush3.bf16.msra.mxu1 %v9311_v47 }
 0x6b6   :  { %9313 = vmatprep.subr.bf16.mxu1 %v9670_v31 }
 0x6b9   :  { %9315 = vmatpush3.bf16.msra.mxu1 %v9314_v44 }
 0x6ba   :  { %9316 = vmatprep.subr.bf16.mxu1 %v9670_v31 }
 0x6bd   :  { %9318 = vmatpush3.bf16.msra.mxu1 %v9317_v60 }
 0x6be   :  { %9319 = vmatprep.subr.bf16.mxu1 %v9670_v31 }
 0x6c1   :  { %9321 = vmatpush3.bf16.msra.mxu1 %v9320_v1 }
 0x6c2   :  { %9322 = vmatprep.subr.bf16.mxu1 %v9670_v31 }
 0x6c5   :  { %9324 = vmatpush3.bf16.msra.mxu1 %v9323_v4 }
 0x77b   :  { %v9022_v23 = vpop.f32.mrb[24].mxu1 }
 0x77c   :  { %v7431_v27 = vadd.f32 %v9022_v23, %v8224_v35  ;;  %v7373_v10 = vpop.f32.mrb[25].mxu1 }
 0x77d   :  { %v7430_v43 = vadd.f32 %v8224_v35, %v7373_v10 }
 0x77e   :  { %v7435_v63 = vmax.f32 %v7431_v27, 0.0 }
 0x77f   :  { %v7434_v37 = vmax.f32 %v7430_v43, 0.0  ;;  %v9025_v20 = vpop.f32.mrb[26].mxu1 }
 0x780   :  { %v7445_v21 = vcombine.high %v7435_v63, %v7435_v63  ;;  %v7433_v55 = vadd.f32 %v9025_v20, %v8224_v35  ;;  %v7383_v39 = vpop.f32.mrb[27].mxu1 }
 0x781   :  { %v7444_v40 = vcombine.high %v7434_v37, %v7434_v37  ;;  %v7432_v30 = vadd.f32 %v8224_v35, %v7383_v39 }
 0x782   :  { %v7453_v54 = vmax.f32 %v7435_v63, %v7445_v21  ;;  %v7437_v24 = vmax.f32 %v7433_v55, 0.0 }
 0x783   :  { %v7452_v22 = vmax.f32 %v7434_v37, %v7444_v40  ;;  %v7436_v34 = vmax.f32 %v7432_v30, 0.0 }
 0x784   :  { %v7474_v33 = vrot.slane %v7453_v54, %v12121_v62  ;;  %v7447_v3 = vcombine.high %v7437_v24, %v7437_v24 }
 0x785   :  { %v7466_v13 = vrot.slane %v7452_v22, %v12121_v62  ;;  %v7446_v2 = vcombine.high %v7436_v34, %v7436_v34 }
 0x786   :  { %v7475_v15 = vcombine.high %v7474_v33, %v7474_v33  ;;  %v8227_v56 = vrot.slane %v7474_v33, 9  ;;  %v7455_v48 = vmax.f32 %v7437_v24, %v7447_v3 }
 0x787   :  { %v7467_v45 = vcombine.high %v7466_v13, %v7466_v13  ;;  %v8225_v29 = vrot.slane %v7466_v13, 9  ;;  %v7454_v17 = vmax.f32 %v7436_v34, %v7446_v2 }
 0x788   :  { %v8228_v7 = vrot.slane %v7475_v15, 9  ;;  %v7490_v58 = vrot.slane %v7455_v48, %v12121_v62  ;;  %v7526_v9 = vmax.f32 %v7474_v33, %v8227_v56 }
 0x789   :  { %v8226_v28 = vrot.slane %v7467_v45, 9  ;;  %v7524_v50 = vmax.f32 %v7466_v13, %v8225_v29  ;;  %v7482_v46 = vrot.slane %v7454_v17, %v12121_v62 }
 0x78a   :  { %v7527_v19 = vmax.f32 %v7475_v15, %v8228_v7  ;;  %v7491_v11 = vcombine.high %v7490_v58, %v7490_v58  ;;  %v8231_v49 = vrot.slane %v7490_v58, 9  ;;  %v7551_v26 = vrot.slane %v7526_v9, %v9902_v8 }
 0x78b   :  { %v7525_v52 = vmax.f32 %v7467_v45, %v8226_v28  ;;  %v7483_v51 = vcombine.high %v7482_v46, %v7482_v46  ;;  %v8229_v18 = vrot.slane %v7482_v46, 9  ;;  %v7543_v25 = vrot.slane %v7524_v50, %v9902_v8 }
 0x78c   :  { %v8232_v31 = vrot.slane %v7491_v11, 9  ;;  %v7555_v59 = vrot.slane %v7527_v19, %v9902_v8  ;;  %v7530_v16 = vmax.f32 %v7490_v58, %v8231_v49 }
 0x78d   :  { %v7547_v12 = vrot.slane %v7525_v52, %v9902_v8  ;;  %v8230_v32 = vrot.slane %v7483_v51, 9  ;;  %v7528_v5 = vmax.f32 %v7482_v46, %v8229_v18 }
 0x78e   :  { %v7531_v57 = vmax.f32 %v7491_v11, %v8232_v31  ;;  %v7567_v42 = vrot.slane %v7530_v16, %v9902_v8 }
 0x78f   :  { %v7572_v61 = vsel %vm5568_vm6, %v7547_v12, %v7543_v25  ;;  %v7529_v47 = vmax.f32 %v7483_v51, %v8230_v32  ;;  %v7559_v0 = vrot.slane %v7528_v5, %v9902_v8 }
 0x790   :  { %v7573_v6 = vsel %vm5570_vm7, %v7551_v26, %v7572_v61  ;;  %v7571_v36 = vrot.slane %v7531_v57, %v9902_v8 }
 0x791   :  { %v7563_v44 = vrot.slane %v7529_v47, %v9902_v8  ;;  %v7574_v41 = vsel %vm5572_vm8, %v7555_v59, %v7573_v6 }
 0x792   :  { %v7575_v60 = vsel %vm5574_vm9, %v7559_v0, %v7574_v41 }
 0x793   :  { %v7576_v38 = vsel %vm5576_vm10, %v7563_v44, %v7575_v60 }
 0x794   :  { %v7577_v1 = vsel %vm5578_vm11, %v7567_v42, %v7576_v38  ;;  %v8233_v42 = vld [vmem:[%s13286_s12] ss:$0 sm:$0xff] }
 0x795   :  { %v7578_v35 = vsel %vm5580_vm12, %v7571_v36, %v7577_v1  ;;  %v7742_v60 = vcombine.high %v8233_v42, %v8233_v42  ;;  %v7438_v36 = vld [vmem:[%s13285_s11] sm:$0x1] }
 0x796   :  { %v7580_v14 = vrot.slane %v7578_v35, 4 }
 0x797   :  { %v7756_v1 = vrot.slane %v7742_v60, %v12121_v62 }
 0x798   :  { %v7581_v53 = vadd.f32 %v7580_v14, %v7578_v35  ;;  %v7749_v14 = vrot.slane %v8233_v42, %v12121_v62 }
 0x79a   :  { %v7582_v23 = vrot.slane %v7581_v53, 2 }
 0x79c   :  { %v7583_v27 = vadd.f32 %v7582_v23, %v7581_v53  ;;  %v7758_v23 = vcombine.high %v7756_v1, %v7756_v1 }
 0x79e   :  { %v7584_v10 = vrot.slane %v7583_v27, 1 }
 0x7a0   :  { %v7585_v4 = vadd.f32 %v7584_v10, %v7583_v27 }
 0x7a2   :  { %v7586_v43 = vmul.f32 0.125, %v7585_v4  ;;  %v7757_v4 = vcombine.high %v7749_v14, %v7749_v14 }
 0x7a4   :  { %v7590_v63 = vrot.slane %v7586_v43, %v9902_v8 }
 0x7a6   :  { %v7592_v37 = vcombine.high %v7590_v63, %v7590_v63  ;;  %v7599_v20 = vrot.slane %v7590_v63, %v12121_v62 }
 0x7a8   :  { %v7606_v21 = vrot.slane %v7592_v37, %v12121_v62  ;;  %v7607_v55 = vcombine.high %v7599_v20, %v7599_v20  ;;  %v7609_v39 = vrot.slane %v7599_v20, 1  ;;  %v7621_v40 = vsub.f32 %v7524_v50, %v7599_v20 }
 0x7aa   :  { %v7608_v30 = vcombine.high %v7606_v21, %v7606_v21  ;;  %v7610_v54 = vrot.slane %v7607_v55, 1  ;;  %v7611_v24 = vrot.slane %v7606_v21, 1  ;;  %v13198_v22 = vsub.f32 %v7525_v52, %v7609_v39 }
 0x7ab   :  { %v13200_v34 = vsub.f32 %v7526_v9, %v7607_v55  ;;  %v7625_v33 = vsub.f32 %v7528_v5, %v7606_v21  ;;  %v7629_v3 = vmul.f32 %v7621_v40, %v7621_v40  ;;  %v7759_v21 = vrot.slane %v7749_v14, 1 }
 0x7ac   :  { %v7612_v13 = vrot.slane %v7608_v30, 1  ;;  %v13202_v2 = vsub.f32 %v7527_v19, %v7610_v54  ;;  %v7626_v15 = vsub.f32 %v7529_v47, %v7611_v24  ;;  %v7627_v56 = vsub.f32 %v7530_v16, %v7608_v30 }
 0x7ad   :  { %v7630_v48 = vmul.f32 %v13198_v22, %v13198_v22  ;;  %v7631_v45 = vmul.f32 %v13200_v34, %v13200_v34  ;;  %v7633_v7 = vmul.f32 %v7625_v33, %v7625_v33  ;;  %v7648_v28 = vrot.slane %v7629_v3, %v9902_v8 }
 0x7ae   :  { %v13208_v29 = vsub.f32 %v7531_v57, %v7612_v13  ;;  %v7632_v17 = vmul.f32 %v13202_v2, %v13202_v2  ;;  %v7634_v58 = vmul.f32 %v7626_v15, %v7626_v15  ;;  %v7635_v9 = vmul.f32 %v7627_v56, %v7627_v56 }
 0x7af   :  { %v7652_v50 = vrot.slane %v7630_v48, %v9902_v8  ;;  %v7656_v46 = vrot.slane %v7631_v45, %v9902_v8  ;;  %v7664_v52 = vrot.slane %v7633_v7, %v9902_v8  ;;  %v7761_v55 = vrot.slane %v7756_v1, 1 }
 0x7b0   :  { %v7660_v19 = vrot.slane %v7632_v17, %v9902_v8  ;;  %v7636_v11 = vmul.f32 %v13208_v29, %v13208_v29  ;;  %v7668_v18 = vrot.slane %v7634_v58, %v9902_v8  ;;  %v7672_v25 = vrot.slane %v7635_v9, %v9902_v8 }
 0x7b1   :  { %v7677_v49 = vsel %vm5568_vm6, %v7652_v50, %v7648_v28  ;;  %v7762_v39 = vrot.slane %v7758_v23, 1  ;;  %v7760_v45 = vrot.slane %v7757_v4, 1 }
 0x7b2   :  { %v7678_v51 = vsel %vm5570_vm7, %v7656_v46, %v7677_v49  ;;  %v7676_v32 = vrot.slane %v7636_v11, %v9902_v8 }
 0x7b3   :  { %v7679_v31 = vsel %vm5572_vm8, %v7660_v19, %v7678_v51 }
 0x7b4   :  { %v7680_v12 = vsel %vm5574_vm9, %v7664_v52, %v7679_v31 }
 0x7b5   :  { %v7681_v5 = vsel %vm5576_vm10, %v7668_v18, %v7680_v12 }
 0x7b6   :  { %v7682_v26 = vsel %vm5578_vm11, %v7672_v25, %v7681_v5 }
 0x7b7   :  { %v7683_v59 = vsel %vm5580_vm12, %v7676_v32, %v7682_v26 }
 0x7b8   :  { %v7685_v16 = vrot.slane %v7683_v59, 4 }
 0x7ba   :  { %v7686_v61 = vadd.f32 %v7685_v16, %v7683_v59 }
 0x7bc   :  { %v7687_v57 = vrot.slane %v7686_v61, 2 }
 0x7be   :  { %v7688_v47 = vadd.f32 %v7687_v57, %v7686_v61 }
 0x7c0   :  { %v7689_v0 = vrot.slane %v7688_v47, 1 }
 0x7c2   :  { %v7690_v6 = vadd.f32 %v7689_v0, %v7688_v47 }
 0x7c4   :  { %v7691_v44 = vmul.f32 0.125, %v7690_v6 }
 0x7c6   :  { %v7692_v41 = vadd.f32 1e-05, %v7691_v44 }
 0x7c8   :  { %9562 = vrsqrt.f32 %v7692_v41 }
 0x7d2   :  { %v9563_v38 = vpop.eup %9562 }
 0x7d3   :  { %v7694_v35 = vmul.f32 %v9563_v38, %v7438_v36 }
 0x7d5   :  { %v7699_v53 = vrot.slane %v7694_v35, %v9902_v8 }
 0x7d7   :  { %v7700_v27 = vcombine.high %v7699_v53, %v7699_v53  ;;  %v7707_v10 = vrot.slane %v7699_v53, %v12121_v62  ;;  %v8234_v53 = vld [vmem:[%s13288_s14] ss:$0 sm:$0xff] }
 0x7d9   :  { %v7714_v43 = vrot.slane %v7700_v27, %v12121_v62  ;;  %v7715_v63 = vcombine.high %v7707_v10, %v7707_v10  ;;  %v7717_v37 = vrot.slane %v7707_v10, 1  ;;  %v7729_v20 = vmul.f32 %v7707_v10, %v7621_v40 }
 0x7db   :  { %v7716_v30 = vcombine.high %v7714_v43, %v7714_v43  ;;  %v7719_v54 = vrot.slane %v7714_v43, 1  ;;  %v7733_v24 = vmul.f32 %v7714_v43, %v7625_v33  ;;  %v7718_v3 = vrot.slane %v7715_v63, 1 }
 0x7dc   :  { %v7730_v13 = vmul.f32 %v7717_v37, %v13198_v22  ;;  %v7731_v48 = vmul.f32 %v7715_v63, %v13200_v34  ;;  %v7771_v17 = vadd.f32 %v7749_v14, %v7729_v20 }
 0x7dd   :  { %v7720_v7 = vrot.slane %v7716_v30, 1  ;;  %v7734_v58 = vmul.f32 %v7719_v54, %v7626_v15  ;;  %v7735_v28 = vmul.f32 %v7716_v30, %v7627_v56  ;;  %v7775_v62 = vadd.f32 %v7756_v1, %v7733_v24 }
 0x7de   :  { %v7732_v50 = vmul.f32 %v7718_v3, %v13202_v2  ;;  %v7772_v40 = vadd.f32 %v7759_v21, %v7730_v13  ;;  %v7773_v46 = vadd.f32 %v7757_v4, %v7731_v48  ;;  %v7790_v49 = vrot.slane %v7771_v17, %v9902_v8 }
 0x7df   :  { %v7776_v9 = vadd.f32 %v7761_v55, %v7734_v58  ;;  %v7736_v19 = vmul.f32 %v7720_v7, %v13208_v29  ;;  %v7777_v11 = vadd.f32 %v7758_v23, %v7735_v28  ;;  %v7806_v52 = vrot.slane %v7775_v62, %v9902_v8 }
 0x7e0   :  { %v7774_v33 = vadd.f32 %v7760_v45, %v7732_v50  ;;  %v7794_v22 = vrot.slane %v7772_v40, %v9902_v8  ;;  %v7798_v34 = vrot.slane %v7773_v46, %v9902_v8 }
 0x7e1   :  { %v7810_v15 = vrot.slane %v7776_v9, %v9902_v8  ;;  %v7778_v56 = vadd.f32 %v7762_v39, %v7736_v19  ;;  %v7814_v2 = vrot.slane %v7777_v11, %v9902_v8 }
 0x7e2   :  { %v7802_v51 = vrot.slane %v7774_v33, %v9902_v8  ;;  %v7819_v18 = vsel %vm5568_vm6, %v7794_v22, %v7790_v49 }
 0x7e3   :  { %v7818_v29 = vrot.slane %v7778_v56, %v9902_v8  ;;  %v7820_v31 = vsel %vm5570_vm7, %v7798_v34, %v7819_v18  ;;  %v7822_v25 = vsel %vm5568_vm6, %v7810_v15, %v7806_v52 }
 0x7e4   :  { %v7821_v12 = vsel %vm5572_vm8, %v7802_v51, %v7820_v31  ;;  %v7823_v32 = vsel %vm5570_vm7, %v7814_v2, %v7822_v25 }
 0x7e5   :  { %v7824_v5 = vsel %vm5572_vm8, %v7818_v29, %v7823_v32  ;;  %v7828_v26 = vsel %vm7827_vm3, %v7821_v12, 0.0 }
 0x7e6   :  { %v7829_v59 = vrot.slane %v7828_v26, 4  ;;  %v7835_v16 = vsel %vm7827_vm3, %v7824_v5, 0.0 }
 0x7e7   :  { %v7836_v61 = vrot.slane %v7835_v16, 4 }
 0x7e8   :  { %v7830_v57 = vadd.f32 %v7829_v59, %v7828_v26 }
 0x7e9   :  { %v7837_v47 = vadd.f32 %v7836_v61, %v7835_v16 }
 0x7ea   :  { %v7831_v0 = vrot.slane %v7830_v57, 2 }
 0x7eb   :  { %v7838_v6 = vrot.slane %v7837_v47, 2 }
 0x7ec   :  { %v7832_v44 = vadd.f32 %v7831_v0, %v7830_v57 }
 0x7ed   :  { %v7839_v8 = vadd.f32 %v7838_v6, %v7837_v47 }
 0x7ee   :  { %v7833_v41 = vrot.slane %v7832_v44, 1 }
 0x7ef   :  { %v7840_v42 = vrot.slane %v7839_v8, 1 }
 0x7f0   :  { %v7834_v60 = vadd.f32 %v7833_v41, %v7832_v44 }
 0x7f1   :  { %v7841_v36 = vadd.f32 %v7840_v42, %v7839_v8 }
 0x7f2   :  { %v7843_v1 = vmul.f32 0.25, %v7834_v60 }
 0x7f3   :  { %v7844_v38 = vmul.f32 0.25, %v7841_v36 }
 0x7f5   :  { %v7870_v35 = vrot.slane %v7844_v38, 7 }
 0x7f7   :  { %v7871_v14 = vsel %vm5568_vm6, %v7870_v35, %v7843_v1 }
 0x7f8   :  { %9059 = vmatmul.mubr.f32.vlgmr.msra.gmra.mrb[28].mxu1 %v7871_v14 }
 0x8cb   :  { %v7939_v23 = vpop.f32.mrb[28].mxu1 }
 0x8cc   :  { %v7940_v27 = vadd.f32 %v8234_v53, %v7939_v23  ;;  %v9060_v10 = vpop.f32.mrb[29].mxu1 }
 0x8ce   :  { %7944 = vst.msk [vmem:[#allocation12] sm:$0x3] %vm7943_vm4, %v7940_v27 }
 0x8cf   :  { %9641 = shalt.err (!%p9638_p0)
}
 0x8d0   :  { %s9642_s24 = scalar_lea.hbm %s13289_s15, 32 }
 0x8d1   :  { %p9643_p1 = scmp.ne.s32.totalorder %s13289_s15, %s9642_s24  ;;  %p9646_p2 = scmp.lt.u32.totalorder %s9642_s24, %s13289_s15 }
 0x8d3   :  { %p9648_p3 = pnand %p9646_p2, %p9643_p1 }
 0x8d5   :  { %9651 = shalt.err (!%p9648_p3)
}
 0x8d6   :  { %7954 = dma.vmem_to_hbm [thread:$0]  %s7952_s21, 32, %s13289_s15, [#allocation8]  }
 0x8d7   :  { %9656 = dma.done.wait [#allocation8], 32  }
 0x8d8   :  { %9657 = vsyncadd [#allocation8], 4294967264 }
 0x8d9   :  { %7958 = vsyncpa [#allocation7], 1 }
 0x8da   :  { %7959 = vsyncpa [#allocation10], 1 }
 0x8db   :  { %7960 = vsyncpa [#allocation8], 1 }

</bundles_post_ra>
